<compile_context>
chip_gen: v7x
topology: tpu7x:2x2x1
jax: 0.10.0
libtpu: 0.0.40
codegen_flags: <defaults>
</compile_context>

<pallas_src>
import jax
import jax.numpy as jnp
from jax.experimental import pallas as pl
from jax.experimental.pallas import tpu as pltpu

# Logical sizes.
D_IN = 784          # 28*28 (block == full array dim, so no lane padding needed)
H1, H2, N_CLASSES = 500, 300, 10
# Lane-aligned padded sizes.
H1_P, H2_P, OUT_P = 512, 384, 128
NEG_BIG = -1e30     # "-inf" bias for padded logit columns


def _round_up(x, m):
    return ((x + m - 1) // m) * m


def _pick_tile_b(batch):
    """Batch-tile heuristic (batch is a static Python int at trace time).

    * batch <= 256: one tile, rounded up to the 8-sublane granule.
    * larger batches: aim for >= 4 grid steps (feeds both v7x TensorCores and
      leaves each >= 2 steps to pipeline) while growing the tile toward 1024
      rows to amortize the ~0.35 us fixed per-grid-step overhead (v6e/v7x).
    """
    if batch <= 256:
        return max(8, _round_up(batch, 8))
    return min(1024, _round_up(pl.cdiv(batch, 4), 256))


def _mlp_kernel(x_ref, w1_ref, b1_ref, w2_ref, b2_ref, w3_ref, b3_ref, o_ref):
    # f32 input tile -> bf16 in-kernel (VPU cast is free relative to the MXU;
    # avoids a separate pad+cast pass over x in HBM).
    x = x_ref[...].astype(jnp.bfloat16)

    # layer1: Linear(784, 500) + Tanh   (Dropout = identity in eval)
    h1 = jnp.tanh(
        jnp.dot(x, w1_ref[...], preferred_element_type=jnp.float32) + b1_ref[...]
    ).astype(jnp.bfloat16)   # bf16 intermediate: halves VMEM temp traffic

    # layer2: Linear(500, 300) + Tanh
    h2 = jnp.tanh(
        jnp.dot(h1, w2_ref[...], preferred_element_type=jnp.float32) + b2_ref[...]
    ).astype(jnp.bfloat16)

    # layer3: Linear(300, 10) + Softmax(dim=1).  Padded columns carry a -1e30
    # bias, so exp() of them is exactly 0 and the row normalization is correct.
    logits = (
        jnp.dot(h2, w3_ref[...], preferred_element_type=jnp.float32) + b3_ref[...]
    )
    m = jnp.max(logits, axis=-1, keepdims=True)
    e = jnp.exp(logits - m)
    denom = jnp.sum(e, axis=-1, keepdims=True)
    # Exact reciprocal (one EUP op on a (tile_b, 1) vector) — rows sum to 1.
    o_ref[...] = (e * pl.reciprocal(denom, approx=False)).astype(o_ref.dtype)


def prepare_params(params):
    """One-time parameter prep: pad to lane-aligned widths, cast MXU operands
    to bf16.  Hoisted out of the per-call forward so this HBM traffic is not
    paid on every inference call."""
    w1, b1, w2, b2, w3, b3 = params
    w1p = jnp.zeros((D_IN, H1_P), jnp.bfloat16).at[:, :H1].set(w1.astype(jnp.bfloat16))
    b1p = jnp.zeros((1, H1_P), jnp.float32).at[:, :H1].set(b1)
    w2p = jnp.zeros((H1_P, H2_P), jnp.bfloat16).at[:H1, :H2].set(w2.astype(jnp.bfloat16))
    b2p = jnp.zeros((1, H2_P), jnp.float32).at[:, :H2].set(b2)
    w3p = jnp.zeros((H2_P, OUT_P), jnp.bfloat16).at[:H2, :N_CLASSES].set(
        w3.astype(jnp.bfloat16))
    b3p = jnp.full((1, OUT_P), NEG_BIG, jnp.float32).at[:, :N_CLASSES].set(b3)
    return (w1p, b1p, w2p, b2p, w3p, b3p)


@jax.jit
def net_forward(x_nchw, prepared_params):
    """Forward pass. x_nchw: [B, 1, 28, 28] f32, prepared_params from
    prepare_params().  Returns [B, 10] f32 softmax probabilities."""
    B = x_nchw.shape[0]
    x2d = x_nchw.reshape(B, -1)          # same semantics as torch .view(B, -1)
    w1p, b1p, w2p, b2p, w3p, b3p = prepared_params

    tile_b = _pick_tile_b(B)
    n_tiles = pl.cdiv(B, tile_b)
    b_pad = n_tiles * tile_b
    if b_pad != B:
        # Ragged tail only: zero-pad rows (f32, no dtype change) so every grid
        # step sees a full tile; padded rows are sliced off below.
        x2d = jnp.zeros((b_pad, D_IN), x2d.dtype).at[:B].set(x2d)

    out_pad = pl.pallas_call(
        _mlp_kernel,
        out_shape=jax.ShapeDtypeStruct((b_pad, OUT_P), jnp.float32),
        grid=(n_tiles,),
        in_specs=[
            pl.BlockSpec((tile_b, D_IN), lambda i: (i, 0)),   # f32 x tile
            # Weights/biases: constant index_maps -> stay resident in VMEM.
            pl.BlockSpec((D_IN, H1_P), lambda i: (0, 0)),
            pl.BlockSpec((1, H1_P), lambda i: (0, 0)),
            pl.BlockSpec((H1_P, H2_P), lambda i: (0, 0)),
            pl.BlockSpec((1, H2_P), lambda i: (0, 0)),
            pl.BlockSpec((H2_P, OUT_P), lambda i: (0, 0)),
            pl.BlockSpec((1, OUT_P), lambda i: (0, 0)),
        ],
        out_specs=pl.BlockSpec((tile_b, OUT_P), lambda i: (i, 0)),
        compiler_params=pltpu.CompilerParams(
            dimension_semantics=("parallel",),     # v7x: shard batch over 2 TCs
            vmem_limit_bytes=32 * 1024 * 1024,     # ample for tile_b up to 1024
        ),
    )(x2d, w1p, b1p, w2p, b2p, w3p, b3p)

    return out_pad[:B, :N_CLASSES]


def net_forward_ref(x_nchw, params):
    """Pure-JAX f32 reference (same math as the PyTorch module in eval mode)."""
    w1, b1, w2, b2, w3, b3 = params
    x2d = x_nchw.reshape(x_nchw.shape[0], -1)
    h1 = jnp.tanh(x2d @ w1 + b1)
    h2 = jnp.tanh(h1 @ w2 + b2)
    logits = h2 @ w3 + b3
    return jax.nn.softmax(logits, axis=1)


def init_params(key):
    """Deterministic parameter init. Weights stored as [in, out] (transpose of
    PyTorch Linear.weight [out, in]); biases as [1, out]."""
    k1, k2, k3, k4, k5, k6 = jax.random.split(key, 6)

    def linear(kw, kb, fan_in, fan_out):
        bound = 1.0 / jnp.sqrt(fan_in)
        w = jax.random.uniform(
            kw, (fan_in, fan_out), jnp.float32, minval=-bound, maxval=bound
        )
        b = jax.random.uniform(
            kb, (1, fan_out), jnp.float32, minval=-bound, maxval=bound
        )
        return w, b

    w1, b1 = linear(k1, k2, D_IN, H1)
    w2, b2 = linear(k3, k4, H1, H2)
    w3, b3 = linear(k5, k6, H2, N_CLASSES)
    return (w1, b1, w2, b2, w3, b3)


if __name__ == "__main__":
    key = jax.random.PRNGKey(0)
    kx, kp = jax.random.split(key)

    params = init_params(kp)
    prepared = prepare_params(params)   # one-time prep, outside the forward

    # B=300 exercises two 256-row grid tiles plus the ragged-tail pad path.
    B = 300
    x = jax.random.normal(kx, (B, 1, 28, 28), dtype=jnp.float32)  # NCHW
    out = jax.block_until_ready(net_forward(x, prepared))
    assert out.shape == (B, N_CLASSES)
    # exact reciprocal -> rows sum to 1 within f32 rounding
    assert jnp.allclose(jnp.sum(out, axis=1), 1.0, atol=1e-4)
    # match the f32 reference within bf16-matmul tolerance
    ref = net_forward_ref(x, params)
    assert jnp.allclose(out, ref, atol=2e-2)

    # B=256 exercises the divisible-batch fast path (no pad copy, single tile).
    x2 = jax.random.normal(kx, (256, 1, 28, 28), dtype=jnp.float32)
    out2 = jax.block_until_ready(net_forward(x2, prepared))
    assert out2.shape == (256, N_CLASSES)
    assert jnp.allclose(out2, net_forward_ref(x2, params), atol=2e-2)

    print("KERNEL_OK")
</pallas_src>

<mosaic_0001>
module attributes {stable_mosaic.version = 11 : i64} {
  func.func @_mlp_kernel(%arg0: i32, %arg1: memref<256x784xf32, #tpu.memory_space<vmem>>, %arg2: memref<784x512xbf16, #tpu.memory_space<vmem>>, %arg3: memref<1x512xf32, #tpu.memory_space<vmem>>, %arg4: memref<512x384xbf16, #tpu.memory_space<vmem>>, %arg5: memref<1x384xf32, #tpu.memory_space<vmem>>, %arg6: memref<384x128xbf16, #tpu.memory_space<vmem>>, %arg7: memref<1x128xf32, #tpu.memory_space<vmem>>, %arg8: memref<256x128xf32, #tpu.memory_space<vmem>>) attributes {dimension_semantics = [#tpu.dimension_semantics<parallel>], iteration_bounds = array<i64: 2>, scalar_prefetch = 0 : i64, scratch_operands = 0 : i64, tpu.core_type = #tpu.core_type<tc>, window_params = [{transform_indices = @transform_0, window_bounds = array<i64: 256, 784>}, {pipeline_mode = #tpu.pipeline_mode<synchronous>, transform_indices = @transform_1, window_bounds = array<i64: 784, 512>}, {pipeline_mode = #tpu.pipeline_mode<synchronous>, transform_indices = @transform_2, window_bounds = array<i64: 1, 512>}, {pipeline_mode = #tpu.pipeline_mode<synchronous>, transform_indices = @transform_3, window_bounds = array<i64: 512, 384>}, {pipeline_mode = #tpu.pipeline_mode<synchronous>, transform_indices = @transform_4, window_bounds = array<i64: 1, 384>}, {pipeline_mode = #tpu.pipeline_mode<synchronous>, transform_indices = @transform_5, window_bounds = array<i64: 384, 128>}, {pipeline_mode = #tpu.pipeline_mode<synchronous>, transform_indices = @transform_6, window_bounds = array<i64: 1, 128>}, {transform_indices = @transform_7, window_bounds = array<i64: 256, 128>}]} {
    %c0 = arith.constant 0 : index
    %c0_0 = arith.constant 0 : index
    %0 = vector.load %arg1[%c0, %c0_0] : memref<256x784xf32, #tpu.memory_space<vmem>>, vector<256x784xf32>
    %1 = arith.truncf %0 : vector<256x784xf32> to vector<256x784xbf16>
    %c0_1 = arith.constant 0 : index
    %c0_2 = arith.constant 0 : index
    %2 = vector.load %arg2[%c0_1, %c0_2] : memref<784x512xbf16, #tpu.memory_space<vmem>>, vector<784x512xbf16>
    %cst = arith.constant dense<0.000000e+00> : vector<256x512xf32>
    %3 = tpu.matmul %1, %2, %cst {dimension_numbers = #tpu.dot_dimension_numbers<[1], [0], [0], [1], [0, 0, 1, 1], [], []>} : vector<256x784xbf16>, vector<784x512xbf16>, vector<256x512xf32> -> vector<256x512xf32>
    %c0_3 = arith.constant 0 : index
    %c0_4 = arith.constant 0 : index
    %4 = vector.load %arg3[%c0_3, %c0_4] : memref<1x512xf32, #tpu.memory_space<vmem>>, vector<1x512xf32>
    %5 = vector.broadcast %4 : vector<1x512xf32> to vector<256x512xf32>
    %6 = arith.addf %3, %5 : vector<256x512xf32>
    %7 = math.tanh %6 : vector<256x512xf32>
    %8 = arith.truncf %7 : vector<256x512xf32> to vector<256x512xbf16>
    %c0_5 = arith.constant 0 : index
    %c0_6 = arith.constant 0 : index
    %9 = vector.load %arg4[%c0_5, %c0_6] : memref<512x384xbf16, #tpu.memory_space<vmem>>, vector<512x384xbf16>
    %cst_7 = arith.constant dense<0.000000e+00> : vector<256x384xf32>
    %10 = tpu.matmul %8, %9, %cst_7 {dimension_numbers = #tpu.dot_dimension_numbers<[1], [0], [0], [1], [0, 0, 1, 1], [], []>} : vector<256x512xbf16>, vector<512x384xbf16>, vector<256x384xf32> -> vector<256x384xf32>
    %c0_8 = arith.constant 0 : index
    %c0_9 = arith.constant 0 : index
    %11 = vector.load %arg5[%c0_8, %c0_9] : memref<1x384xf32, #tpu.memory_space<vmem>>, vector<1x384xf32>
    %12 = vector.broadcast %11 : vector<1x384xf32> to vector<256x384xf32>
    %13 = arith.addf %10, %12 : vector<256x384xf32>
    %14 = math.tanh %13 : vector<256x384xf32>
    %15 = arith.truncf %14 : vector<256x384xf32> to vector<256x384xbf16>
    %c0_10 = arith.constant 0 : index
    %c0_11 = arith.constant 0 : index
    %16 = vector.load %arg6[%c0_10, %c0_11] : memref<384x128xbf16, #tpu.memory_space<vmem>>, vector<384x128xbf16>
    %cst_12 = arith.constant dense<0.000000e+00> : vector<256x128xf32>
    %17 = tpu.matmul %15, %16, %cst_12 {dimension_numbers = #tpu.dot_dimension_numbers<[1], [0], [0], [1], [0, 0, 1, 1], [], []>} : vector<256x384xbf16>, vector<384x128xbf16>, vector<256x128xf32> -> vector<256x128xf32>
    %c0_13 = arith.constant 0 : index
    %c0_14 = arith.constant 0 : index
    %18 = vector.load %arg7[%c0_13, %c0_14] : memref<1x128xf32, #tpu.memory_space<vmem>>, vector<1x128xf32>
    %19 = vector.broadcast %18 : vector<1x128xf32> to vector<256x128xf32>
    %20 = arith.addf %17, %19 : vector<256x128xf32>
    %cst_15 = arith.constant dense<0xFF800000> : vector<256xf32>
    %21 = vector.multi_reduction <maximumf>, %20, %cst_15 [1] : vector<256x128xf32> to vector<256xf32>
    %22 = vector.shape_cast %21 : vector<256xf32> to vector<256x1xf32>
    %23 = vector.broadcast %22 : vector<256x1xf32> to vector<256x128xf32>
    %24 = arith.subf %20, %23 : vector<256x128xf32>
    %25 = math.exp %24 : vector<256x128xf32>
    %cst_16 = arith.constant dense<0.000000e+00> : vector<256xf32>
    %26 = vector.multi_reduction <add>, %25, %cst_16 [1] : vector<256x128xf32> to vector<256xf32>
    %27 = vector.shape_cast %26 : vector<256xf32> to vector<256x1xf32>
    %28 = tpu.reciprocal %27 : vector<256x1xf32> -> vector<256x1xf32>
    %29 = vector.broadcast %28 : vector<256x1xf32> to vector<256x128xf32>
    %30 = arith.mulf %25, %29 : vector<256x128xf32>
    %c0_17 = arith.constant 0 : index
    %c0_18 = arith.constant 0 : index
    %31 = vector.load %arg8[%c0_17, %c0_18] : memref<256x128xf32, #tpu.memory_space<vmem>>, vector<256x128xf32>
    tpu.vector_store %arg8[%c0_17, %c0_18], %30 {strides = array<i32>} : memref<256x128xf32, #tpu.memory_space<vmem>>, vector<256x128xf32>,
    return
  }
  func.func @transform_0(%arg0: i32) -> (i32, i32) {
    %c0_i32 = arith.constant 0 : i32
    %c0_i32_0 = arith.constant 0 : i32
    return %arg0, %c0_i32 : i32, i32
  }
  func.func @transform_1(%arg0: i32) -> (i32, i32) {
    %c0_i32 = arith.constant 0 : i32
    %c0_i32_0 = arith.constant 0 : i32
    %c0_i32_1 = arith.constant 0 : i32
    return %c0_i32, %c0_i32_0 : i32, i32
  }
  func.func @transform_2(%arg0: i32) -> (i32, i32) {
    %c0_i32 = arith.constant 0 : i32
    %c0_i32_0 = arith.constant 0 : i32
    %c0_i32_1 = arith.constant 0 : i32
    return %c0_i32, %c0_i32_0 : i32, i32
  }
  func.func @transform_3(%arg0: i32) -> (i32, i32) {
    %c0_i32 = arith.constant 0 : i32
    %c0_i32_0 = arith.constant 0 : i32
    %c0_i32_1 = arith.constant 0 : i32
    return %c0_i32, %c0_i32_0 : i32, i32
  }
  func.func @transform_4(%arg0: i32) -> (i32, i32) {
    %c0_i32 = arith.constant 0 : i32
    %c0_i32_0 = arith.constant 0 : i32
    %c0_i32_1 = arith.constant 0 : i32
    return %c0_i32, %c0_i32_0 : i32, i32
  }
  func.func @transform_5(%arg0: i32) -> (i32, i32) {
    %c0_i32 = arith.constant 0 : i32
    %c0_i32_0 = arith.constant 0 : i32
    %c0_i32_1 = arith.constant 0 : i32
    return %c0_i32, %c0_i32_0 : i32, i32
  }
  func.func @transform_6(%arg0: i32) -> (i32, i32) {
    %c0_i32 = arith.constant 0 : i32
    %c0_i32_0 = arith.constant 0 : i32
    %c0_i32_1 = arith.constant 0 : i32
    return %c0_i32, %c0_i32_0 : i32, i32
  }
  func.func @transform_7(%arg0: i32) -> (i32, i32) {
    %c0_i32 = arith.constant 0 : i32
    %c0_i32_0 = arith.constant 0 : i32
    return %arg0, %c0_i32 : i32, i32
  }
}

</mosaic_0001>

<bundles_post_ra>
// kernel: net_forward.1
= control target key start
LH: loop header
LB: loop body
LE: loop exit
PB: predicated region body
PF: predicated region fallthrough
CT: control target
= control target key end

     0   :  { %s8504_s24 = smov 0   ;;  %s10784_s0 = inlined_call_operand.vmem [shape: f32[512,784], index: 0, kind: input, shape index: {}]   ;;  %s10785_s1 = inlined_call_operand.vmem [shape: bf16[784,512], index: 1, kind: input, shape index: {}]   ;;  %s10786_s2 = inlined_call_operand.vmem [shape: f32[1,512], index: 2, kind: input, shape index: {}]   ;;  %s10787_s3 = inlined_call_operand.vmem [shape: bf16[512,384], index: 3, kind: input, shape index: {}]   ;;  %s10788_s4 = inlined_call_operand.vmem [shape: f32[1,384], index: 4, kind: input, shape index: {}]   ;;  %s10789_s5 = inlined_call_operand.vmem [shape: bf16[384,128], index: 5, kind: input, shape index: {}]   ;;  %s10790_s6 = inlined_call_operand.vmem [shape: f32[1,128], index: 6, kind: input, shape index: {}]   ;;  %s10791_s7 = inlined_call_operand.vmem [shape: f32[512,128], index: 7, kind: output, shape index: {}]  }
   0x1 LB: > { %s6011_s25 = sadd.s32 4294967295, %s8461_s24   ;;  %p6015_p0 = scmp.ge.s32.totalorder %s8461_s24, 1  ;;  %s8461_s24 = sphi %s8504_s24, %s17_s24  }
   0x2   : > { %p239_p1 = scmp.lt.s32.totalorder %s8461_s24, 3 }
   0x4   : > { %p240_p2 = pnand %p6015_p0, %p239_p1 }
   0x5   : > { %v7431_v0 = vld [vmem:[%s10785_s1 + $0x4] ss:$16 sps:$4 sm:$0xff] (!%p240_p2)   ;;  %s6016_s28 = sshll.u32 (!%p240_p2), %s6011_s25, 5  ;;  %v7433_v1 = vld [vmem:[%s10785_s1] ss:$16 sps:$4 sm:$0xff] (!%p240_p2)   ;;  %v8463_v2 = vmov (!%p240_p2), 0  }
   0x6   : > { %243 = sbr.rel (%p240_p2) target bundleno = 1708 (0x6ac), region = 48  ;;  %2560 = vmatprep.mubr.bf16.mxu1 (!%p240_p2), %v8463_v2  ;;  %p273_p3 = scmp.lt.s32.totalorder (!%p240_p2), %s6016_s28, 63  ;;  %1869 = vmatprep.subr.bf16.mxu0 (!%p240_p2), %v7431_v0  ;;  %v7434_v3 = vld [vmem:[%s10785_s1 + $0x24] ss:$16 sps:$4 sm:$0xff] (!%p240_p2)   ;;  %v7438_v5 = vld [vmem:[%s10785_s1 + $0x20] ss:$16 sps:$4 sm:$0xff] (!%p240_p2)  }
   0x7   : > { %1870 = vmatpush1.bf16.msra.mxu0 (!%p240_p2), %v7433_v1  ;;  %v7436_v4 = vld [vmem:[%s10785_s1 + $0x604] ss:$16 sps:$4 sm:$0xff] (!%p240_p2)   ;;  %v7439_v6 = vld [vmem:[%s10785_s1 + $0x600] ss:$16 sps:$4 sm:$0xff] (!%p240_p2)   ;;  %v7444_v8 = vld [vmem:[%s10785_s1 + $0xc] ss:$16 sps:$4 sm:$0xff] (!%p240_p2)  }
   0x8   : > { %1871 = vmatprep.subr.bf16.mxu0 (!%p240_p2), %v7434_v3  ;;  %v7440_v7 = vld [vmem:[%s10785_s1 + $0x44] ss:$16 sps:$4 sm:$0xff] (!%p240_p2)   ;;  %6779 = vmatprep.subr.bf16.mxu1 (!%p240_p2), %v7436_v4  ;;  %v7445_v9 = vld [vmem:[%s10785_s1 + $0x40] ss:$16 sps:$4 sm:$0xff] (!%p240_p2)   ;;  %vm1820_vm0 = vcmask (!%p240_p2), 130048  }
   0x9   : > { %6780 = vmatpush1.bf16.msra.mxu1 (!%p240_p2), %v7439_v6  ;;  %v7446_v10 = vld [vmem:[%s10785_s1 + $0x64] ss:$16 sps:$4 sm:$0xff] (!%p240_p2)   ;;  %v7442_v13 = vld [vmem:[%s10785_s1 + $0x8] ss:$16 sps:$4 sm:$0xff] (!%p240_p2)   ;;  %v7450_v15 = vld [vmem:[%s10785_s1 + $0x2c] ss:$16 sps:$4 sm:$0xff] (!%p240_p2)  }
   0xa   : > { %2641 = vmatprep.subr.bf16.mxu1 (!%p240_p2), %v7444_v8  ;;  %v7448_v16 = vld [vmem:[%s10785_s1 + $0x28] ss:$16 sps:$4 sm:$0xff] (!%p240_p2)   ;;  %v7451_v17 = vld [vmem:[%s10785_s1 + $0x60] ss:$16 sps:$4 sm:$0xff] (!%p240_p2)   ;;  %v7452_v18 = vld [vmem:[%s10785_s1 + $0x84] ss:$16 sps:$4 sm:$0xff] (!%p240_p2)  }
   0xb   : > { %1872 = vmatpush1.bf16.msra.mxu0 (!%p240_p2), %v7438_v5  ;;  %v7456_v21 = vld [vmem:[%s10785_s1 + $0x4c] ss:$16 sps:$4 sm:$0xff] (!%p240_p2)   ;;  %v7457_v22 = vld [vmem:[%s10785_s1 + $0x80] ss:$16 sps:$4 sm:$0xff] (!%p240_p2)   ;;  %v7458_v24 = vld [vmem:[%s10785_s1 + $0xa4] ss:$16 sps:$4 sm:$0xff] (!%p240_p2)  }
   0xc   : > { %1873 = vmatprep.subr.bf16.mxu0 (!%p240_p2), %v7440_v7  ;;  %v7454_v25 = vld [vmem:[%s10785_s1 + $0x48] ss:$16 sps:$4 sm:$0xff] (!%p240_p2)   ;;  %v7462_v26 = vld [vmem:[%s10785_s1 + $0x6c] ss:$16 sps:$4 sm:$0xff] (!%p240_p2)   ;;  %v7463_v27 = vld [vmem:[%s10785_s1 + $0xa0] ss:$16 sps:$4 sm:$0xff] (!%p240_p2)  }
   0xd   : > { %s10793_s28 = smov (!%p273_p3, %s6016_s28), 63  ;;  %v7464_v28 = vld [vmem:[%s10785_s1 + $0xc4] ss:$16 sps:$4 sm:$0xff]   ;;  %v7460_v29 = vld [vmem:[%s10785_s1 + $0x68] ss:$16 sps:$4 sm:$0xff]  }
   0xe   : > { %s7421_s18 = smul.u32 56, %s10793_s28  ;;  %v7468_v32 = vld [vmem:[%s10785_s1 + $0x8c] ss:$16 sps:$4 sm:$0xff]   ;;  %v7469_v33 = vld [vmem:[%s10785_s1 + $0xc0] ss:$16 sps:$4 sm:$0xff]   ;;  %s6019_s19 = sshll.u32 %s10793_s28, 3 }
   0xf   : > { %1874 = vmatpush1.bf16.msra.mxu0 %v7445_v9  ;;  %v7470_v35 = vld [vmem:[%s10785_s1 + $0xe4] ss:$16 sps:$4 sm:$0xff]   ;;  %v7466_v36 = vld [vmem:[%s10785_s1 + $0x88] ss:$16 sps:$4 sm:$0xff]   ;;  %v7474_v37 = vld [vmem:[%s10785_s1 + $0xac] ss:$16 sps:$4 sm:$0xff]   ;;  %s10715_s21 = scalar_lea.vmem %s10791_s7, %s6019_s19 }
  0x10   : > { %s8546_s26 = scalar_lea.vmem %s10784_s0, %s7421_s18  ;;  %1875 = vmatprep.subr.bf16.mxu0 %v7446_v10  ;;  %v7472_v38 = vld [vmem:[%s10785_s1 + $0xa8] ss:$16 sps:$4 sm:$0xff]   ;;  %v7475_v39 = vld [vmem:[%s10785_s1 + $0xe0] ss:$16 sps:$4 sm:$0xff]   ;;  %v7476_v40 = vld [vmem:[%s10785_s1 + $0x104] ss:$16 sps:$4 sm:$0xff]  }
  0x11   : > { %v404_v11 = vld [vmem:[%s8546_s26 + $0x3b0] sm:$0xff]  ;;  %v411_v12 = vld [vmem:[%s8546_s26 + $0x3e8] sm:$0xff]  ;;  %v418_v19 = vld [vmem:[%s8546_s26 + $0x420] sm:$0xff] }
  0x12   : > { %v8556_v14 = vpack.c.bf16 %v411_v12, %v404_v11  ;;  %v425_v20 = vld [vmem:[%s8546_s26 + $0x458] sm:$0xff]  ;;  %v432_v30 = vld [vmem:[%s8546_s26 + $0x490] sm:$0xff]  ;;  %v439_v31 = vld [vmem:[%s8546_s26 + $0x4c8] sm:$0xff] }
  0x13   : > { %1876 = vmatpush1.bf16.msra.mxu0 %v7451_v17  ;;  %v8581_v23 = vpack.c.bf16 %v425_v20, %v418_v19  ;;  %v8612_v34 = vpack.c.bf16 %v439_v31, %v432_v30  ;;  %v446_v41 = vld [vmem:[%s8546_s26 + $0x500] sm:$0xff]  ;;  %v453_v42 = vld [vmem:[%s8546_s26 + $0x538] sm:$0xff]  ;;  %v460_v52 = vld [vmem:[%s8546_s26 + $0x570] sm:$0xff] }
  0x14   : > { %6224 = vmatmul.mubr.msk.bf16.vlgmr.msra.gmra.mrb[0].mxu1 %vm1820_vm0, %v8556_v14  ;;  %1877 = vmatprep.subr.bf16.mxu0 %v7452_v18  ;;  %v7480_v43 = vld [vmem:[%s10785_s1 + $0xcc] ss:$16 sps:$4 sm:$0xff]   ;;  %v7481_v44 = vld [vmem:[%s10785_s1 + $0x100] ss:$16 sps:$4 sm:$0xff]   ;;  %v8643_v45 = vpack.c.bf16 %v453_v42, %v446_v41  ;;  %v7482_v46 = vld [vmem:[%s10785_s1 + $0x124] ss:$16 sps:$4 sm:$0xff]  }
  0x15   : > { %2642 = vmatpush1.bf16.msra.mxu1 %v7442_v13  ;;  %2570 = vmatprep.mubr.bf16.mxu1 %v8463_v2  ;;  %v7478_v47 = vld [vmem:[%s10785_s1 + $0xc8] ss:$16 sps:$4 sm:$0xff]   ;;  %v7486_v48 = vld [vmem:[%s10785_s1 + $0xec] ss:$16 sps:$4 sm:$0xff]   ;;  %v7487_v50 = vld [vmem:[%s10785_s1 + $0x120] ss:$16 sps:$4 sm:$0xff]  }
  0x16   : > { %2643 = vmatprep.subr.bf16.mxu1 %v7450_v15  ;;  %v7484_v49 = vld [vmem:[%s10785_s1 + $0xe8] ss:$16 sps:$4 sm:$0xff]   ;;  %v7488_v51 = vld [vmem:[%s10785_s1 + $0x144] ss:$16 sps:$4 sm:$0xff]   ;;  %v7492_v54 = vld [vmem:[%s10785_s1 + $0x10c] ss:$16 sps:$4 sm:$0xff]  }
  0x17   : > { %1878 = vmatpush1.bf16.msra.mxu0 %v7457_v22  ;;  %v467_v53 = vld [vmem:[%s8546_s26 + $0x5a8] sm:$0xff]  ;;  %v7493_v55 = vld [vmem:[%s10785_s1 + $0x140] ss:$16 sps:$4 sm:$0xff]   ;;  %v7494_v57 = vld [vmem:[%s10785_s1 + $0x164] ss:$16 sps:$4 sm:$0xff]  }
  0x18   : > { %1879 = vmatprep.subr.bf16.mxu0 %v7458_v24  ;;  %v8674_v56 = vpack.c.bf16 %v467_v53, %v460_v52  ;;  %v7490_v58 = vld [vmem:[%s10785_s1 + $0x108] ss:$16 sps:$4 sm:$0xff]   ;;  %v7498_v59 = vld [vmem:[%s10785_s1 + $0x12c] ss:$16 sps:$4 sm:$0xff]   ;;  %v7499_v60 = vld [vmem:[%s10785_s1 + $0x160] ss:$16 sps:$4 sm:$0xff]  }
  0x19   : > { %2644 = vmatpush1.bf16.msra.mxu1 %v7448_v16  ;;  %v7500_v61 = vld [vmem:[%s10785_s1 + $0x184] ss:$16 sps:$4 sm:$0xff]   ;;  %v7496_v62 = vld [vmem:[%s10785_s1 + $0x128] ss:$16 sps:$4 sm:$0xff]   ;;  %v7504_v1 = vld [vmem:[%s10785_s1 + $0x14c] ss:$16 sps:$4 sm:$0xff]  }
  0x1a   : > { %2645 = vmatprep.subr.bf16.mxu1 %v7456_v21  ;;  %v474_v63 = vld [vmem:[%s8546_s26 + $0x5e0] sm:$0xff]  ;;  %v481_v0 = vld [vmem:[%s8546_s26 + $0x618] sm:$0xff]  ;;  %v287_v3 = vld [vmem:[%s8546_s26 + $0x8] sm:$0xff] }
  0x1b   : > { %1880 = vmatpush1.bf16.msra.mxu0 %v7463_v27  ;;  %v294_v4 = vld [vmem:[%s8546_s26 + $0x40] sm:$0xff]  ;;  %v8709_v7 = vpack.c.bf16 %v481_v0, %v474_v63  ;;  %v7502_v9 = vld [vmem:[%s10785_s1 + $0x148] ss:$16 sps:$4 sm:$0xff]   ;;  %v7510_v10 = vld [vmem:[%s10785_s1 + $0x16c] ss:$16 sps:$4 sm:$0xff]  }
  0x1c   : > { %6225 = vmatmul.mubr.msk.bf16.gmra.mrb[4].mxu1 %vm1820_vm0, %v8581_v23  ;;  %1881 = vmatprep.subr.bf16.mxu0 %v7464_v28  ;;  %v7505_v5 = vld [vmem:[%s10785_s1 + $0x180] ss:$16 sps:$4 sm:$0xff]   ;;  %v8707_v6 = vpack.c.bf16 %v294_v4, %v287_v3  ;;  %v7506_v8 = vld [vmem:[%s10785_s1 + $0x1a4] ss:$16 sps:$4 sm:$0xff]   ;;  %v7508_v12 = vld [vmem:[%s10785_s1 + $0x168] ss:$16 sps:$4 sm:$0xff]  }
  0x1d   : > { %2646 = vmatpush1.bf16.msra.mxu1 %v7454_v25  ;;  %2580 = vmatprep.mubr.bf16.mxu1 %v8463_v2  ;;  %v7511_v11 = vld [vmem:[%s10785_s1 + $0x1a0] ss:$16 sps:$4 sm:$0xff]   ;;  %v7512_v13 = vld [vmem:[%s10785_s1 + $0x1c4] ss:$16 sps:$4 sm:$0xff]   ;;  %v495_v16 = vld [vmem:[%s8546_s26 + $0x688] sm:$0xff] }
  0x1e   : > { %2647 = vmatprep.subr.bf16.mxu1 %v7462_v26  ;;  %1901 = vmatprep.mubr.bf16.mxu0 %v8707_v6  ;;  %v488_v15 = vld [vmem:[%s8546_s26 + $0x650] sm:$0xff]  ;;  %v7516_v17 = vld [vmem:[%s10785_s1 + $0x18c] ss:$16 sps:$4 sm:$0xff]   ;;  %v7514_v21 = vld [vmem:[%s10785_s1 + $0x188] ss:$16 sps:$4 sm:$0xff]  }
  0x1f   : > { %1882 = vmatpush1.bf16.msra.mxu0 %v7469_v33  ;;  %v7517_v18 = vld [vmem:[%s10785_s1 + $0x1c0] ss:$16 sps:$4 sm:$0xff]   ;;  %v8741_v19 = vpack.c.bf16 %v495_v16, %v488_v15  ;;  %v7518_v20 = vld [vmem:[%s10785_s1 + $0x1e4] ss:$16 sps:$4 sm:$0xff]   ;;  %v7522_v22 = vld [vmem:[%s10785_s1 + $0x1ac] ss:$16 sps:$4 sm:$0xff]  }
  0x20   : > { %1883 = vmatprep.subr.bf16.mxu0 %v7470_v35  ;;  %v7523_v24 = vld [vmem:[%s10785_s1 + $0x1e0] ss:$16 sps:$4 sm:$0xff]   ;;  %v7520_v26 = vld [vmem:[%s10785_s1 + $0x1a8] ss:$16 sps:$4 sm:$0xff]   ;;  %v7526_v28 = vld [vmem:[%s10785_s1 + $0x204] ss:$16 sps:$4 sm:$0xff]  }
  0x21   : > { %2648 = vmatpush1.bf16.msra.mxu1 %v7460_v29  ;;  %v286_v25 = vld [vmem:[%s8546_s26] sm:$0xff]  ;;  %v293_v27 = vld [vmem:[%s8546_s26 + $0x38] sm:$0xff]  ;;  %v308_v31 = vld [vmem:[%s8546_s26 + $0xb0] sm:$0xff] }
  0x22   : > { %2649 = vmatprep.subr.bf16.mxu1 %v7468_v32  ;;  %v502_v29 = vld [vmem:[%s8546_s26 + $0x6c0] sm:$0xff]  ;;  %v301_v30 = vld [vmem:[%s8546_s26 + $0x78] sm:$0xff]  ;;  %v510_v33 = vpack.c.bf16 %v293_v27, %v286_v25  ;;  %v300_v42 = vld [vmem:[%s8546_s26 + $0x70] sm:$0xff] }
  0x23   : > { %1884 = vmatpush1.bf16.msra.mxu0 %v7475_v39  ;;  %v509_v32 = vld [vmem:[%s8546_s26 + $0x6f8] sm:$0xff]  ;;  %v7535_v39 = vld [vmem:[%s10785_s1 + $0x224] ss:$16 sps:$4 sm:$0xff]   ;;  %v7536_v52 = vld [vmem:[%s10785_s1 + $0x240] ss:$16 sps:$4 sm:$0xff]  }
  0x24   : > { %6226 = vmatmul.mubr.msk.bf16.gmra.mrb[8].mxu1 %vm1820_vm0, %v8612_v34  ;;  %1885 = vmatprep.subr.bf16.mxu0 %v7476_v40  ;;  %v7529_v35 = vld [vmem:[%s10785_s1 + $0x1cc] ss:$16 sps:$4 sm:$0xff]   ;;  %v7527_v40 = vld [vmem:[%s10785_s1 + $0x1c8] ss:$16 sps:$4 sm:$0xff]   ;;  %v7541_v53 = vld [vmem:[%s10785_s1 + $0x264] ss:$16 sps:$4 sm:$0xff]  }
  0x25   : > { %2650 = vmatpush1.bf16.msra.mxu1 %v7466_v36  ;;  %2590 = vmatprep.mubr.bf16.mxu1 %v8463_v2  ;;  %v7524_v36 = vld [vmem:[%s10785_s1 + $0x200] ss:$16 sps:$4 sm:$0xff]   ;;  %v7532_v41 = vld [vmem:[%s10785_s1 + $0x1ec] ss:$16 sps:$4 sm:$0xff]   ;;  %v7547_v4 = vld [vmem:[%s10785_s1 + $0x2a4] ss:$16 sps:$4 sm:$0xff]  }
  0x26   : > { %2651 = vmatprep.subr.bf16.mxu1 %v7474_v37  ;;  %v518_v37 = vpack.c.bf16 %v308_v31, %v301_v30  ;;  %v7565_v0 = vld [vmem:[%s10785_s1 + $0x22c] ss:$16 sps:$4 sm:$0xff]   ;;  %v7542_v3 = vld [vmem:[%s10785_s1 + $0x280] ss:$16 sps:$4 sm:$0xff]   ;;  %v7569_v15 = vld [vmem:[%s10785_s1 + $0x248] ss:$16 sps:$4 sm:$0xff]  }
  0x27   : > { %1886 = vmatpush1.bf16.msra.mxu0 %v7481_v44  ;;  %v7533_v44 = vld [vmem:[%s10785_s1 + $0x220] ss:$16 sps:$4 sm:$0xff]   ;;  %v7572_v25 = vld [vmem:[%s10785_s1 + $0x268] ss:$16 sps:$4 sm:$0xff]   ;;  %v7580_v27 = vld [vmem:[%s10785_s1 + $0x28c] ss:$16 sps:$4 sm:$0xff]  }
  0x28   : > { %1887 = vmatprep.subr.bf16.mxu0 %v7482_v46  ;;  %v315_v46 = vld [vmem:[%s8546_s26 + $0xe8] sm:$0xff]  ;;  %v7556_v30 = vld [vmem:[%s10785_s1 + $0x304] ss:$16 sps:$4 sm:$0xff]  }
  0x29   : > { %2652 = vmatpush1.bf16.msra.mxu1 %v7472_v38  ;;  %v8776_v38 = vpack.c.bf16 %v509_v32, %v502_v29  ;;  %v7551_v29 = vld [vmem:[%s10785_s1 + $0x2e0] ss:$16 sps:$4 sm:$0xff]   ;;  %v7578_v31 = vld [vmem:[%s10785_s1 + $0x288] ss:$16 sps:$4 sm:$0xff]  }
  0x2a   : > { %2653 = vmatprep.subr.bf16.mxu1 %v7480_v43  ;;  %v307_v43 = vld [vmem:[%s8546_s26 + $0xa8] sm:$0xff] }
  0x2b   : > { %1888 = vmatpush1.bf16.msra.mxu0 %v7487_v50  ;;  %v517_v50 = vpack.c.bf16 %v307_v43, %v300_v42  ;;  %v363_v42 = vld [vmem:[%s8546_s26 + $0x268] sm:$0xff]  ;;  %v7557_v43 = vld [vmem:[%s10785_s1 + $0x320] ss:$16 sps:$4 sm:$0xff]  }
  0x2c   : > { %6227 = vmatmul.mubr.msk.bf16.gmra.mrb[12].mxu1 %vm1820_vm0, %v8643_v45  ;;  %1889 = vmatprep.subr.bf16.mxu0 %v7488_v51 }
  0x2d   : > { %2654 = vmatpush1.bf16.msra.mxu1 %v7478_v47  ;;  %2600 = vmatprep.mubr.bf16.mxu1 %v8463_v2  ;;  %v322_v47 = vld [vmem:[%s8546_s26 + $0x120] sm:$0xff] }
  0x2e   : > { %2655 = vmatprep.subr.bf16.mxu1 %v7486_v48  ;;  %v7538_v48 = vld [vmem:[%s10785_s1 + $0x244] ss:$16 sps:$4 sm:$0xff]   ;;  %v525_v51 = vpack.c.bf16 %v322_v47, %v315_v46 }
  0x2f   : > { %1890 = vmatpush1.bf16.msra.mxu0 %v7493_v55  ;;  %v321_v55 = vld [vmem:[%s8546_s26 + $0x118] sm:$0xff]  ;;  %v378_v46 = vld [vmem:[%s8546_s26 + $0x2e0] sm:$0xff] }
  0x30   : > { %1891 = vmatprep.subr.bf16.mxu0 %v7494_v57  ;;  %v329_v57 = vld [vmem:[%s8546_s26 + $0x158] sm:$0xff]  ;;  %v7568_v47 = vld [vmem:[%s10785_s1 + $0x344] ss:$16 sps:$4 sm:$0xff]  }
  0x31   : > { %2656 = vmatpush1.bf16.msra.mxu1 %v7484_v49  ;;  %v7530_v49 = vld [vmem:[%s10785_s1 + $0x1e8] ss:$16 sps:$4 sm:$0xff]  }
  0x32   : > { %2657 = vmatprep.subr.bf16.mxu1 %v7492_v54  ;;  %v314_v54 = vld [vmem:[%s8546_s26 + $0xe0] sm:$0xff] }
  0x33   : > { %1892 = vmatpush1.bf16.msra.mxu0 %v7499_v60  ;;  %v7544_v60 = vld [vmem:[%s10785_s1 + $0x284] ss:$16 sps:$4 sm:$0xff]   ;;  %v524_v63 = vpack.c.bf16 %v321_v55, %v314_v54  ;;  %v377_v55 = vld [vmem:[%s8546_s26 + $0x2d8] sm:$0xff] }
  0x34   : > { %6228 = vmatmul.mubr.msk.bf16.gmra.mrb[16].mxu1 %vm1820_vm0, %v8674_v56  ;;  %1893 = vmatprep.subr.bf16.mxu0 %v7500_v61  ;;  %v7560_v61 = vld [vmem:[%s10785_s1 + $0x208] ss:$16 sps:$4 sm:$0xff]   ;;  %v370_v54 = vld [vmem:[%s8546_s26 + $0x2a0] sm:$0xff] }
  0x35   : > { %2658 = vmatpush1.bf16.msra.mxu1 %v7490_v58  ;;  %2610 = vmatprep.mubr.bf16.mxu1 %v8463_v2  ;;  %v336_v58 = vld [vmem:[%s8546_s26 + $0x190] sm:$0xff] }
  0x36   : > { %2659 = vmatprep.subr.bf16.mxu1 %v7498_v59  ;;  %v7539_v59 = vld [vmem:[%s10785_s1 + $0x260] ss:$16 sps:$4 sm:$0xff]  }
  0x37   : > { %1894 = vmatpush1.bf16.msra.mxu0 %v7505_v5  ;;  %v7563_v5 = vld [vmem:[%s10785_s1 + $0x228] ss:$16 sps:$4 sm:$0xff]  }
  0x38   : > { %1895 = vmatprep.subr.bf16.mxu0 %v7506_v8  ;;  %v7571_v8 = vld [vmem:[%s10785_s1 + $0x24c] ss:$16 sps:$4 sm:$0xff]  }
  0x39   : > { %2660 = vmatpush1.bf16.msra.mxu1 %v7496_v62  ;;  %v7562_v62 = vld [vmem:[%s10785_s1 + $0x20c] ss:$16 sps:$4 sm:$0xff]  }
  0x3a   : > { %2661 = vmatprep.subr.bf16.mxu1 %v7504_v1  ;;  %v532_v1 = vpack.c.bf16 %v336_v58, %v329_v57  ;;  %v7590_v57 = vld [vmem:[%s10785_s1 + $0x2e8] ss:$16 sps:$4 sm:$0xff]  }
  0x3b   : > { %1896 = vmatpush1.bf16.msra.mxu0 %v7511_v11  ;;  %v343_v11 = vld [vmem:[%s8546_s26 + $0x1c8] sm:$0xff]  ;;  %v385_v58 = vld [vmem:[%s8546_s26 + $0x318] sm:$0xff] }
  0x3c   : > { %6229 = vmatmul.mubr.msk.bf16.gmra.mrb[20].mxu1 %vm1820_vm0, %v8709_v7  ;;  %1897 = vmatprep.subr.bf16.mxu0 %v7512_v13  ;;  %v7550_v13 = vld [vmem:[%s10785_s1 + $0x2c4] ss:$16 sps:$4 sm:$0xff]  }
  0x3d   : > { %2662 = vmatpush1.bf16.msra.mxu1 %v7502_v9  ;;  %2620 = vmatprep.mubr.bf16.mxu1 %v8463_v2  ;;  %v335_v9 = vld [vmem:[%s8546_s26 + $0x188] sm:$0xff] }
  0x3e   : > { %2663 = vmatprep.subr.bf16.mxu1 %v7510_v10  ;;  %v7545_v10 = vld [vmem:[%s10785_s1 + $0x2a0] ss:$16 sps:$4 sm:$0xff]  }
  0x3f   : > { %1898 = vmatpush1.bf16.msra.mxu0 %v7517_v18 }
  0x40   : > { %1899 = vmatprep.subr.bf16.mxu0 %v7518_v20  ;;  %v7548_v20 = vld [vmem:[%s10785_s1 + $0x2c0] ss:$16 sps:$4 sm:$0xff]  }
  0x41   : > { %2664 = vmatpush1.bf16.msra.mxu1 %v7508_v12  ;;  %v350_v12 = vld [vmem:[%s8546_s26 + $0x200] sm:$0xff] }
  0x42   : > { %2665 = vmatprep.subr.bf16.mxu1 %v7516_v17  ;;  %v7574_v17 = vld [vmem:[%s10785_s1 + $0x26c] ss:$16 sps:$4 sm:$0xff]   ;;  %v539_v18 = vpack.c.bf16 %v350_v12, %v343_v11  ;;  %v7593_v11 = vld [vmem:[%s10785_s1 + $0x3a0] ss:$16 sps:$4 sm:$0xff]  }
  0x43   : > { %1900 = vmatpush1.bf16.msra.mxu0 %v7523_v24  ;;  %v349_v24 = vld [vmem:[%s8546_s26 + $0x1f8] sm:$0xff]  ;;  %v399_v12 = vld [vmem:[%s8546_s26 + $0x388] sm:$0xff] }
  0x44   : > { %6230 = vmatmul.mubr.msk.bf16.gmra.mrb[24].mxu1 %vm1820_vm0, %v8741_v19  ;;  %2062 = vmatprep.subr.bf16.mxu0 %v7526_v28  ;;  %v364_v28 = vld [vmem:[%s8546_s26 + $0x270] sm:$0xff] }
  0x45   : > { %2666 = vmatpush1.bf16.msra.mxu1 %v7514_v21  ;;  %2630 = vmatprep.mubr.bf16.mxu1 %v8463_v2  ;;  %v7553_v21 = vld [vmem:[%s10785_s1 + $0x2e4] ss:$16 sps:$4 sm:$0xff]  }
  0x46   : > { %2667 = vmatprep.subr.bf16.mxu1 %v7522_v22  ;;  %1902 = vmatmul.mubr.bf16.vlgmr.msra.gmra.mrb[0].mxu0 %v510_v33  ;;  %v342_v22 = vld [vmem:[%s8546_s26 + $0x1c0] sm:$0xff] }
  0x47   : > { %2063 = vmatpush1.bf16.msra.mxu0 %v7524_v36  ;;  %1911 = vmatprep.mubr.bf16.mxu0 %v518_v37  ;;  %v538_v32 = vpack.c.bf16 %v349_v24, %v342_v22  ;;  %v7554_v36 = vld [vmem:[%s10785_s1 + $0x300] ss:$16 sps:$4 sm:$0xff]   ;;  %v7613_v22 = vld [vmem:[%s10785_s1 + $0x3e4] ss:$16 sps:$4 sm:$0xff]   ;;  %v7608_v24 = vld [vmem:[%s10785_s1 + $0x368] ss:$16 sps:$4 sm:$0xff]  }
  0x48   : > { %2064 = vmatprep.subr.bf16.mxu0 %v7535_v39  ;;  %v7581_v39 = vld [vmem:[%s10785_s1 + $0x2a8] ss:$16 sps:$4 sm:$0xff]  }
  0x49   : > { %2668 = vmatpush1.bf16.msra.mxu1 %v7520_v26  ;;  %v357_v26 = vld [vmem:[%s8546_s26 + $0x238] sm:$0xff] }
  0x4a   : > { %2669 = vmatprep.subr.bf16.mxu1 %v7529_v35  ;;  %v546_v35 = vpack.c.bf16 %v364_v28, %v357_v26  ;;  %v7616_v26 = vld [vmem:[%s10785_s1 + $0x38c] ss:$16 sps:$4 sm:$0xff]   ;;  %v7611_v28 = vld [vmem:[%s10785_s1 + $0x3e0] ss:$16 sps:$4 sm:$0xff]  }
  0x4b   : > { %2065 = vmatpush1.bf16.msra.mxu0 %v7533_v44  ;;  %v371_v44 = vld [vmem:[%s8546_s26 + $0x2a8] sm:$0xff] }
  0x4c   : > { %6231 = vmatmul.mubr.msk.bf16.gmra.mrb[28].mxu1 %vm1820_vm0, %v8776_v38  ;;  %2066 = vmatprep.subr.bf16.mxu0 %v7538_v48  ;;  %v7587_v48 = vld [vmem:[%s10785_s1 + $0x2c8] ss:$16 sps:$4 sm:$0xff]  }
  0x4d   : > { %2670 = vmatpush1.bf16.msra.mxu1 %v7527_v40  ;;  %2673 = vmatprep.mubr.bf16.mxu1 %v8707_v6  ;;  %v328_v6 = vld [vmem:[%s8546_s26 + $0x150] sm:$0xff] }
  0x4e   : > { %2671 = vmatprep.subr.bf16.mxu1 %v7532_v41  ;;  %1912 = vmatmul.mubr.bf16.gmra.mrb[4].mxu0 %v517_v50  ;;  %v531_v16 = vpack.c.bf16 %v335_v9, %v328_v6  ;;  %v356_v40 = vld [vmem:[%s8546_s26 + $0x230] sm:$0xff]  ;;  %v7589_v41 = vld [vmem:[%s10785_s1 + $0x2cc] ss:$16 sps:$4 sm:$0xff]   ;;  %v7599_v6 = vld [vmem:[%s10785_s1 + $0x328] ss:$16 sps:$4 sm:$0xff]  }
  0x4f   : > { %1921 = vmatprep.mubr.bf16.mxu0 %v525_v51  ;;  %2067 = vmatpush1.bf16.msra.mxu0 %v7536_v52  ;;  %v7566_v52 = vld [vmem:[%s10785_s1 + $0x340] ss:$16 sps:$4 sm:$0xff]   ;;  %v7607_v9 = vld [vmem:[%s10785_s1 + $0x34c] ss:$16 sps:$4 sm:$0xff]  }
  0x50   : > { %2068 = vmatprep.subr.bf16.mxu0 %v7541_v53  ;;  %v7577_v53 = vld [vmem:[%s10785_s1 + $0x364] ss:$16 sps:$4 sm:$0xff]  }
  0x51   : > { %2672 = vmatpush1.bf16.msra.mxu1 %v7530_v49  ;;  %v545_v49 = vpack.c.bf16 %v363_v42, %v356_v40  ;;  %v412_v40 = vld [vmem:[%s8546_s26 + $0x3f0] sm:$0xff]  ;;  %v427_v42 = vld [vmem:[%s8546_s26 + $0x468] sm:$0xff] }
  0x52   : > { %2834 = vmatprep.subr.bf16.mxu1 %v7562_v62  ;;  %v7586_v62 = vld [vmem:[%s10785_s1 + $0x384] ss:$16 sps:$4 sm:$0xff]  }
  0x53   : > { %2069 = vmatpush1.bf16.msra.mxu0 %v7539_v59  ;;  %v7598_v59 = vld [vmem:[%s10785_s1 + $0x30c] ss:$16 sps:$4 sm:$0xff]  }
  0x54   : > { %2674 = vmatmul.mubr.bf16.vlgmr.msra.gmra.mrb[32].mxu1 %v510_v33  ;;  %2070 = vmatprep.subr.bf16.mxu0 %v7544_v60  ;;  %v7583_v33 = vld [vmem:[%s10785_s1 + $0x2ac] ss:$16 sps:$4 sm:$0xff]   ;;  %v392_v60 = vld [vmem:[%s8546_s26 + $0x350] sm:$0xff] }
  0x55   : > { %2683 = vmatprep.mubr.bf16.mxu1 %v518_v37  ;;  %2835 = vmatpush1.bf16.msra.mxu1 %v7560_v61  ;;  %v7559_v37 = vld [vmem:[%s10785_s1 + $0x324] ss:$16 sps:$4 sm:$0xff]   ;;  %v7575_v61 = vld [vmem:[%s10785_s1 + $0x360] ss:$16 sps:$4 sm:$0xff]  }
  0x56   : > { %2836 = vmatprep.subr.bf16.mxu1 %v7565_v0  ;;  %1922 = vmatmul.mubr.bf16.gmra.mrb[8].mxu0 %v524_v63  ;;  %v552_v0 = vpack.c.bf16 %v377_v55, %v370_v54  ;;  %v7658_v54 = vld [vmem:[%s10785_s1 + $0x40c] ss:$16 sps:$4 sm:$0xff]  }
  0x57   : > { %1931 = vmatprep.mubr.bf16.mxu0 %v532_v1  ;;  %2071 = vmatpush1.bf16.msra.mxu0 %v7542_v3  ;;  %v560_v3 = vpack.c.bf16 %v392_v60, %v385_v58  ;;  %v440_v58 = vld [vmem:[%s8546_s26 + $0x4d0] sm:$0xff]  ;;  %v455_v60 = vld [vmem:[%s8546_s26 + $0x548] sm:$0xff] }
  0x58   : > { %2072 = vmatprep.subr.bf16.mxu0 %v7547_v4  ;;  %v7584_v4 = vld [vmem:[%s10785_s1 + $0x380] ss:$16 sps:$4 sm:$0xff]  }
  0x59   : > { %2837 = vmatpush1.bf16.msra.mxu1 %v7563_v5  ;;  %v7595_v5 = vld [vmem:[%s10785_s1 + $0x3a4] ss:$16 sps:$4 sm:$0xff]  }
  0x5a   : > { %2838 = vmatprep.subr.bf16.mxu1 %v7571_v8  ;;  %v384_v8 = vld [vmem:[%s8546_s26 + $0x310] sm:$0xff] }
  0x5b   : > { %2073 = vmatpush1.bf16.msra.mxu0 %v7545_v10  ;;  %v391_v10 = vld [vmem:[%s8546_s26 + $0x348] sm:$0xff] }
  0x5c   : > { %2684 = vmatmul.mubr.bf16.gmra.mrb[36].mxu1 %v517_v50  ;;  %2074 = vmatprep.subr.bf16.mxu0 %v7550_v13  ;;  %v7592_v50 = vld [vmem:[%s10785_s1 + $0x2ec] ss:$16 sps:$4 sm:$0xff]   ;;  %v406_v13 = vld [vmem:[%s8546_s26 + $0x3c0] sm:$0xff] }
  0x5d   : > { %2693 = vmatprep.mubr.bf16.mxu1 %v525_v51  ;;  %2839 = vmatpush1.bf16.msra.mxu1 %v7569_v15  ;;  %v553_v51 = vpack.c.bf16 %v378_v46, %v371_v44  ;;  %v7604_v15 = vld [vmem:[%s10785_s1 + $0x3c4] ss:$16 sps:$4 sm:$0xff]   ;;  %v7623_v44 = vld [vmem:[%s10785_s1 + $0x3c8] ss:$16 sps:$4 sm:$0xff]  }
  0x5e   : > { %1932 = vmatmul.mubr.bf16.gmra.mrb[12].mxu0 %v531_v16  ;;  %2840 = vmatprep.subr.bf16.mxu1 %v7574_v17  ;;  %v559_v17 = vpack.c.bf16 %v391_v10, %v384_v8  ;;  %v468_v8 = vld [vmem:[%s8546_s26 + $0x5b0] sm:$0xff]  ;;  %v483_v10 = vld [vmem:[%s8546_s26 + $0x628] sm:$0xff] }
  0x5f   : > { %1941 = vmatprep.mubr.bf16.mxu0 %v539_v18  ;;  %2075 = vmatpush1.bf16.msra.mxu0 %v7548_v20  ;;  %v567_v20 = vpack.c.bf16 %v406_v13, %v399_v12 }
  0x60   : > { %2076 = vmatprep.subr.bf16.mxu0 %v7553_v21  ;;  %v7602_v21 = vld [vmem:[%s10785_s1 + $0x3c0] ss:$16 sps:$4 sm:$0xff]  }
  0x61   : > { %2841 = vmatpush1.bf16.msra.mxu1 %v7572_v25  ;;  %v398_v25 = vld [vmem:[%s8546_s26 + $0x380] sm:$0xff] }
  0x62   : > { %2842 = vmatprep.subr.bf16.mxu1 %v7580_v27  ;;  %v405_v27 = vld [vmem:[%s8546_s26 + $0x3b8] sm:$0xff] }
  0x63   : > { %2077 = vmatpush1.bf16.msra.mxu0 %v7551_v29  ;;  %v413_v29 = vld [vmem:[%s8546_s26 + $0x3f8] sm:$0xff] }
  0x64   : > { %2694 = vmatmul.mubr.bf16.gmra.mrb[40].mxu1 %v524_v63  ;;  %2078 = vmatprep.subr.bf16.mxu0 %v7556_v30  ;;  %v7596_v63 = vld [vmem:[%s10785_s1 + $0x308] ss:$16 sps:$4 sm:$0xff]   ;;  %v420_v30 = vld [vmem:[%s8546_s26 + $0x430] sm:$0xff] }
  0x65   : > { %2703 = vmatprep.mubr.bf16.mxu1 %v532_v1  ;;  %2843 = vmatpush1.bf16.msra.mxu1 %v7578_v31  ;;  %v7601_v1 = vld [vmem:[%s10785_s1 + $0x32c] ss:$16 sps:$4 sm:$0xff]   ;;  %v7622_v31 = vld [vmem:[%s10785_s1 + $0x404] ss:$16 sps:$4 sm:$0xff]  }
  0x66   : > { %1942 = vmatmul.mubr.bf16.gmra.mrb[16].mxu0 %v538_v32  ;;  %2844 = vmatprep.subr.bf16.mxu1 %v7583_v33  ;;  %v566_v33 = vpack.c.bf16 %v405_v27, %v398_v25  ;;  %v289_v25 = vld [vmem:[%s8546_s26 + $0x18] sm:$0xff] }
  0x67   : > { %1951 = vmatprep.mubr.bf16.mxu0 %v546_v35  ;;  %2079 = vmatpush1.bf16.msra.mxu0 %v7554_v36  ;;  %v574_v36 = vpack.c.bf16 %v420_v30, %v413_v29  ;;  %v288_v29 = vld [vmem:[%s8546_s26 + $0x10] sm:$0xff]  ;;  %v295_v30 = vld [vmem:[%s8546_s26 + $0x48] sm:$0xff] }
  0x68   : > { %2080 = vmatprep.subr.bf16.mxu0 %v7559_v37  ;;  %v7617_v37 = vld [vmem:[%s10785_s1 + $0x3a8] ss:$16 sps:$4 sm:$0xff]  }
  0x69   : > { %2845 = vmatpush1.bf16.msra.mxu1 %v7581_v39  ;;  %v7625_v39 = vld [vmem:[%s10785_s1 + $0x3cc] ss:$16 sps:$4 sm:$0xff]  }
  0x6a   : > { %2846 = vmatprep.subr.bf16.mxu1 %v7589_v41  ;;  %v419_v41 = vld [vmem:[%s8546_s26 + $0x428] sm:$0xff] }
  0x6b   : > { %2081 = vmatpush1.bf16.msra.mxu0 %v7557_v43  ;;  %v434_v43 = vld [vmem:[%s8546_s26 + $0x4a0] sm:$0xff]  ;;  %v573_v46 = vpack.c.bf16 %v419_v41, %v412_v40  ;;  %v309_v40 = vld [vmem:[%s8546_s26 + $0xb8] sm:$0xff] }
  0x6c   : > { %2704 = vmatmul.mubr.bf16.gmra.mrb[44].mxu1 %v531_v16  ;;  %2082 = vmatprep.subr.bf16.mxu0 %v7568_v47  ;;  %v7605_v16 = vld [vmem:[%s10785_s1 + $0x348] ss:$16 sps:$4 sm:$0xff]   ;;  %v7628_v47 = vld [vmem:[%s10785_s1 + $0x3ec] ss:$16 sps:$4 sm:$0xff]   ;;  %v7629_v41 = vld [vmem:[%s10785_s1 + $0x420] ss:$16 sps:$4 sm:$0xff]  }
  0x6d   : > { %2713 = vmatprep.mubr.bf16.mxu1 %v539_v18  ;;  %2847 = vmatpush1.bf16.msra.mxu1 %v7587_v48  ;;  %v7610_v18 = vld [vmem:[%s10785_s1 + $0x36c] ss:$16 sps:$4 sm:$0xff]   ;;  %v581_v48 = vpack.c.bf16 %v434_v43, %v427_v42  ;;  %v324_v43 = vld [vmem:[%s8546_s26 + $0x130] sm:$0xff] }
  0x6e   : > { %1952 = vmatmul.mubr.bf16.gmra.mrb[20].mxu0 %v545_v49  ;;  %2848 = vmatprep.subr.bf16.mxu1 %v7592_v50  ;;  %v426_v50 = vld [vmem:[%s8546_s26 + $0x460] sm:$0xff]  ;;  %v317_v42 = vld [vmem:[%s8546_s26 + $0xf8] sm:$0xff] }
  0x6f   : > { %1961 = vmatprep.mubr.bf16.mxu0 %v553_v51  ;;  %2083 = vmatpush1.bf16.msra.mxu0 %v7566_v52  ;;  %v441_v52 = vld [vmem:[%s8546_s26 + $0x4d8] sm:$0xff] }
  0x70   : > { %2084 = vmatprep.subr.bf16.mxu0 %v7577_v53  ;;  %v448_v53 = vld [vmem:[%s8546_s26 + $0x510] sm:$0xff] }
  0x71   : > { %2849 = vmatpush1.bf16.msra.mxu1 %v7590_v57  ;;  %v588_v57 = vpack.c.bf16 %v448_v53, %v441_v52  ;;  %v316_v52 = vld [vmem:[%s8546_s26 + $0xf0] sm:$0xff]  ;;  %v323_v53 = vld [vmem:[%s8546_s26 + $0x128] sm:$0xff] }
  0x72   : > { %2850 = vmatprep.subr.bf16.mxu1 %v7598_v59  ;;  %v447_v59 = vld [vmem:[%s8546_s26 + $0x508] sm:$0xff] }
  0x73   : > { %2085 = vmatpush1.bf16.msra.mxu0 %v7575_v61  ;;  %v462_v61 = vld [vmem:[%s8546_s26 + $0x580] sm:$0xff] }
  0x74   : > { %2714 = vmatmul.mubr.bf16.gmra.mrb[48].mxu1 %v538_v32  ;;  %2086 = vmatprep.subr.bf16.mxu0 %v7586_v62  ;;  %v7614_v32 = vld [vmem:[%s10785_s1 + $0x388] ss:$16 sps:$4 sm:$0xff]   ;;  %v587_v62 = vpack.c.bf16 %v447_v59, %v440_v58  ;;  %v7640_v58 = vld [vmem:[%s10785_s1 + $0x484] ss:$16 sps:$4 sm:$0xff]   ;;  %v7638_v59 = vld [vmem:[%s10785_s1 + $0x480] ss:$16 sps:$4 sm:$0xff]  }
  0x75   : > { %2723 = vmatprep.mubr.bf16.mxu1 %v546_v35  ;;  %2851 = vmatpush1.bf16.msra.mxu1 %v7596_v63  ;;  %v7619_v35 = vld [vmem:[%s10785_s1 + $0x3ac] ss:$16 sps:$4 sm:$0xff]   ;;  %v595_v63 = vpack.c.bf16 %v462_v61, %v455_v60  ;;  %v7659_v60 = vld [vmem:[%s10785_s1 + $0x428] ss:$16 sps:$4 sm:$0xff]  }
  0x76   : > { %1962 = vmatmul.mubr.bf16.gmra.mrb[24].mxu0 %v552_v0  ;;  %2852 = vmatprep.subr.bf16.mxu1 %v7601_v1  ;;  %v461_v1 = vld [vmem:[%s8546_s26 + $0x578] sm:$0xff] }
  0x77   : > { %1971 = vmatprep.mubr.bf16.mxu0 %v560_v3  ;;  %2087 = vmatpush1.bf16.msra.mxu0 %v7584_v4  ;;  %v476_v4 = vld [vmem:[%s8546_s26 + $0x5f0] sm:$0xff]  ;;  %v7667_v61 = vld [vmem:[%s10785_s1 + $0x44c] ss:$16 sps:$4 sm:$0xff]  }
  0x78   : > { %2088 = vmatprep.subr.bf16.mxu0 %v7595_v5 }
  0x79   : > { %2853 = vmatpush1.bf16.msra.mxu1 %v7599_v6 }
  0x7a   : > { %2854 = vmatprep.subr.bf16.mxu1 %v7607_v9  ;;  %v475_v9 = vld [vmem:[%s8546_s26 + $0x5e8] sm:$0xff] }
  0x7b   : > { %2089 = vmatpush1.bf16.msra.mxu0 %v7593_v11  ;;  %v490_v11 = vld [vmem:[%s8546_s26 + $0x660] sm:$0xff]  ;;  %v601_v12 = vpack.c.bf16 %v475_v9, %v468_v8  ;;  %v345_v8 = vld [vmem:[%s8546_s26 + $0x1d8] sm:$0xff]  ;;  %v352_v9 = vld [vmem:[%s8546_s26 + $0x210] sm:$0xff] }
  0x7c   : > { %2724 = vmatmul.mubr.bf16.gmra.mrb[52].mxu1 %v545_v49  ;;  %2090 = vmatprep.subr.bf16.mxu0 %v7604_v15  ;;  %v7626_v49 = vld [vmem:[%s10785_s1 + $0x3e8] ss:$16 sps:$4 sm:$0xff]   ;;  %v609_v13 = vpack.c.bf16 %v490_v11, %v483_v10  ;;  %v482_v15 = vld [vmem:[%s8546_s26 + $0x620] sm:$0xff] }
  0x7d   : > { %2733 = vmatprep.mubr.bf16.mxu1 %v553_v51  ;;  %2855 = vmatpush1.bf16.msra.mxu1 %v7605_v16  ;;  %v433_v51 = vld [vmem:[%s8546_s26 + $0x498] sm:$0xff]  ;;  %v7646_v10 = vld [vmem:[%s10785_s1 + $0x4c4] ss:$16 sps:$4 sm:$0xff]   ;;  %v7644_v11 = vld [vmem:[%s10785_s1 + $0x4c0] ss:$16 sps:$4 sm:$0xff]  }
  0x7e   : > { %1972 = vmatmul.mubr.bf16.gmra.mrb[28].mxu0 %v559_v17  ;;  %2856 = vmatprep.subr.bf16.mxu1 %v7610_v18  ;;  %v580_v55 = vpack.c.bf16 %v433_v51, %v426_v50  ;;  %v489_v16 = vld [vmem:[%s8546_s26 + $0x658] sm:$0xff]  ;;  %v504_v18 = vld [vmem:[%s8546_s26 + $0x6d0] sm:$0xff] }
  0x7f   : > { %1981 = vmatprep.mubr.bf16.mxu0 %v567_v20  ;;  %2091 = vmatpush1.bf16.msra.mxu0 %v7602_v21  ;;  %v7656_v50 = vld [vmem:[%s10785_s1 + $0x408] ss:$16 sps:$4 sm:$0xff]   ;;  %v7661_v51 = vld [vmem:[%s10785_s1 + $0x42c] ss:$16 sps:$4 sm:$0xff]  }
  0x80   : > { %2092 = vmatprep.subr.bf16.mxu0 %v7613_v22  ;;  %v496_v22 = vld [vmem:[%s8546_s26 + $0x690] sm:$0xff] }
  0x81   : > { %2857 = vmatpush1.bf16.msra.mxu1 %v7608_v24  ;;  %v503_v24 = vld [vmem:[%s8546_s26 + $0x6c8] sm:$0xff] }
  0x82   : > { %2858 = vmatprep.subr.bf16.mxu1 %v7616_v26  ;;  %v296_v26 = vld [vmem:[%s8546_s26 + $0x50] sm:$0xff]  ;;  %v615_v27 = vpack.c.bf16 %v503_v24, %v496_v22  ;;  %v351_v22 = vld [vmem:[%s8546_s26 + $0x208] sm:$0xff] }
  0x83   : > { %2093 = vmatpush1.bf16.msra.mxu0 %v7611_v28  ;;  %v513_v28 = vpack.c.bf16 %v296_v26, %v289_v25  ;;  %v7647_v24 = vld [vmem:[%s10785_s1 + $0x4e0] ss:$16 sps:$4 sm:$0xff]   ;;  %v359_v25 = vld [vmem:[%s8546_s26 + $0x248] sm:$0xff] }
  0x84   : > { %2734 = vmatmul.mubr.bf16.gmra.mrb[56].mxu1 %v552_v0  ;;  %2255 = vmatprep.subr.bf16.mxu0 %v7622_v31  ;;  %v454_v0 = vld [vmem:[%s8546_s26 + $0x540] sm:$0xff]  ;;  %v303_v31 = vld [vmem:[%s8546_s26 + $0x88] sm:$0xff] }
  0x85   : > { %2743 = vmatprep.mubr.bf16.mxu1 %v560_v3  ;;  %2859 = vmatpush1.bf16.msra.mxu1 %v7614_v32  ;;  %v469_v3 = vld [vmem:[%s8546_s26 + $0x5b8] sm:$0xff]  ;;  %v594_v5 = vpack.c.bf16 %v461_v1, %v454_v0  ;;  %v310_v32 = vld [vmem:[%s8546_s26 + $0xc0] sm:$0xff] }
  0x86   : > { %1982 = vmatmul.mubr.bf16.gmra.mrb[32].mxu0 %v566_v33  ;;  %2860 = vmatprep.subr.bf16.mxu1 %v7619_v35  ;;  %v602_v6 = vpack.c.bf16 %v476_v4, %v469_v3  ;;  %v512_v35 = vpack.c.bf16 %v295_v30, %v288_v29  ;;  %v7665_v1 = vld [vmem:[%s10785_s1 + $0x448] ss:$16 sps:$4 sm:$0xff]   ;;  %v7670_v3 = vld [vmem:[%s10785_s1 + $0x46c] ss:$16 sps:$4 sm:$0xff]   ;;  %v330_v4 = vld [vmem:[%s8546_s26 + $0x160] sm:$0xff] }
  0x87   : > { %1991 = vmatprep.mubr.bf16.mxu0 %v574_v36  ;;  %v366_v26 = vld [vmem:[%s8546_s26 + $0x280] sm:$0xff]  ;;  %v7677_v29 = vld [vmem:[%s10785_s1 + $0x4a8] ss:$16 sps:$4 sm:$0xff]   ;;  %v7685_v30 = vld [vmem:[%s10785_s1 + $0x4cc] ss:$16 sps:$4 sm:$0xff]  }
  0x89   : > { %2861 = vmatpush1.bf16.msra.mxu1 %v7617_v37  ;;  %v520_v37 = vpack.c.bf16 %v310_v32, %v303_v31  ;;  %v7655_v32 = vld [vmem:[%s10785_s1 + $0x524] ss:$16 sps:$4 sm:$0xff]  }
  0x8a   : > { %2862 = vmatprep.subr.bf16.mxu1 %v7625_v39  ;;  %v302_v39 = vld [vmem:[%s8546_s26 + $0x80] sm:$0xff] }
  0x8c   : > { %2744 = vmatmul.mubr.bf16.gmra.mrb[60].mxu1 %v559_v17  ;;  %v497_v17 = vld [vmem:[%s8546_s26 + $0x698] sm:$0xff] }
  0x8d   : > { %2753 = vmatprep.mubr.bf16.mxu1 %v567_v20  ;;  %2863 = vmatpush1.bf16.msra.mxu1 %v7623_v44  ;;  %v608_v20 = vpack.c.bf16 %v489_v16, %v482_v15  ;;  %v616_v21 = vpack.c.bf16 %v504_v18, %v497_v17  ;;  %v7634_v44 = vld [vmem:[%s10785_s1 + $0x444] ss:$16 sps:$4 sm:$0xff]   ;;  %v541_v17 = vpack.c.bf16 %v352_v9, %v345_v8  ;;  %v7674_v18 = vld [vmem:[%s10785_s1 + $0x488] ss:$16 sps:$4 sm:$0xff]   ;;  %v7703_v8 = vld [vmem:[%s10785_s1 + $0x54c] ss:$16 sps:$4 sm:$0xff]  }
  0x8e   : > { %1992 = vmatmul.mubr.bf16.gmra.mrb[36].mxu0 %v573_v46  ;;  %2864 = vmatprep.subr.bf16.mxu1 %v7628_v47  ;;  %v519_v47 = vpack.c.bf16 %v309_v40, %v302_v39  ;;  %v7649_v16 = vld [vmem:[%s10785_s1 + $0x4e4] ss:$16 sps:$4 sm:$0xff]  }
  0x8f   : > { %2001 = vmatprep.mubr.bf16.mxu0 %v581_v48  ;;  %v358_v40 = vld [vmem:[%s8546_s26 + $0x240] sm:$0xff] }
  0x91   : > { %2865 = vmatpush1.bf16.msra.mxu1 %v7626_v49  ;;  %v527_v49 = vpack.c.bf16 %v324_v43, %v317_v42  ;;  %v7653_v42 = vld [vmem:[%s10785_s1 + $0x520] ss:$16 sps:$4 sm:$0xff]  }
  0x92   : > { %3027 = vmatprep.subr.bf16.mxu1 %v7658_v54  ;;  %v7635_v54 = vld [vmem:[%s10785_s1 + $0x460] ss:$16 sps:$4 sm:$0xff]  }
  0x94   : > { %2754 = vmatmul.mubr.bf16.gmra.mrb[64].mxu1 %v566_v33  ;;  %v7620_v33 = vld [vmem:[%s10785_s1 + $0x400] ss:$16 sps:$4 sm:$0xff]  }
  0x95   : > { %2763 = vmatprep.mubr.bf16.mxu1 %v574_v36  ;;  %v7631_v36 = vld [vmem:[%s10785_s1 + $0x424] ss:$16 sps:$4 sm:$0xff]  }
  0x96   : > { %2002 = vmatmul.mubr.bf16.gmra.mrb[40].mxu0 %v580_v55 }
  0x97   : > { %2011 = vmatprep.mubr.bf16.mxu0 %v588_v57 }
  0x9c   : > { %2764 = vmatmul.mubr.bf16.gmra.mrb[68].mxu1 %v573_v46  ;;  %v7632_v46 = vld [vmem:[%s10785_s1 + $0x440] ss:$16 sps:$4 sm:$0xff]  }
  0x9d   : > { %2773 = vmatprep.mubr.bf16.mxu1 %v581_v48  ;;  %v7637_v48 = vld [vmem:[%s10785_s1 + $0x464] ss:$16 sps:$4 sm:$0xff]  }
  0x9e   : > { %2012 = vmatmul.mubr.bf16.gmra.mrb[44].mxu0 %v587_v62 }
  0x9f   : > { %2021 = vmatprep.mubr.bf16.mxu0 %v595_v63 }
  0xa4   : > { %2774 = vmatmul.mubr.bf16.gmra.mrb[72].mxu1 %v580_v55  ;;  %v331_v55 = vld [vmem:[%s8546_s26 + $0x168] sm:$0xff] }
  0xa5   : > { %2783 = vmatprep.mubr.bf16.mxu1 %v588_v57  ;;  %v338_v57 = vld [vmem:[%s8546_s26 + $0x1a0] sm:$0xff] }
  0xa6   : > { %2022 = vmatmul.mubr.bf16.gmra.mrb[48].mxu0 %v594_v5  ;;  %v534_v0 = vpack.c.bf16 %v338_v57, %v331_v55  ;;  %v7692_v55 = vld [vmem:[%s10785_s1 + $0x508] ss:$16 sps:$4 sm:$0xff]  }
  0xa7   : > { %2031 = vmatprep.mubr.bf16.mxu0 %v602_v6 }
  0xac   : > { %2784 = vmatmul.mubr.bf16.gmra.mrb[76].mxu1 %v587_v62  ;;  %v526_v62 = vpack.c.bf16 %v323_v53, %v316_v52  ;;  %v7673_v53 = vld [vmem:[%s10785_s1 + $0x564] ss:$16 sps:$4 sm:$0xff]  }
  0xad   : > { %2793 = vmatprep.mubr.bf16.mxu1 %v595_v63  ;;  %v7643_v63 = vld [vmem:[%s10785_s1 + $0x4a4] ss:$16 sps:$4 sm:$0xff]  }
  0xae   : > { %2032 = vmatmul.mubr.bf16.gmra.mrb[52].mxu0 %v601_v12 }
  0xaf   : > { %2041 = vmatprep.mubr.bf16.mxu0 %v609_v13 }
  0xb4   : > { %2794 = vmatmul.mubr.bf16.gmra.mrb[80].mxu1 %v594_v5  ;;  %v337_v5 = vld [vmem:[%s8546_s26 + $0x198] sm:$0xff] }
  0xb5   : > { %2803 = vmatprep.mubr.bf16.mxu1 %v602_v6  ;;  %v7641_v6 = vld [vmem:[%s10785_s1 + $0x4a0] ss:$16 sps:$4 sm:$0xff]   ;;  %v533_v15 = vpack.c.bf16 %v337_v5, %v330_v4  ;;  %v7682_v4 = vld [vmem:[%s10785_s1 + $0x584] ss:$16 sps:$4 sm:$0xff]  }
  0xb6   : > { %2042 = vmatmul.mubr.bf16.gmra.mrb[56].mxu0 %v608_v20  ;;  %v7680_v5 = vld [vmem:[%s10785_s1 + $0x580] ss:$16 sps:$4 sm:$0xff]  }
  0xb7   : > { %2051 = vmatprep.mubr.bf16.mxu0 %v616_v21 }
  0xbc   : > { %2804 = vmatmul.mubr.bf16.gmra.mrb[84].mxu1 %v601_v12  ;;  %v7668_v12 = vld [vmem:[%s10785_s1 + $0x468] ss:$16 sps:$4 sm:$0xff]  }
  0xbd   : > { %2813 = vmatprep.mubr.bf16.mxu1 %v609_v13  ;;  %v7676_v13 = vld [vmem:[%s10785_s1 + $0x48c] ss:$16 sps:$4 sm:$0xff]  }
  0xbe   : > { %2052 = vmatmul.mubr.bf16.gmra.mrb[60].mxu0 %v615_v27 }
  0xbf   : > { %2094 = vmatprep.mubr.bf16.mxu0 %v513_v28 }
  0xc4   : > { %2814 = vmatmul.mubr.bf16.gmra.mrb[88].mxu1 %v608_v20  ;;  %v7679_v20 = vld [vmem:[%s10785_s1 + $0x4ac] ss:$16 sps:$4 sm:$0xff]  }
  0xc5   : > { %2823 = vmatprep.mubr.bf16.mxu1 %v616_v21  ;;  %v344_v21 = vld [vmem:[%s8546_s26 + $0x1d0] sm:$0xff] }
  0xc6   : > { %2095 = vmatmul.mubr.bf16.vlgmr.msra.gmra.mrb[0].mxu0 %v512_v35  ;;  %v540_v31 = vpack.c.bf16 %v351_v22, %v344_v21  ;;  %v401_v22 = vld [vmem:[%s8546_s26 + $0x398] sm:$0xff] }
  0xc7   : > { %2256 = vmatpush1.bf16.msra.mxu0 %v7620_v33  ;;  %2104 = vmatprep.mubr.bf16.mxu0 %v520_v37  ;;  %v548_v33 = vpack.c.bf16 %v366_v26, %v359_v25  ;;  %v408_v25 = vld [vmem:[%s8546_s26 + $0x3d0] sm:$0xff] }
  0xc8   : > { %2257 = vmatprep.subr.bf16.mxu0 %v7631_v36  ;;  %v7700_v26 = vld [vmem:[%s10785_s1 + $0x5c4] ss:$16 sps:$4 sm:$0xff]  }
  0xcb   : > { %2258 = vmatpush1.bf16.msra.mxu0 %v7629_v41  ;;  %v365_v41 = vld [vmem:[%s8546_s26 + $0x278] sm:$0xff] }
  0xcc   : > { %2824 = vmatmul.mubr.bf16.gmra.mrb[92].mxu1 %v615_v27  ;;  %2259 = vmatprep.subr.bf16.mxu0 %v7634_v44  ;;  %v7652_v27 = vld [vmem:[%s10785_s1 + $0x504] ss:$16 sps:$4 sm:$0xff]   ;;  %v373_v44 = vld [vmem:[%s8546_s26 + $0x2b8] sm:$0xff]  ;;  %v547_v52 = vpack.c.bf16 %v365_v41, %v358_v40 }
  0xcd   : > { %2866 = vmatprep.mubr.bf16.mxu1 %v513_v28  ;;  %v7650_v28 = vld [vmem:[%s10785_s1 + $0x500] ss:$16 sps:$4 sm:$0xff]  }
  0xce   : > { %2105 = vmatmul.mubr.bf16.gmra.mrb[4].mxu0 %v519_v47 }
  0xcf   : > { %2114 = vmatprep.mubr.bf16.mxu0 %v527_v49  ;;  %2260 = vmatpush1.bf16.msra.mxu0 %v7632_v46 }
  0xd0   : > { %2261 = vmatprep.subr.bf16.mxu0 %v7637_v48  ;;  %v7664_v48 = vld [vmem:[%s10785_s1 + $0x544] ss:$16 sps:$4 sm:$0xff]  }
  0xd3   : > { %2262 = vmatpush1.bf16.msra.mxu0 %v7635_v54 }
  0xd4   : > { %2867 = vmatmul.mubr.bf16.vlgmr.msra.gmra.mrb[32].mxu1 %v512_v35  ;;  %2263 = vmatprep.subr.bf16.mxu0 %v7640_v58  ;;  %v7683_v35 = vld [vmem:[%s10785_s1 + $0x4c8] ss:$16 sps:$4 sm:$0xff]   ;;  %v7697_v58 = vld [vmem:[%s10785_s1 + $0x52c] ss:$16 sps:$4 sm:$0xff]  }
  0xd5   : > { %2876 = vmatprep.mubr.bf16.mxu1 %v520_v37  ;;  %3028 = vmatpush1.bf16.msra.mxu1 %v7656_v50  ;;  %v7688_v37 = vld [vmem:[%s10785_s1 + $0x4ec] ss:$16 sps:$4 sm:$0xff]   ;;  %v7686_v50 = vld [vmem:[%s10785_s1 + $0x4e8] ss:$16 sps:$4 sm:$0xff]  }
  0xd6   : > { %3029 = vmatprep.subr.bf16.mxu1 %v7661_v51  ;;  %2115 = vmatmul.mubr.bf16.gmra.mrb[8].mxu0 %v526_v62  ;;  %v7694_v51 = vld [vmem:[%s10785_s1 + $0x50c] ss:$16 sps:$4 sm:$0xff]  }
  0xd7   : > { %2124 = vmatprep.mubr.bf16.mxu0 %v534_v0  ;;  %2264 = vmatpush1.bf16.msra.mxu0 %v7638_v59 }
  0xd8   : > { %2265 = vmatprep.subr.bf16.mxu0 %v7643_v63 }
  0xd9   : > { %3030 = vmatpush1.bf16.msra.mxu1 %v7659_v60  ;;  %v372_v60 = vld [vmem:[%s8546_s26 + $0x2b0] sm:$0xff] }
  0xda   : > { %3031 = vmatprep.subr.bf16.mxu1 %v7667_v61  ;;  %v379_v61 = vld [vmem:[%s8546_s26 + $0x2e8] sm:$0xff] }
  0xdb   : > { %2266 = vmatpush1.bf16.msra.mxu0 %v7641_v6  ;;  %v7695_v6 = vld [vmem:[%s10785_s1 + $0x528] ss:$16 sps:$4 sm:$0xff]   ;;  %v554_v9 = vpack.c.bf16 %v379_v61, %v372_v60 }
  0xdc   : > { %2877 = vmatmul.mubr.bf16.gmra.mrb[36].mxu1 %v519_v47  ;;  %2267 = vmatprep.subr.bf16.mxu0 %v7646_v10  ;;  %v380_v47 = vld [vmem:[%s8546_s26 + $0x2f0] sm:$0xff]  ;;  %v7716_v61 = vld [vmem:[%s10785_s1 + $0x5c8] ss:$16 sps:$4 sm:$0xff]  }
  0xdd   : > { %2886 = vmatprep.mubr.bf16.mxu1 %v527_v49  ;;  %3032 = vmatpush1.bf16.msra.mxu1 %v7665_v1  ;;  %v7662_v49 = vld [vmem:[%s10785_s1 + $0x540] ss:$16 sps:$4 sm:$0xff]   ;;  %v555_v54 = vpack.c.bf16 %v380_v47, %v373_v44  ;;  %v7691_v10 = vld [vmem:[%s10785_s1 + $0x5a4] ss:$16 sps:$4 sm:$0xff]   ;;  %v407_v47 = vld [vmem:[%s8546_s26 + $0x3c8] sm:$0xff] }
  0xde   : > { %3033 = vmatprep.subr.bf16.mxu1 %v7670_v3  ;;  %2125 = vmatmul.mubr.bf16.gmra.mrb[12].mxu0 %v533_v15  ;;  %v394_v3 = vld [vmem:[%s8546_s26 + $0x360] sm:$0xff] }
  0xdf   : > { %2134 = vmatprep.mubr.bf16.mxu0 %v541_v17  ;;  %2268 = vmatpush1.bf16.msra.mxu0 %v7644_v11 }
  0xe0   : > { %2269 = vmatprep.subr.bf16.mxu0 %v7649_v16 }
  0xe1   : > { %3034 = vmatpush1.bf16.msra.mxu1 %v7668_v12  ;;  %v7701_v12 = vld [vmem:[%s10785_s1 + $0x548] ss:$16 sps:$4 sm:$0xff]  }
  0xe2   : > { %3035 = vmatprep.subr.bf16.mxu1 %v7676_v13 }
  0xe3   : > { %2270 = vmatpush1.bf16.msra.mxu0 %v7647_v24 }
  0xe4   : > { %2887 = vmatmul.mubr.bf16.gmra.mrb[40].mxu1 %v526_v62  ;;  %2271 = vmatprep.subr.bf16.mxu0 %v7652_v27  ;;  %v7671_v62 = vld [vmem:[%s10785_s1 + $0x560] ss:$16 sps:$4 sm:$0xff]  }
  0xe5   : > { %2896 = vmatprep.mubr.bf16.mxu1 %v534_v0  ;;  %3036 = vmatpush1.bf16.msra.mxu1 %v7674_v18  ;;  %v387_v0 = vld [vmem:[%s8546_s26 + $0x328] sm:$0xff]  ;;  %v393_v18 = vld [vmem:[%s8546_s26 + $0x358] sm:$0xff]  ;;  %v7698_v27 = vld [vmem:[%s10785_s1 + $0x5c0] ss:$16 sps:$4 sm:$0xff]  }
  0xe6   : > { %3037 = vmatprep.subr.bf16.mxu1 %v7679_v20  ;;  %2135 = vmatmul.mubr.bf16.gmra.mrb[16].mxu0 %v540_v31  ;;  %v562_v11 = vpack.c.bf16 %v394_v3, %v387_v0  ;;  %v7689_v20 = vld [vmem:[%s10785_s1 + $0x5a0] ss:$16 sps:$4 sm:$0xff]   ;;  %v7721_v0 = vld [vmem:[%s10785_s1 + $0x5ec] ss:$16 sps:$4 sm:$0xff]  }
  0xe7   : > { %v9155_v36 = vpop.f32.mrb[0].mxu1  ;;  %2144 = vmatprep.mubr.bf16.mxu0 %v548_v33  ;;  %2272 = vmatpush1.bf16.msra.mxu0 %v7650_v28  ;;  %v7704_v28 = vld [vmem:[%s10785_s1 + $0x568] ss:$16 sps:$4 sm:$0xff]  }
  0xe8   : > { %v9160_v39 = vpop.f32.mrb[1].mxu1  ;;  %2273 = vmatprep.subr.bf16.mxu0 %v7655_v32  ;;  %v569_v32 = vpack.c.bf16 %v408_v25, %v401_v22  ;;  %v435_v22 = vld [vmem:[%s8546_s26 + $0x4a8] sm:$0xff] }
  0xe9   : > { %3038 = vmatpush1.bf16.msra.mxu1 %v7677_v29  ;;  %v9167_v43 = vpop.f32.mrb[2].mxu1  ;;  %v7712_v29 = vld [vmem:[%s10785_s1 + $0x58c] ss:$16 sps:$4 sm:$0xff]  }
  0xea   : > { %3039 = vmatprep.subr.bf16.mxu1 %v7685_v30  ;;  %v9170_v46 = vpop.f32.mrb[3].mxu1  ;;  %v443_v25 = vld [vmem:[%s8546_s26 + $0x4e8] sm:$0xff] }
  0xeb   : > { %2274 = vmatpush1.bf16.msra.mxu0 %v7653_v42  ;;  %v400_v42 = vld [vmem:[%s8546_s26 + $0x390] sm:$0xff] }
  0xec   : > { %2897 = vmatmul.mubr.bf16.gmra.mrb[44].mxu1 %v533_v15  ;;  %2275 = vmatprep.subr.bf16.mxu0 %v7664_v48  ;;  %v7706_v15 = vld [vmem:[%s10785_s1 + $0x56c] ss:$16 sps:$4 sm:$0xff]   ;;  %v7707_v48 = vld [vmem:[%s10785_s1 + $0x5e0] ss:$16 sps:$4 sm:$0xff]  }
  0xed   : > { %2906 = vmatprep.mubr.bf16.mxu1 %v541_v17  ;;  %3040 = vmatpush1.bf16.msra.mxu1 %v7683_v35  ;;  %v386_v17 = vld [vmem:[%s8546_s26 + $0x320] sm:$0xff] }
  0xee   : > { %3041 = vmatprep.subr.bf16.mxu1 %v7688_v37  ;;  %2145 = vmatmul.mubr.bf16.gmra.mrb[20].mxu0 %v547_v52  ;;  %v561_v30 = vpack.c.bf16 %v393_v18, %v386_v17  ;;  %v7715_v37 = vld [vmem:[%s10785_s1 + $0x5ac] ss:$16 sps:$4 sm:$0xff]  }
  0xef   : > { %v9191_v57 = vpop.f32.mrb[4].mxu1  ;;  %2154 = vmatprep.mubr.bf16.mxu0 %v555_v54  ;;  %2276 = vmatpush1.bf16.msra.mxu0 %v7662_v49  ;;  %v415_v49 = vld [vmem:[%s8546_s26 + $0x408] sm:$0xff] }
  0xf0   : > { %v9196_v59 = vpop.f32.mrb[5].mxu1  ;;  %2277 = vmatprep.subr.bf16.mxu0 %v7673_v53  ;;  %v7718_v53 = vld [vmem:[%s10785_s1 + $0x5cc] ss:$16 sps:$4 sm:$0xff]  }
  0xf1   : > { %3042 = vmatpush1.bf16.msra.mxu1 %v7686_v50  ;;  %v9203_v63 = vpop.f32.mrb[6].mxu1  ;;  %v422_v50 = vld [vmem:[%s8546_s26 + $0x440] sm:$0xff] }
  0xf2   : > { %3043 = vmatprep.subr.bf16.mxu1 %v7694_v51  ;;  %v9206_v1 = vpop.f32.mrb[7].mxu1  ;;  %v7713_v51 = vld [vmem:[%s10785_s1 + $0x5a8] ss:$16 sps:$4 sm:$0xff]  }
  0xf3   : > { %2278 = vmatpush1.bf16.msra.mxu0 %v7671_v62 }
  0xf4   : > { %2907 = vmatmul.mubr.bf16.gmra.mrb[48].mxu1 %v540_v31  ;;  %2279 = vmatprep.subr.bf16.mxu0 %v7682_v4  ;;  %v7709_v31 = vld [vmem:[%s10785_s1 + $0x5e4] ss:$16 sps:$4 sm:$0xff]  }
  0xf5   : > { %2916 = vmatprep.mubr.bf16.mxu1 %v548_v33  ;;  %3044 = vmatpush1.bf16.msra.mxu1 %v7692_v55  ;;  %v7710_v33 = vld [vmem:[%s10785_s1 + $0x588] ss:$16 sps:$4 sm:$0xff]   ;;  %v414_v4 = vld [vmem:[%s8546_s26 + $0x400] sm:$0xff] }
  0xf6   : > { %3045 = vmatprep.subr.bf16.mxu1 %v7697_v58  ;;  %2155 = vmatmul.mubr.bf16.gmra.mrb[24].mxu0 %v554_v9  ;;  %v8453_v58 = vld [vmem:[%s10785_s1 + $0x604] ss:$16 sps:$4 sm:$0xff]  }
  0xf7   : > { %v9227_v13 = vpop.f32.mrb[8].mxu1  ;;  %2164 = vmatprep.mubr.bf16.mxu0 %v562_v11  ;;  %2280 = vmatpush1.bf16.msra.mxu0 %v7680_v5  ;;  %v421_v5 = vld [vmem:[%s8546_s26 + $0x438] sm:$0xff] }
  0xf8   : > { %v9232_v16 = vpop.f32.mrb[9].mxu1  ;;  %2281 = vmatprep.subr.bf16.mxu0 %v7691_v10  ;;  %v575_v10 = vpack.c.bf16 %v421_v5, %v414_v4 }
  0xf9   : > { %3046 = vmatpush1.bf16.msra.mxu1 %v7695_v6  ;;  %v9239_v21 = vpop.f32.mrb[10].mxu1  ;;  %v429_v6 = vld [vmem:[%s8546_s26 + $0x478] sm:$0xff] }
  0xfa   : > { %3047 = vmatprep.subr.bf16.mxu1 %v7703_v8  ;;  %v9242_v24 = vpop.f32.mrb[11].mxu1  ;;  %v436_v8 = vld [vmem:[%s8546_s26 + $0x4b0] sm:$0xff] }
  0xfb   : > { %2282 = vmatpush1.bf16.msra.mxu0 %v7689_v20  ;;  %v428_v20 = vld [vmem:[%s8546_s26 + $0x470] sm:$0xff] }
  0xfc   : > { %2917 = vmatmul.mubr.bf16.gmra.mrb[52].mxu1 %v547_v52  ;;  %2283 = vmatprep.subr.bf16.mxu0 %v7700_v26  ;;  %v568_v52 = vpack.c.bf16 %v407_v47, %v400_v42  ;;  %v450_v26 = vld [vmem:[%s8546_s26 + $0x520] sm:$0xff]  ;;  %v457_v42 = vld [vmem:[%s8546_s26 + $0x558] sm:$0xff]  ;;  %v464_v47 = vld [vmem:[%s8546_s26 + $0x590] sm:$0xff] }
  0xfd   : > { %2926 = vmatprep.mubr.bf16.mxu1 %v555_v54  ;;  %3048 = vmatpush1.bf16.msra.mxu1 %v7701_v12  ;;  %v576_v54 = vpack.c.bf16 %v422_v50, %v415_v49  ;;  %v597_v49 = vpack.c.bf16 %v464_v47, %v457_v42  ;;  %v498_v42 = vld [vmem:[%s8546_s26 + $0x6a0] sm:$0xff]  ;;  %v505_v47 = vld [vmem:[%s8546_s26 + $0x6d8] sm:$0xff] }
  0xfe   : > { %3049 = vmatprep.subr.bf16.mxu1 %v7706_v15  ;;  %2165 = vmatmul.mubr.bf16.gmra.mrb[28].mxu0 %v561_v30 }
  0xff   : > { %v9263_v35 = vpop.f32.mrb[12].mxu1  ;;  %2174 = vmatprep.mubr.bf16.mxu0 %v569_v32  ;;  %2284 = vmatpush1.bf16.msra.mxu0 %v7698_v27  ;;  %v582_v27 = vpack.c.bf16 %v435_v22, %v428_v20 }
 0x100   : > { %v9268_v40 = vpop.f32.mrb[13].mxu1  ;;  %2285 = vmatprep.subr.bf16.mxu0 %v7709_v31 }
 0x101   : > { %3050 = vmatpush1.bf16.msra.mxu1 %v7704_v28  ;;  %v9270_v41 = vpop.f32.mrb[14].mxu1  ;;  %v590_v28 = vpack.c.bf16 %v450_v26, %v443_v25  ;;  %v484_v25 = vld [vmem:[%s8546_s26 + $0x630] sm:$0xff]  ;;  %v491_v26 = vld [vmem:[%s8546_s26 + $0x668] sm:$0xff] }
 0x102   : > { %3051 = vmatprep.subr.bf16.mxu1 %v7712_v29  ;;  %v9273_v44 = vpop.f32.mrb[15].mxu1 }
 0x103   : > { %2286 = vmatpush1.bf16.msra.mxu0 %v7707_v48 }
 0x104   : > { %2927 = vmatmul.mubr.bf16.gmra.mrb[56].mxu1 %v554_v9  ;;  %2448 = vmatprep.subr.bf16.mxu0 %v8453_v58  ;;  %v7719_v9 = vld [vmem:[%s10785_s1 + $0x5e8] ss:$16 sps:$4 sm:$0xff]  }
 0x105   : > { %2936 = vmatprep.mubr.bf16.mxu1 %v562_v11  ;;  %3052 = vmatpush1.bf16.msra.mxu1 %v7710_v33  ;;  %v583_v11 = vpack.c.bf16 %v436_v8, %v429_v6  ;;  %v442_v33 = vld [vmem:[%s8546_s26 + $0x4e0] sm:$0xff]  ;;  %v463_v58 = vld [vmem:[%s8546_s26 + $0x588] sm:$0xff]  ;;  %v477_v8 = vld [vmem:[%s8546_s26 + $0x5f8] sm:$0xff] }
 0x106   : > { %3053 = vmatprep.subr.bf16.mxu1 %v7715_v37  ;;  %2175 = vmatmul.mubr.bf16.gmra.mrb[32].mxu0 %v568_v52  ;;  %v449_v37 = vld [vmem:[%s8546_s26 + $0x518] sm:$0xff]  ;;  %v470_v6 = vld [vmem:[%s8546_s26 + $0x5c0] sm:$0xff] }
 0x107   : > { %v9287_v55 = vpop.f32.mrb[16].mxu1  ;;  %2184 = vmatprep.mubr.bf16.mxu0 %v576_v54  ;;  %v589_v48 = vpack.c.bf16 %v449_v37, %v442_v33  ;;  %v603_v20 = vpack.c.bf16 %v477_v8, %v470_v6  ;;  %v610_v33 = vpack.c.bf16 %v491_v26, %v484_v25 }
 0x108   : > { %v9292_v60 = vpop.f32.mrb[17].mxu1 }
 0x109   : > { %3054 = vmatpush1.bf16.msra.mxu1 %v7713_v51  ;;  %v9297_v62 = vpop.f32.mrb[18].mxu1 }
 0x10a   : > { %3055 = vmatprep.subr.bf16.mxu1 %v7718_v53  ;;  %v9302_v3 = vpop.f32.mrb[19].mxu1 }
 0x10c   : > { %2937 = vmatmul.mubr.bf16.gmra.mrb[60].mxu1 %v561_v30 }
 0x10d   : > { %2946 = vmatprep.mubr.bf16.mxu1 %v569_v32  ;;  %3056 = vmatpush1.bf16.msra.mxu1 %v7716_v61  ;;  %v471_v61 = vld [vmem:[%s8546_s26 + $0x5c8] sm:$0xff] }
 0x10e   : > { %3057 = vmatprep.subr.bf16.mxu1 %v7721_v0  ;;  %2185 = vmatmul.mubr.bf16.gmra.mrb[36].mxu0 %v575_v10  ;;  %v478_v0 = vld [vmem:[%s8546_s26 + $0x600] sm:$0xff] }
 0x10f   : > { %v9311_v12 = vpop.f32.mrb[20].mxu1  ;;  %2194 = vmatprep.mubr.bf16.mxu0 %v583_v11  ;;  %v604_v5 = vpack.c.bf16 %v478_v0, %v471_v61  ;;  %v290_v61 = vld [vmem:[%s8546_s26 + $0x20] sm:$0xff]  ;;  %v297_v0 = vld [vmem:[%s8546_s26 + $0x58] sm:$0xff] }
 0x110   : > { %v9313_v15 = vpop.f32.mrb[21].mxu1  ;;  %v514_v6 = vpack.c.bf16 %v297_v0, %v290_v61  ;;  %v354_v61 = vld [vmem:[%s8546_s26 + $0x220] sm:$0xff] }
 0x111   : > { %3058 = vmatpush1.bf16.msra.mxu1 %v7719_v9  ;;  %v9315_v17 = vpop.f32.mrb[22].mxu1  ;;  %v485_v9 = vld [vmem:[%s8546_s26 + $0x638] sm:$0xff] }
 0x112   : > { %v9317_v18 = vpop.f32.mrb[23].mxu1 }
 0x114   : > { %2947 = vmatmul.mubr.bf16.gmra.mrb[64].mxu1 %v568_v52 }
 0x115   : > { %2956 = vmatprep.mubr.bf16.mxu1 %v576_v54  ;;  %v456_v54 = vld [vmem:[%s8546_s26 + $0x550] sm:$0xff] }
 0x116   : > { %2195 = vmatmul.mubr.bf16.gmra.mrb[40].mxu0 %v582_v27  ;;  %v596_v4 = vpack.c.bf16 %v463_v58, %v456_v54  ;;  %v617_v54 = vpack.c.bf16 %v505_v47, %v498_v42  ;;  %v340_v42 = vld [vmem:[%s8546_s26 + $0x1b0] sm:$0xff] }
 0x117   : > { %v9323_v29 = vpop.f32.mrb[24].mxu1  ;;  %2204 = vmatprep.mubr.bf16.mxu0 %v590_v28 }
 0x118   : > { %v9325_v30 = vpop.f32.mrb[25].mxu1 }
 0x119   : > { %v9327_v31 = vpop.f32.mrb[26].mxu1 }
 0x11a   : > { %v9329_v32 = vpop.f32.mrb[27].mxu1 }
 0x11c   : > { %2957 = vmatmul.mubr.bf16.gmra.mrb[68].mxu1 %v575_v10  ;;  %v492_v10 = vld [vmem:[%s8546_s26 + $0x670] sm:$0xff] }
 0x11d   : > { %2966 = vmatprep.mubr.bf16.mxu1 %v583_v11  ;;  %v7724_v11 = vld [vmem:[%s10785_s1 + $0x60c] ss:$16 sps:$4 sm:$0xff]   ;;  %v611_v22 = vpack.c.bf16 %v492_v10, %v485_v9  ;;  %v8454_v9 = vld [vmem:[%s10785_s1 + $0x600] ss:$16 sps:$4 sm:$0xff]  }
 0x11e   : > { %2205 = vmatmul.mubr.bf16.gmra.mrb[44].mxu0 %v589_v48  ;;  %3220 = vmatprep.subr.bf16.mxu1 %v7724_v11  ;;  %v304_v10 = vld [vmem:[%s8546_s26 + $0x90] sm:$0xff]  ;;  %v311_v11 = vld [vmem:[%s8546_s26 + $0xc8] sm:$0xff] }
 0x11f   : > { %v9335_v50 = vpop.f32.mrb[28].mxu1  ;;  %2214 = vmatprep.mubr.bf16.mxu0 %v597_v49  ;;  %v521_v25 = vpack.c.bf16 %v311_v11, %v304_v10 }
 0x120   : > { %v9337_v51 = vpop.f32.mrb[29].mxu1 }
 0x121   : > { %v9339_v52 = vpop.f32.mrb[30].mxu1 }
 0x122   : > { %v9341_v53 = vpop.f32.mrb[31].mxu1 }
 0x124   : > { %2967 = vmatmul.mubr.bf16.gmra.mrb[72].mxu1 %v582_v27  ;;  %v499_v27 = vld [vmem:[%s8546_s26 + $0x6a8] sm:$0xff] }
 0x125   : > { %2976 = vmatprep.mubr.bf16.mxu1 %v590_v28  ;;  %v506_v28 = vld [vmem:[%s8546_s26 + $0x6e0] sm:$0xff] }
 0x126   : > { %2215 = vmatmul.mubr.bf16.gmra.mrb[48].mxu0 %v596_v4  ;;  %v618_v37 = vpack.c.bf16 %v506_v28, %v499_v27  ;;  %v7722_v27 = vld [vmem:[%s10785_s1 + $0x608] ss:$16 sps:$4 sm:$0xff]   ;;  %v318_v28 = vld [vmem:[%s8546_s26 + $0x100] sm:$0xff] }
 0x127   : > { %2224 = vmatprep.mubr.bf16.mxu0 %v604_v5 }
 0x12c   : > { %2977 = vmatmul.mubr.bf16.gmra.mrb[76].mxu1 %v589_v48  ;;  %v291_v48 = vld [vmem:[%s8546_s26 + $0x28] sm:$0xff] }
 0x12d   : > { %2986 = vmatprep.mubr.bf16.mxu1 %v597_v49  ;;  %v298_v49 = vld [vmem:[%s8546_s26 + $0x60] sm:$0xff] }
 0x12e   : > { %2225 = vmatmul.mubr.bf16.gmra.mrb[52].mxu0 %v603_v20  ;;  %v515_v58 = vpack.c.bf16 %v298_v49, %v291_v48  ;;  %v332_v49 = vld [vmem:[%s8546_s26 + $0x170] sm:$0xff] }
 0x12f   : > { %2234 = vmatprep.mubr.bf16.mxu0 %v611_v22 }
 0x134   : > { %2987 = vmatmul.mubr.bf16.gmra.mrb[80].mxu1 %v596_v4  ;;  %v305_v4 = vld [vmem:[%s8546_s26 + $0x98] sm:$0xff] }
 0x135   : > { %2996 = vmatprep.mubr.bf16.mxu1 %v604_v5  ;;  %v312_v5 = vld [vmem:[%s8546_s26 + $0xd0] sm:$0xff] }
 0x136   : > { %2235 = vmatmul.mubr.bf16.gmra.mrb[56].mxu0 %v610_v33  ;;  %v522_v8 = vpack.c.bf16 %v312_v5, %v305_v4  ;;  %v346_v5 = vld [vmem:[%s8546_s26 + $0x1e0] sm:$0xff] }
 0x137   : > { %2244 = vmatprep.mubr.bf16.mxu0 %v618_v37 }
 0x13c   : > { %2997 = vmatmul.mubr.bf16.gmra.mrb[84].mxu1 %v603_v20  ;;  %v319_v20 = vld [vmem:[%s8546_s26 + $0x108] sm:$0xff] }
 0x13d   : > { %3006 = vmatprep.mubr.bf16.mxu1 %v611_v22  ;;  %v326_v22 = vld [vmem:[%s8546_s26 + $0x140] sm:$0xff] }
 0x13e   : > { %2245 = vmatmul.mubr.bf16.gmra.mrb[60].mxu0 %v617_v54  ;;  %v529_v26 = vpack.c.bf16 %v326_v22, %v319_v20  ;;  %v360_v20 = vld [vmem:[%s8546_s26 + $0x250] sm:$0xff]  ;;  %v367_v22 = vld [vmem:[%s8546_s26 + $0x288] sm:$0xff] }
 0x13f   : > { %2287 = vmatprep.mubr.bf16.mxu0 %v515_v58 }
 0x144   : > { %3007 = vmatmul.mubr.bf16.gmra.mrb[88].mxu1 %v610_v33  ;;  %v325_v33 = vld [vmem:[%s8546_s26 + $0x138] sm:$0xff] }
 0x145   : > { %3016 = vmatprep.mubr.bf16.mxu1 %v618_v37  ;;  %v333_v37 = vld [vmem:[%s8546_s26 + $0x178] sm:$0xff]  ;;  %v528_v47 = vpack.c.bf16 %v325_v33, %v318_v28  ;;  %v374_v33 = vld [vmem:[%s8546_s26 + $0x2c0] sm:$0xff] }
 0x146   : > { %2288 = vmatmul.mubr.bf16.vlgmr.msra.gmra.mrb[0].mxu0 %v514_v6  ;;  %v536_v48 = vpack.c.bf16 %v340_v42, %v333_v37  ;;  %v381_v37 = vld [vmem:[%s8546_s26 + $0x2f8] sm:$0xff] }
 0x147   : > { %2449 = vmatpush1.bf16.msra.mxu0 %v8454_v9  ;;  %2297 = vmatprep.mubr.bf16.mxu0 %v522_v8  ;;  %v368_v9 = vld [vmem:[%s8546_s26 + $0x290] sm:$0xff]  ;;  %v389_v42 = vld [vmem:[%s8546_s26 + $0x338] sm:$0xff] }
 0x14c   : > { %3017 = vmatmul.mubr.bf16.gmra.mrb[92].mxu1 %v617_v54  ;;  %v339_v54 = vld [vmem:[%s8546_s26 + $0x1a8] sm:$0xff] }
 0x14d   : > { %3059 = vmatprep.mubr.bf16.mxu1 %v515_v58  ;;  %v347_v58 = vld [vmem:[%s8546_s26 + $0x1e8] sm:$0xff]  ;;  %v535_v0 = vpack.c.bf16 %v339_v54, %v332_v49  ;;  %v388_v54 = vld [vmem:[%s8546_s26 + $0x330] sm:$0xff] }
 0x14e   : > { %2298 = vmatmul.mubr.bf16.gmra.mrb[4].mxu0 %v521_v25  ;;  %v543_v4 = vpack.c.bf16 %v354_v61, %v347_v58  ;;  %v395_v58 = vld [vmem:[%s8546_s26 + $0x368] sm:$0xff] }
 0x14f   : > { %2307 = vmatprep.mubr.bf16.mxu0 %v529_v26  ;;  %v403_v61 = vld [vmem:[%s8546_s26 + $0x3a8] sm:$0xff] }
 0x154   : > { %3060 = vmatmul.mubr.bf16.vlgmr.msra.gmra.mrb[32].mxu1 %v514_v6  ;;  %v353_v6 = vld [vmem:[%s8546_s26 + $0x218] sm:$0xff] }
 0x155   : > { %3069 = vmatprep.mubr.bf16.mxu1 %v522_v8  ;;  %3221 = vmatpush1.bf16.msra.mxu1 %v7722_v27  ;;  %v361_v8 = vld [vmem:[%s8546_s26 + $0x258] sm:$0xff]  ;;  %v542_v10 = vpack.c.bf16 %v353_v6, %v346_v5  ;;  %v549_v27 = vpack.c.bf16 %v367_v22, %v360_v20  ;;  %v402_v6 = vld [vmem:[%s8546_s26 + $0x3a0] sm:$0xff]  ;;  %v416_v22 = vld [vmem:[%s8546_s26 + $0x410] sm:$0xff] }
 0x156   : > { %2308 = vmatmul.mubr.bf16.gmra.mrb[8].mxu0 %v528_v47  ;;  %v550_v11 = vpack.c.bf16 %v368_v9, %v361_v8  ;;  %v409_v8 = vld [vmem:[%s8546_s26 + $0x3d8] sm:$0xff] }
 0x157   : > { %2317 = vmatprep.mubr.bf16.mxu0 %v536_v48  ;;  %v417_v9 = vld [vmem:[%s8546_s26 + $0x418] sm:$0xff] }
 0x15c   : > { %3070 = vmatmul.mubr.bf16.gmra.mrb[36].mxu1 %v521_v25  ;;  %v375_v25 = vld [vmem:[%s8546_s26 + $0x2c8] sm:$0xff] }
 0x15d   : > { %3079 = vmatprep.mubr.bf16.mxu1 %v529_v26  ;;  %v382_v26 = vld [vmem:[%s8546_s26 + $0x300] sm:$0xff] }
 0x15e   : > { %2318 = vmatmul.mubr.bf16.gmra.mrb[12].mxu0 %v535_v0  ;;  %v557_v28 = vpack.c.bf16 %v382_v26, %v375_v25  ;;  %v423_v25 = vld [vmem:[%s8546_s26 + $0x448] sm:$0xff] }
 0x15f   : > { %2327 = vmatprep.mubr.bf16.mxu0 %v543_v4  ;;  %v431_v26 = vld [vmem:[%s8546_s26 + $0x488] sm:$0xff] }
 0x164   : > { %3080 = vmatmul.mubr.bf16.gmra.mrb[40].mxu1 %v528_v47  ;;  %v396_v47 = vld [vmem:[%s8546_s26 + $0x370] sm:$0xff] }
 0x165   : > { %3089 = vmatprep.mubr.bf16.mxu1 %v536_v48  ;;  %v556_v48 = vpack.c.bf16 %v381_v37, %v374_v33  ;;  %v564_v49 = vpack.c.bf16 %v396_v47, %v389_v42  ;;  %v430_v37 = vld [vmem:[%s8546_s26 + $0x480] sm:$0xff]  ;;  %v437_v42 = vld [vmem:[%s8546_s26 + $0x4b8] sm:$0xff] }
 0x166   : > { %2328 = vmatmul.mubr.bf16.gmra.mrb[16].mxu0 %v542_v10  ;;  %v445_v47 = vld [vmem:[%s8546_s26 + $0x4f8] sm:$0xff] }
 0x167   : > { %2337 = vmatprep.mubr.bf16.mxu0 %v550_v11 }
 0x16c   : > { %3090 = vmatmul.mubr.bf16.gmra.mrb[44].mxu1 %v535_v0  ;;  %v410_v0 = vld [vmem:[%s8546_s26 + $0x3e0] sm:$0xff] }
 0x16d   : > { %3099 = vmatprep.mubr.bf16.mxu1 %v543_v4  ;;  %v563_v4 = vpack.c.bf16 %v395_v58, %v388_v54  ;;  %v571_v5 = vpack.c.bf16 %v410_v0, %v403_v61  ;;  %v444_v58 = vld [vmem:[%s8546_s26 + $0x4f0] sm:$0xff]  ;;  %v451_v61 = vld [vmem:[%s8546_s26 + $0x528] sm:$0xff] }
 0x16e   : > { %2338 = vmatmul.mubr.bf16.gmra.mrb[20].mxu0 %v549_v27  ;;  %v459_v0 = vld [vmem:[%s8546_s26 + $0x568] sm:$0xff] }
 0x16f   : > { %2347 = vmatprep.mubr.bf16.mxu0 %v557_v28 }
 0x174   : > { %3100 = vmatmul.mubr.bf16.gmra.mrb[48].mxu1 %v542_v10  ;;  %v424_v10 = vld [vmem:[%s8546_s26 + $0x450] sm:$0xff] }
 0x175   : > { %3109 = vmatprep.mubr.bf16.mxu1 %v550_v11  ;;  %v570_v11 = vpack.c.bf16 %v409_v8, %v402_v6  ;;  %v578_v20 = vpack.c.bf16 %v424_v10, %v417_v9  ;;  %v458_v8 = vld [vmem:[%s8546_s26 + $0x560] sm:$0xff]  ;;  %v465_v9 = vld [vmem:[%s8546_s26 + $0x598] sm:$0xff] }
 0x176   : > { %2348 = vmatmul.mubr.bf16.gmra.mrb[24].mxu0 %v556_v48  ;;  %v473_v10 = vld [vmem:[%s8546_s26 + $0x5d8] sm:$0xff] }
 0x177   : > { %2357 = vmatprep.mubr.bf16.mxu0 %v564_v49 }
 0x17c   : > { %3110 = vmatmul.mubr.bf16.gmra.mrb[52].mxu1 %v549_v27  ;;  %v438_v27 = vld [vmem:[%s8546_s26 + $0x4c0] sm:$0xff] }
 0x17d   : > { %3119 = vmatprep.mubr.bf16.mxu1 %v557_v28  ;;  %v577_v28 = vpack.c.bf16 %v423_v25, %v416_v22  ;;  %v585_v33 = vpack.c.bf16 %v438_v27, %v431_v26  ;;  %v472_v25 = vld [vmem:[%s8546_s26 + $0x5d0] sm:$0xff]  ;;  %v479_v26 = vld [vmem:[%s8546_s26 + $0x608] sm:$0xff] }
 0x17e   : > { %2358 = vmatmul.mubr.bf16.gmra.mrb[28].mxu0 %v563_v4  ;;  %v487_v27 = vld [vmem:[%s8546_s26 + $0x648] sm:$0xff] }
 0x17f   : > { %2367 = vmatprep.mubr.bf16.mxu0 %v571_v5 }
 0x184   : > { %3120 = vmatmul.mubr.bf16.gmra.mrb[56].mxu1 %v556_v48  ;;  %v452_v48 = vld [vmem:[%s8546_s26 + $0x530] sm:$0xff] }
 0x185   : > { %3129 = vmatprep.mubr.bf16.mxu1 %v564_v49  ;;  %v584_v49 = vpack.c.bf16 %v437_v42, %v430_v37  ;;  %v592_v54 = vpack.c.bf16 %v452_v48, %v445_v47  ;;  %v605_v37 = vpack.c.bf16 %v479_v26, %v472_v25  ;;  %v486_v47 = vld [vmem:[%s8546_s26 + $0x640] sm:$0xff]  ;;  %v493_v48 = vld [vmem:[%s8546_s26 + $0x678] sm:$0xff]  ;;  %v320_v26 = vld [vmem:[%s8546_s26 + $0x110] sm:$0xff] }
 0x186   : > { %2368 = vmatmul.mubr.bf16.gmra.mrb[32].mxu0 %v570_v11  ;;  %v7727_v25 = vld [vmem:[%s10787_s3 + $0xe0] ss:$12 sps:$4 sm:$0xff]  }
 0x187   : > { %2377 = vmatprep.mubr.bf16.mxu0 %v578_v20 }
 0x18c   : > { %3130 = vmatmul.mubr.bf16.gmra.mrb[60].mxu1 %v563_v4  ;;  %v466_v4 = vld [vmem:[%s8546_s26 + $0x5a0] sm:$0xff] }
 0x18d   : > { %3139 = vmatprep.mubr.bf16.mxu1 %v571_v5  ;;  %v591_v5 = vpack.c.bf16 %v451_v61, %v444_v58  ;;  %v599_v6 = vpack.c.bf16 %v466_v4, %v459_v0  ;;  %v612_v58 = vpack.c.bf16 %v493_v48, %v486_v47  ;;  %v500_v0 = vld [vmem:[%s8546_s26 + $0x6b0] sm:$0xff]  ;;  %v507_v4 = vld [vmem:[%s8546_s26 + $0x6e8] sm:$0xff]  ;;  %v334_v47 = vld [vmem:[%s8546_s26 + $0x180] sm:$0xff] }
 0x18e   : > { %2378 = vmatmul.mubr.bf16.gmra.mrb[36].mxu0 %v577_v28  ;;  %v341_v48 = vld [vmem:[%s8546_s26 + $0x1b8] sm:$0xff] }
 0x18f   : > { %2387 = vmatprep.mubr.bf16.mxu0 %v585_v33 }
 0x194   : > { %3140 = vmatmul.mubr.bf16.gmra.mrb[64].mxu1 %v570_v11  ;;  %v480_v11 = vld [vmem:[%s8546_s26 + $0x610] sm:$0xff] }
 0x195   : > { %3149 = vmatprep.mubr.bf16.mxu1 %v578_v20  ;;  %v598_v20 = vpack.c.bf16 %v465_v9, %v458_v8  ;;  %v606_v22 = vpack.c.bf16 %v480_v11, %v473_v10  ;;  %v299_v8 = vld [vmem:[%s8546_s26 + $0x68] sm:$0xff]  ;;  %v306_v10 = vld [vmem:[%s8546_s26 + $0xa0] sm:$0xff]  ;;  %v313_v11 = vld [vmem:[%s8546_s26 + $0xd8] sm:$0xff] }
 0x196   : > { %2388 = vmatmul.mubr.bf16.gmra.mrb[40].mxu0 %v584_v49 }
 0x197   : > { %2397 = vmatprep.mubr.bf16.mxu0 %v592_v54 }
 0x19c   : > { %3150 = vmatmul.mubr.bf16.gmra.mrb[68].mxu1 %v577_v28  ;;  %v494_v28 = vld [vmem:[%s8546_s26 + $0x680] sm:$0xff] }
 0x19d   : > { %3159 = vmatprep.mubr.bf16.mxu1 %v585_v33  ;;  %v7725_v33 = vld [vmem:[%s10787_s3 + $0xc8] ss:$12 sps:$4 sm:$0xff]   ;;  %v613_v42 = vpack.c.bf16 %v494_v28, %v487_v27  ;;  %v7728_v28 = vld [vmem:[%s10787_s3 + $0x20] ss:$12 sps:$4 sm:$0xff]  }
 0x19e   : > { %2398 = vmatmul.mubr.bf16.gmra.mrb[44].mxu0 %v591_v5  ;;  %6371 = vmatprep.subr.bf16.mxu1 %v7725_v33  ;;  %v327_v27 = vld [vmem:[%s8546_s26 + $0x148] sm:$0xff] }
 0x19f   : > { %2407 = vmatprep.mubr.bf16.mxu0 %v599_v6  ;;  %v530_v33 = vpack.c.bf16 %v327_v27, %v320_v26  ;;  %v7737_v26 = vld [vmem:[%s10787_s3 + $0x68] ss:$12 sps:$4 sm:$0xff]   ;;  %v7738_v27 = vld [vmem:[%s10787_s3 + $0x18] ss:$12 sps:$4 sm:$0xff]  }
 0x1a4   : > { %3160 = vmatmul.mubr.bf16.gmra.mrb[72].mxu1 %v584_v49  ;;  %v501_v49 = vld [vmem:[%s8546_s26 + $0x6b8] sm:$0xff] }
 0x1a5   : > { %3169 = vmatprep.mubr.bf16.mxu1 %v592_v54  ;;  %v508_v54 = vld [vmem:[%s8546_s26 + $0x6f0] sm:$0xff] }
 0x1a6   : > { %2408 = vmatmul.mubr.bf16.gmra.mrb[48].mxu0 %v598_v20  ;;  %v620_v61 = vpack.c.bf16 %v508_v54, %v501_v49  ;;  %v537_v49 = vpack.c.bf16 %v341_v48, %v334_v47  ;;  %v348_v54 = vld [vmem:[%s8546_s26 + $0x1f0] sm:$0xff]  ;;  %v397_v47 = vld [vmem:[%s8546_s26 + $0x378] sm:$0xff] }
 0x1a7   : > { %2417 = vmatprep.mubr.bf16.mxu0 %v606_v22  ;;  %v7746_v48 = vld [vmem:[%s10787_s3 + $0x4c] ss:$12 sps:$4 sm:$0xff]  }
 0x1ac   : > { %3170 = vmatmul.mubr.bf16.gmra.mrb[76].mxu1 %v591_v5  ;;  %v619_v5 = vpack.c.bf16 %v507_v4, %v500_v0  ;;  %v7732_v0 = vld [vmem:[%s10787_s3 + $0x50] ss:$12 sps:$4 sm:$0xff]  }
 0x1ad   : > { %3179 = vmatprep.mubr.bf16.mxu1 %v599_v6  ;;  %v292_v6 = vld [vmem:[%s8546_s26 + $0x30] sm:$0xff] }
 0x1ae   : > { %2418 = vmatmul.mubr.bf16.gmra.mrb[52].mxu0 %v605_v37  ;;  %v516_v9 = vpack.c.bf16 %v299_v8, %v292_v6  ;;  %v369_v6 = vld [vmem:[%s8546_s26 + $0x298] sm:$0xff] }
 0x1af   : > { %2427 = vmatprep.mubr.bf16.mxu0 %v613_v42 }
 0x1b4   : > { %3180 = vmatmul.mubr.bf16.gmra.mrb[80].mxu1 %v598_v20  ;;  %v523_v20 = vpack.c.bf16 %v313_v11, %v306_v10  ;;  %v7733_v10 = vld [vmem:[%s10787_s3] ss:$12 sps:$4 sm:$0xff]   ;;  %v376_v11 = vld [vmem:[%s8546_s26 + $0x2d0] sm:$0xff] }
 0x1b5   : > { %3189 = vmatprep.mubr.bf16.mxu1 %v606_v22  ;;  %v7726_v22 = vld [vmem:[%s10787_s3 + $0x8] ss:$12 sps:$4 sm:$0xff]  }
 0x1b6   : > { %2428 = vmatmul.mubr.bf16.gmra.mrb[56].mxu0 %v612_v58 }
 0x1b7   : > { %2437 = vmatprep.mubr.bf16.mxu0 %v620_v61 }
 0x1bc   : > { %3190 = vmatmul.mubr.bf16.gmra.mrb[84].mxu1 %v605_v37  ;;  %v7729_v37 = vld [vmem:[%s10787_s3 + $0xf8] ss:$12 sps:$4 sm:$0xff]  }
 0x1bd   : > { %3199 = vmatprep.mubr.bf16.mxu1 %v613_v42  ;;  %v7730_v42 = vld [vmem:[%s10787_s3 + $0x38] ss:$12 sps:$4 sm:$0xff]  }
 0x1be   : > { %2438 = vmatmul.mubr.bf16.gmra.mrb[60].mxu0 %v619_v5 }
 0x1bf   : > { %2480 = vmatprep.mubr.bf16.mxu0 %v8463_v2 }
 0x1c4   : > { %3200 = vmatmul.mubr.bf16.gmra.mrb[88].mxu1 %v612_v58  ;;  %v355_v58 = vld [vmem:[%s8546_s26 + $0x228] sm:$0xff] }
 0x1c5   : > { %3209 = vmatprep.mubr.bf16.mxu1 %v620_v61  ;;  %v7731_v61 = vld [vmem:[%s10787_s3 + $0x110] ss:$12 sps:$4 sm:$0xff]   ;;  %v544_v4 = vpack.c.bf16 %v355_v58, %v348_v54 }
 0x1c6   : > { %6216 = vmatmul.mubr.msk.bf16.vlgmr.msra.gmra.mrb[0].mxu0 %vm1820_vm0, %v516_v9  ;;  %v7749_v58 = vld [vmem:[%s10787_s3 + $0x64] ss:$12 sps:$4 sm:$0xff]  }
 0x1c7   : > { %2490 = vmatprep.mubr.bf16.mxu0 %v8463_v2 }
 0x1cc   : > { %3210 = vmatmul.mubr.bf16.gmra.mrb[92].mxu1 %v619_v5  ;;  %v362_v5 = vld [vmem:[%s8546_s26 + $0x260] sm:$0xff] }
 0x1cd   : > { %3252 = vmatprep.mubr.bf16.mxu1 %v8463_v2  ;;  %v551_v8 = vpack.c.bf16 %v369_v6, %v362_v5  ;;  %v7751_v5 = vld [vmem:[%s10787_s3 + $0x80] ss:$12 sps:$4 sm:$0xff]   ;;  %v7752_v6 = vld [vmem:[%s10787_s3 + $0x78] ss:$12 sps:$4 sm:$0xff]  }
 0x1ce   : > { %6217 = vmatmul.mubr.msk.bf16.gmra.mrb[4].mxu0 %vm1820_vm0, %v523_v20 }
 0x1cf   : > { %2500 = vmatprep.mubr.bf16.mxu0 %v8463_v2 }
 0x1d4   : > { %6232 = vmatmul.mubr.msk.bf16.vlgmr.msra.gmra.mrb[32].mxu1 %vm1820_vm0, %v516_v9  ;;  %v7735_v9 = vld [vmem:[%s10787_s3 + $0x4] ss:$12 sps:$4 sm:$0xff]  }
 0x1d5   : > { %3262 = vmatprep.mubr.bf16.mxu1 %v8463_v2  ;;  %6372 = vmatpush3.bf16.msra.mxu1 %v7726_v22  ;;  %v7740_v22 = vld [vmem:[%s10787_s3 + $0x1c] ss:$12 sps:$4 sm:$0xff]  }
 0x1d6   : > { %6373 = vmatprep.subr.bf16.mxu1 %v7727_v25  ;;  %6218 = vmatmul.mubr.msk.bf16.gmra.mrb[8].mxu0 %vm1820_vm0, %v530_v33  ;;  %v7736_v25 = vld [vmem:[%s10787_s3 + $0x128] ss:$12 sps:$4 sm:$0xff]  }
 0x1d7   : > { %2510 = vmatprep.mubr.bf16.mxu0 %v8463_v2  ;;  %4262 = vmatprep.subr.bf16.mxu0 %v7735_v9  ;;  %v7755_v9 = vld [vmem:[%s10787_s3 + $0x90] ss:$12 sps:$4 sm:$0xff]  }
 0x1d8   : > { %4263 = vmatpush1.bf16.msra.mxu0 %v7733_v10  ;;  %v7760_v10 = vld [vmem:[%s10787_s3 + $0xac] ss:$12 sps:$4 sm:$0xff]  }
 0x1d9   : > { %6374 = vmatpush3.bf16.msra.mxu1 %v7728_v28  ;;  %4264 = vmatprep.subr.bf16.mxu0 %v7740_v22  ;;  %v7761_v22 = vld [vmem:[%s10787_s3 + $0xc0] ss:$12 sps:$4 sm:$0xff]  }
 0x1da   : > { %6375 = vmatprep.subr.bf16.mxu1 %v7729_v37  ;;  %v7741_v37 = vld [vmem:[%s10787_s3 + $0x30] ss:$12 sps:$4 sm:$0xff]  }
 0x1dc   : > { %6233 = vmatmul.mubr.msk.bf16.gmra.mrb[36].mxu1 %vm1820_vm0, %v523_v20  ;;  %v383_v20 = vld [vmem:[%s8546_s26 + $0x308] sm:$0xff]  ;;  %4265 = vmatpush1.bf16.msra.mxu0 %v7738_v27  ;;  %v7765_v27 = vld [vmem:[%s10787_s3 + $0x98] ss:$12 sps:$4 sm:$0xff]  }
 0x1dd   : > { %3272 = vmatprep.mubr.bf16.mxu1 %v8463_v2  ;;  %6376 = vmatpush3.bf16.msra.mxu1 %v7730_v42  ;;  %v558_v28 = vpack.c.bf16 %v383_v20, %v376_v11  ;;  %v390_v42 = vld [vmem:[%s8546_s26 + $0x340] sm:$0xff]  ;;  %v7758_v11 = vld [vmem:[%s10787_s3 + $0xa8] ss:$12 sps:$4 sm:$0xff]  }
 0x1de   : > { %6219 = vmatmul.mubr.msk.bf16.gmra.mrb[12].mxu0 %vm1820_vm0, %v537_v49  ;;  %6377 = vmatprep.subr.bf16.mxu1 %v7731_v61  ;;  %v565_v54 = vpack.c.bf16 %v397_v47, %v390_v42  ;;  %v7747_v61 = vld [vmem:[%s10787_s3 + $0x60] ss:$12 sps:$4 sm:$0xff]   ;;  %v7763_v20 = vld [vmem:[%s10787_s3 + $0xc4] ss:$12 sps:$4 sm:$0xff]   ;;  %v7772_v42 = vld [vmem:[%s10787_s3 + $0x108] ss:$12 sps:$4 sm:$0xff]  }
 0x1df   : > { %2520 = vmatprep.mubr.bf16.mxu0 %v8463_v2  ;;  %v7777_v47 = vld [vmem:[%s10787_s3 + $0x124] ss:$12 sps:$4 sm:$0xff]  }
 0x1e1   : > { %6378 = vmatpush3.bf16.msra.mxu1 %v7732_v0  ;;  %v7754_v0 = vld [vmem:[%s10787_s3 + $0x7c] ss:$12 sps:$4 sm:$0xff]  }
 0x1e2   : > { %6379 = vmatprep.subr.bf16.mxu1 %v7736_v25  ;;  %v7768_v25 = vld [vmem:[%s10787_s3 + $0xdc] ss:$12 sps:$4 sm:$0xff]  }
 0x1e4   : > { %6234 = vmatmul.mubr.msk.bf16.gmra.mrb[40].mxu1 %vm1820_vm0, %v530_v33  ;;  %v7743_v33 = vld [vmem:[%s10787_s3 + $0x34] ss:$12 sps:$4 sm:$0xff]  }
 0x1e5   : > { %3282 = vmatprep.mubr.bf16.mxu1 %v8463_v2  ;;  %6380 = vmatpush3.bf16.msra.mxu1 %v7737_v26  ;;  %v7764_v26 = vld [vmem:[%s10787_s3 + $0x158] ss:$12 sps:$4 sm:$0xff]  }
 0x1e6   : > { %6220 = vmatmul.mubr.msk.bf16.gmra.mrb[16].mxu0 %vm1820_vm0, %v544_v4  ;;  %4266 = vmatprep.subr.bf16.mxu0 %v7743_v33  ;;  %v7769_v33 = vld [vmem:[%s10787_s3 + $0xf0] ss:$12 sps:$4 sm:$0xff]  }
 0x1e7   : > { %2530 = vmatprep.mubr.bf16.mxu0 %v8463_v2  ;;  %4267 = vmatpush1.bf16.msra.mxu0 %v7741_v37  ;;  %v7774_v37 = vld [vmem:[%s10787_s3 + $0x10c] ss:$12 sps:$4 sm:$0xff]  }
 0x1e8   : > { %4268 = vmatprep.subr.bf16.mxu0 %v7746_v48  ;;  %v7778_v48 = vld [vmem:[%s10787_s3 + $0x170] ss:$12 sps:$4 sm:$0xff]  }
 0x1ec   : > { %6235 = vmatmul.mubr.msk.bf16.gmra.mrb[44].mxu1 %vm1820_vm0, %v537_v49  ;;  %v7744_v49 = vld [vmem:[%s10787_s3 + $0x48] ss:$12 sps:$4 sm:$0xff]  }
 0x1ed   : > { %3292 = vmatprep.mubr.bf16.mxu1 %v8463_v2  ;;  %4269 = vmatpush1.bf16.msra.mxu0 %v7744_v49  ;;  %v7779_v49 = vld [vmem:[%s10787_s3 + $0xb0] ss:$12 sps:$4 sm:$0xff]  }
 0x1ee   : > { %6221 = vmatmul.mubr.msk.bf16.gmra.mrb[20].mxu0 %vm1820_vm0, %v551_v8  ;;  %4270 = vmatprep.subr.bf16.mxu0 %v7749_v58  ;;  %v7780_v58 = vld [vmem:[%s10787_s3 + $0x138] ss:$12 sps:$4 sm:$0xff]  }
 0x1ef   : > { %2540 = vmatprep.mubr.bf16.mxu0 %v8463_v2 }
 0x1f1   : > { %4271 = vmatpush1.bf16.msra.mxu0 %v7747_v61  ;;  %v7785_v61 = vld [vmem:[%s10787_s3 + $0x154] ss:$12 sps:$4 sm:$0xff]  }
 0x1f2   : > { %4272 = vmatprep.subr.bf16.mxu0 %v7754_v0  ;;  %v7788_v0 = vld [vmem:[%s10787_s3 + $0x16c] ss:$12 sps:$4 sm:$0xff]  }
 0x1f4   : > { %6236 = vmatmul.mubr.msk.bf16.gmra.mrb[48].mxu1 %vm1820_vm0, %v544_v4  ;;  %v7750_v4 = vld [vmem:[%s10787_s3 + $0x140] ss:$12 sps:$4 sm:$0xff]  }
 0x1f5   : > { %3302 = vmatprep.mubr.bf16.mxu1 %v8463_v2  ;;  %6381 = vmatprep.subr.bf16.mxu1 %v7750_v4  ;;  %v7786_v4 = vld [vmem:[%s10787_s3 + $0x168] ss:$12 sps:$4 sm:$0xff]  }
 0x1f6   : > { %6222 = vmatmul.mubr.msk.bf16.gmra.mrb[24].mxu0 %vm1820_vm0, %v558_v28  ;;  %6382 = vmatpush3.bf16.msra.mxu1 %v7751_v5  ;;  %v7792_v5 = vld [vmem:[%s10787_s3 + $0x184] ss:$12 sps:$4 sm:$0xff]  }
 0x1f7   : > { %2550 = vmatprep.mubr.bf16.mxu0 %v8463_v2  ;;  %4273 = vmatpush1.bf16.msra.mxu0 %v7752_v6 }
 0x1f8   : > { %6383 = vmatprep.subr.bf16.mxu1 %v7764_v26 }
 0x1fa   : > { %6384 = vmatpush3.bf16.msra.mxu1 %v7765_v27 }
 0x1fb   : > { %6385 = vmatprep.subr.bf16.mxu1 %v7778_v48 }
 0x1fc   : > { %6237 = vmatmul.mubr.msk.bf16.gmra.mrb[52].mxu1 %vm1820_vm0, %v551_v8  ;;  %v7757_v8 = vld [vmem:[%s10787_s3 + $0x94] ss:$12 sps:$4 sm:$0xff]  }
 0x1fd   : > { %3312 = vmatprep.mubr.bf16.mxu1 %v8463_v2  ;;  %4274 = vmatprep.subr.bf16.mxu0 %v7757_v8 }
 0x1fe   : > { %6223 = vmatmul.mubr.msk.bf16.gmra.mrb[28].mxu0 %vm1820_vm0, %v565_v54  ;;  %6386 = vmatpush3.bf16.msra.mxu1 %v7779_v49 }
 0x1ff   : > { %4275 = vmatpush1.bf16.msra.mxu0 %v7755_v9  ;;  %v9658_v9 = vld [vmem:[%s10786_s2] sm:$0xf] }
 0x200   : > { %4276 = vmatprep.subr.bf16.mxu0 %v7760_v10 }
 0x203   : > { %4277 = vmatpush1.bf16.msra.mxu0 %v7758_v11 }
 0x204   : > { %6238 = vmatmul.mubr.msk.bf16.gmra.mrb[56].mxu1 %vm1820_vm0, %v558_v28  ;;  %4278 = vmatprep.subr.bf16.mxu0 %v7763_v20  ;;  %v7766_v28 = vld [vmem:[%s10787_s3 + $0xd8] ss:$12 sps:$4 sm:$0xff]  }
 0x205   : > { %3322 = vmatprep.mubr.bf16.mxu1 %v8463_v2 }
 0x207   : > { %4279 = vmatpush1.bf16.msra.mxu0 %v7761_v22 }
 0x208   : > { %4280 = vmatprep.subr.bf16.mxu0 %v7768_v25 }
 0x20b   : > { %4281 = vmatpush1.bf16.msra.mxu0 %v7766_v28 }
 0x20c   : > { %6239 = vmatmul.mubr.msk.bf16.gmra.mrb[60].mxu1 %vm1820_vm0, %v565_v54  ;;  %v7782_v54 = vld [vmem:[%s10787_s3 + $0x13c] ss:$12 sps:$4 sm:$0xff]  }
 0x20d   : > { %3332 = vmatprep.mubr.bf16.mxu1 %v8463_v2 }
 0x214   : > { %6240 = vmatmul.mubr.msk.bf16.gmra.mrb[64].mxu1 %vm1820_vm0, %v8556_v14  ;;  %v7771_v14 = vld [vmem:[%s10787_s3 + $0xf4] ss:$12 sps:$4 sm:$0xff]  }
 0x215   : > { %3342 = vmatprep.mubr.bf16.mxu1 %v8463_v2  ;;  %4282 = vmatprep.subr.bf16.mxu0 %v7771_v14 }
 0x216   : > { %4283 = vmatpush1.bf16.msra.mxu0 %v7769_v33 }
 0x217   : > { %4284 = vmatprep.subr.bf16.mxu0 %v7774_v37 }
 0x21a   : > { %4285 = vmatpush1.bf16.msra.mxu0 %v7772_v42 }
 0x21b   : > { %4286 = vmatprep.subr.bf16.mxu0 %v7777_v47 }
 0x21c   : > { %6241 = vmatmul.mubr.msk.bf16.gmra.mrb[68].mxu1 %vm1820_vm0, %v8581_v23  ;;  %v7775_v23 = vld [vmem:[%s10787_s3 + $0x120] ss:$12 sps:$4 sm:$0xff]  }
 0x21d   : > { %3352 = vmatprep.mubr.bf16.mxu1 %v8463_v2 }
 0x21e   : > { %4287 = vmatpush1.bf16.msra.mxu0 %v7775_v23 }
 0x21f   : > { %4288 = vmatprep.subr.bf16.mxu0 %v7782_v54 }
 0x222   : > { %4289 = vmatpush1.bf16.msra.mxu0 %v7780_v58 }
 0x223   : > { %4290 = vmatprep.subr.bf16.mxu0 %v7785_v61 }
 0x224   : > { %6242 = vmatmul.mubr.msk.bf16.gmra.mrb[72].mxu1 %vm1820_vm0, %v8612_v34  ;;  %v7783_v34 = vld [vmem:[%s10787_s3 + $0x150] ss:$12 sps:$4 sm:$0xff]  }
 0x225   : > { %3362 = vmatprep.mubr.bf16.mxu1 %v8463_v2 }
 0x226   : > { %4291 = vmatpush1.bf16.msra.mxu0 %v7783_v34 }
 0x227   : > { %4292 = vmatprep.subr.bf16.mxu0 %v7788_v0 }
 0x22a   : > { %4293 = vmatpush1.bf16.msra.mxu0 %v7786_v4 }
 0x22b   : > { %4455 = vmatprep.subr.bf16.mxu0 %v7792_v5 }
 0x22c   : > { %6243 = vmatmul.mubr.msk.bf16.gmra.mrb[76].mxu1 %vm1820_vm0, %v8643_v45  ;;  %v7789_v45 = vld [vmem:[%s10787_s3 + $0x248] ss:$12 sps:$4 sm:$0xff]  }
 0x22d   : > { %3372 = vmatprep.mubr.bf16.mxu1 %v8463_v2  ;;  %6483 = vmatprep.subr.bf16.mxu1 %v7789_v45 }
 0x234   : > { %6244 = vmatmul.mubr.msk.bf16.gmra.mrb[80].mxu1 %vm1820_vm0, %v8674_v56  ;;  %v820_v56 = vlaneseq }
 0x235   : > { %3382 = vmatprep.mubr.bf16.mxu1 %v8463_v2 }
 0x236   : > { %v9652_v6 = vshrl.u32 %v820_v56, 7 }
 0x238   : > { %v822_v8 = vsub.s32 0, %v9652_v6 }
 0x23c   : > { %6245 = vmatmul.mubr.msk.bf16.gmra.mrb[84].mxu1 %vm1820_vm0, %v8709_v7  ;;  %v826_v7 = vsub.s32 1, %v9652_v6 }
 0x23d   : > { %3392 = vmatprep.mubr.bf16.mxu1 %v8463_v2 }
 0x244   : > { %6246 = vmatmul.mubr.msk.bf16.gmra.mrb[88].mxu1 %vm1820_vm0, %v8741_v19  ;;  %v9664_v19 = vrot.slane %v9658_v9, %v822_v8 }
 0x245   : > { %3402 = vmatprep.mubr.bf16.mxu1 %v8463_v2  ;;  %v9669_v2 = vrot.slane %v9658_v9, %v826_v7 }
 0x24c   : > { %6247 = vmatmul.mubr.msk.bf16.gmra.mrb[92].mxu1 %vm1820_vm0, %v8776_v38 }
 0x259   : > { %v2369_v38 = vpop.f32.mrb[32].mxu0 }
 0x25a   : > { %v6813_v10 = vadd.f32 %v2369_v38, %v9664_v19  ;;  %v2371_v11 = vpop.f32.mrb[33].mxu0 }
 0x25b   : > { %v6815_v20 = vadd.f32 %v2371_v11, %v9669_v2  ;;  %v2373_v22 = vpop.f32.mrb[34].mxu0 }
 0x25c   : > { %v6814_v25 = vadd.f32 %v6813_v10, %v9155_v36  ;;  %v6817_v26 = vadd.f32 %v2373_v22, %v9664_v19  ;;  %v2375_v27 = vpop.f32.mrb[35].mxu0 }
 0x25d   : > { %v6816_v28 = vadd.f32 %v6815_v20, %v9160_v39  ;;  %v6819_v14 = vadd.f32 %v2375_v27, %v9669_v2 }
 0x25e   : > { %7877 = vtanh.f32 %v6814_v25  ;;  %v6818_v33 = vadd.f32 %v6817_v26, %v9167_v43 }
 0x25f   : > { %7879 = vtanh.f32 %v6816_v28  ;;  %v6820_v37 = vadd.f32 %v6819_v14, %v9170_v46 }
 0x260   : > { %7881 = vtanh.f32 %v6818_v33 }
 0x261   : > { %7883 = vtanh.f32 %v6820_v37  ;;  %v2379_v42 = vpop.f32.mrb[36].mxu0 }
 0x262   : > { %v6821_v47 = vadd.f32 %v2379_v42, %v9664_v19  ;;  %v2381_v23 = vpop.f32.mrb[37].mxu0 }
 0x263   : > { %v6823_v36 = vadd.f32 %v2381_v23, %v9669_v2  ;;  %v2383_v48 = vpop.f32.mrb[38].mxu0 }
 0x264   : > { %v6822_v49 = vadd.f32 %v6821_v47, %v9191_v57  ;;  %v6825_v39 = vadd.f32 %v2383_v48, %v9664_v19  ;;  %v2385_v54 = vpop.f32.mrb[39].mxu0 }
 0x265   : > { %v6824_v58 = vadd.f32 %v6823_v36, %v9196_v59  ;;  %v6827_v43 = vadd.f32 %v2385_v54, %v9669_v2 }
 0x266   : > { %7885 = vtanh.f32 %v6822_v49  ;;  %v6826_v46 = vadd.f32 %v6825_v39, %v9203_v63 }
 0x267   : > { %7887 = vtanh.f32 %v6824_v58  ;;  %v6828_v61 = vadd.f32 %v6827_v43, %v9206_v1 }
 0x268   : > { %v7878_v34 = vpop.eup %7877  ;;  %7889 = vtanh.f32 %v6826_v46 }
 0x269   : > { %v7880_v0 = vpop.eup %7879  ;;  %7891 = vtanh.f32 %v6828_v61  ;;  %v2389_v4 = vpop.f32.mrb[40].mxu0 }
 0x26a   : > { %v7882_v45 = vpop.eup %7881  ;;  %v6829_v57 = vadd.f32 %v2389_v4, %v9664_v19  ;;  %v2391_v5 = vpop.f32.mrb[41].mxu0 }
 0x26b   : > { %v7884_v56 = vpop.eup %7883  ;;  %v6831_v59 = vadd.f32 %v2391_v5, %v9669_v2  ;;  %v2393_v38 = vpop.f32.mrb[42].mxu0  ;;  %v9689_v10 = vpack.c.bf16 %v7882_v45, %v7878_v34 }
 0x26c   : > { %v6830_v63 = vadd.f32 %v6829_v57, %v9227_v13  ;;  %v6833_v11 = vadd.f32 %v2393_v38, %v9664_v19  ;;  %v2395_v1 = vpop.f32.mrb[43].mxu0  ;;  %v9693_v20 = vpack.c.bf16 %v7884_v56, %v7880_v0 }
 0x26d   : > { %v6832_v22 = vadd.f32 %v6831_v59, %v9232_v16  ;;  %v6835_v25 = vadd.f32 %v2395_v1, %v9669_v2 }
 0x26e   : > { %7893 = vtanh.f32 %v6830_v63  ;;  %v6834_v26 = vadd.f32 %v6833_v11, %v9239_v21 }
 0x26f   : > { %7895 = vtanh.f32 %v6832_v22  ;;  %v6836_v27 = vadd.f32 %v6835_v25, %v9242_v24 }
 0x270   : > { %v7886_v28 = vpop.eup %7885  ;;  %7897 = vtanh.f32 %v6834_v26 }
 0x271   : > { %v7888_v14 = vpop.eup %7887  ;;  %7899 = vtanh.f32 %v6836_v27  ;;  %v2399_v13 = vpop.f32.mrb[44].mxu0 }
 0x272   : > { %v7890_v33 = vpop.eup %7889  ;;  %v6837_v37 = vadd.f32 %v2399_v13, %v9664_v19  ;;  %v2401_v42 = vpop.f32.mrb[45].mxu0 }
 0x273   : > { %v7892_v47 = vpop.eup %7891  ;;  %v6839_v16 = vadd.f32 %v2401_v42, %v9669_v2  ;;  %v2403_v23 = vpop.f32.mrb[46].mxu0  ;;  %v9701_v36 = vpack.c.bf16 %v7890_v33, %v7886_v28 }
 0x274   : > { %v6838_v21 = vadd.f32 %v6837_v37, %v9263_v35  ;;  %v6841_v48 = vadd.f32 %v2403_v23, %v9664_v19  ;;  %v2405_v24 = vpop.f32.mrb[47].mxu0  ;;  %v9705_v49 = vpack.c.bf16 %v7892_v47, %v7888_v14 }
 0x275   : > { %v6840_v39 = vadd.f32 %v6839_v16, %v9268_v40  ;;  %v6843_v54 = vadd.f32 %v2405_v24, %v9669_v2 }
 0x276   : > { %7901 = vtanh.f32 %v6838_v21  ;;  %v6842_v58 = vadd.f32 %v6841_v48, %v9270_v41 }
 0x277   : > { %7903 = vtanh.f32 %v6840_v39  ;;  %v6844_v43 = vadd.f32 %v6843_v54, %v9273_v44 }
 0x278   : > { %v7894_v46 = vpop.eup %7893  ;;  %7905 = vtanh.f32 %v6842_v58 }
 0x279   : > { %v7896_v61 = vpop.eup %7895  ;;  %7907 = vtanh.f32 %v6844_v43  ;;  %v2409_v35 = vpop.f32.mrb[48].mxu0 }
 0x27a   : > { %v7898_v34 = vpop.eup %7897  ;;  %v6845_v0 = vadd.f32 %v2409_v35, %v9664_v19  ;;  %v2411_v4 = vpop.f32.mrb[49].mxu0 }
 0x27b   : > { %v7900_v45 = vpop.eup %7899  ;;  %v6847_v40 = vadd.f32 %v2411_v4, %v9669_v2  ;;  %v2413_v57 = vpop.f32.mrb[50].mxu0  ;;  %v9713_v5 = vpack.c.bf16 %v7898_v34, %v7894_v46 }
 0x27c   : > { %v6846_v41 = vadd.f32 %v6845_v0, %v9287_v55  ;;  %v6849_v56 = vadd.f32 %v2413_v57, %v9664_v19  ;;  %v2415_v44 = vpop.f32.mrb[51].mxu0  ;;  %v9717_v59 = vpack.c.bf16 %v7900_v45, %v7896_v61 }
 0x27d   : > { %v6848_v38 = vadd.f32 %v6847_v40, %v9292_v60  ;;  %v6851_v63 = vadd.f32 %v2415_v44, %v9669_v2 }
 0x27e   : > { %7909 = vtanh.f32 %v6846_v41  ;;  %v6850_v11 = vadd.f32 %v6849_v56, %v9297_v62 }
 0x27f   : > { %7911 = vtanh.f32 %v6848_v38  ;;  %v6852_v1 = vadd.f32 %v6851_v63, %v9302_v3 }
 0x280   : > { %v7902_v22 = vpop.eup %7901  ;;  %7913 = vtanh.f32 %v6850_v11 }
 0x281   : > { %v7904_v25 = vpop.eup %7903  ;;  %7915 = vtanh.f32 %v6852_v1  ;;  %v2419_v55 = vpop.f32.mrb[52].mxu0 }
 0x282   : > { %v7906_v26 = vpop.eup %7905  ;;  %v6853_v27 = vadd.f32 %v2419_v55, %v9664_v19  ;;  %v2421_v28 = vpop.f32.mrb[53].mxu0 }
 0x283   : > { %v7908_v14 = vpop.eup %7907  ;;  %v6855_v60 = vadd.f32 %v2421_v28, %v9669_v2  ;;  %v2423_v13 = vpop.f32.mrb[54].mxu0  ;;  %v9725_v33 = vpack.c.bf16 %v7906_v26, %v7902_v22 }
 0x284   : > { %v6854_v62 = vadd.f32 %v6853_v27, %v9311_v12  ;;  %v6857_v37 = vadd.f32 %v2423_v13, %v9664_v19  ;;  %v2425_v3 = vpop.f32.mrb[55].mxu0  ;;  %v9729_v42 = vpack.c.bf16 %v7908_v14, %v7904_v25 }
 0x285   : > { %v6856_v47 = vadd.f32 %v6855_v60, %v9313_v15  ;;  %v6859_v16 = vadd.f32 %v2425_v3, %v9669_v2 }
 0x286   : > { %7917 = vtanh.f32 %v6854_v62  ;;  %v6858_v23 = vadd.f32 %v6857_v37, %v9315_v17 }
 0x287   : > { %7919 = vtanh.f32 %v6856_v47  ;;  %v6860_v21 = vadd.f32 %v6859_v16, %v9317_v18 }
 0x288   : > { %v7910_v48 = vpop.eup %7909  ;;  %7921 = vtanh.f32 %v6858_v23 }
 0x289   : > { %v7912_v24 = vpop.eup %7911  ;;  %7923 = vtanh.f32 %v6860_v21  ;;  %v2429_v12 = vpop.f32.mrb[56].mxu0 }
 0x28a   : > { %v7914_v39 = vpop.eup %7913  ;;  %v6861_v54 = vadd.f32 %v2429_v12, %v9664_v19  ;;  %v2431_v58 = vpop.f32.mrb[57].mxu0 }
 0x28b   : > { %v7916_v43 = vpop.eup %7915  ;;  %v6863_v15 = vadd.f32 %v2431_v58, %v9669_v2  ;;  %v2433_v46 = vpop.f32.mrb[58].mxu0  ;;  %v9737_v61 = vpack.c.bf16 %v7914_v39, %v7910_v48 }
 0x28c   : > { %v6862_v17 = vadd.f32 %v6861_v54, %v9323_v29  ;;  %v6865_v35 = vadd.f32 %v2433_v46, %v9664_v19  ;;  %v2435_v18 = vpop.f32.mrb[59].mxu0  ;;  %v9741_v34 = vpack.c.bf16 %v7916_v43, %v7912_v24  ;;  %v834_v24 = vsub.s32 3, %v9652_v6 }
 0x28d   : > { %v6864_v0 = vadd.f32 %v6863_v15, %v9325_v30  ;;  %v6867_v4 = vadd.f32 %v2435_v18, %v9669_v2 }
 0x28e   : > { %7925 = vtanh.f32 %v6862_v17  ;;  %v6866_v45 = vadd.f32 %v6865_v35, %v9327_v31  ;;  %v9775_v43 = vrot.slane %v9658_v9, %v834_v24 }
 0x28f   : > { %7927 = vtanh.f32 %v6864_v0  ;;  %v6868_v40 = vadd.f32 %v6867_v4, %v9329_v32 }
 0x290   : > { %v7918_v57 = vpop.eup %7917  ;;  %7929 = vtanh.f32 %v6866_v45 }
 0x291   : > { %v7920_v41 = vpop.eup %7919  ;;  %7931 = vtanh.f32 %v6868_v40  ;;  %v2439_v29 = vpop.f32.mrb[60].mxu0 }
 0x292   : > { %v7922_v56 = vpop.eup %7921  ;;  %v6869_v44 = vadd.f32 %v2439_v29, %v9664_v19  ;;  %v2441_v38 = vpop.f32.mrb[61].mxu0 }
 0x293   : > { %v7924_v63 = vpop.eup %7923  ;;  %v6871_v30 = vadd.f32 %v2441_v38, %v9669_v2  ;;  %v2443_v11 = vpop.f32.mrb[62].mxu0  ;;  %v9749_v1 = vpack.c.bf16 %v7922_v56, %v7918_v57 }
 0x294   : > { %v6870_v31 = vadd.f32 %v6869_v44, %v9335_v50  ;;  %v6873_v22 = vadd.f32 %v2443_v11, %v9664_v19  ;;  %v2445_v32 = vpop.f32.mrb[63].mxu0  ;;  %v9753_v25 = vpack.c.bf16 %v7924_v63, %v7920_v41 }
 0x295   : > { %v6872_v55 = vadd.f32 %v6871_v30, %v9337_v51  ;;  %v6875_v26 = vadd.f32 %v2445_v32, %v9669_v2 }
 0x296   : > { %7933 = vtanh.f32 %v6870_v31  ;;  %v6874_v27 = vadd.f32 %v6873_v22, %v9339_v52 }
 0x297   : > { %7935 = vtanh.f32 %v6872_v55  ;;  %v6876_v28 = vadd.f32 %v6875_v26, %v9341_v53  ;;  %v830_v53 = vsub.s32 2, %v9652_v6 }
 0x298   : > { %v7926_v14 = vpop.eup %7925  ;;  %7937 = vtanh.f32 %v6874_v27 }
 0x299   : > { %v7928_v60 = vpop.eup %7927  ;;  %7939 = vtanh.f32 %v6876_v28  ;;  %v2482_v50 = vpop.f32.mrb[0].mxu0  ;;  %v9772_v39 = vrot.slane %v9658_v9, %v830_v53 }
 0x29a   : > { %v7930_v13 = vpop.eup %7929  ;;  %v6781_v62 = vadd.f32 %v2482_v50, %v9664_v19  ;;  %v2484_v37 = vpop.f32.mrb[1].mxu0  ;;  %v7790_v50 = vld [vmem:[%s10787_s3 + $0x180] ss:$12 sps:$4 sm:$0xff]  }
 0x29b   : > { %v7932_v3 = vpop.eup %7931  ;;  %v6782_v51 = vadd.f32 %v2484_v37, %v9669_v2  ;;  %v2486_v47 = vpop.f32.mrb[2].mxu0  ;;  %v9761_v16 = vpack.c.bf16 %v7930_v13, %v7926_v14  ;;  %v7793_v13 = vld [vmem:[%s10787_s3 + $0x188] ss:$12 sps:$4 sm:$0xff]  }
 0x29c   : > { %7941 = vtanh.f32 %v6781_v62  ;;  %v6783_v52 = vadd.f32 %v2486_v47, %v9664_v19  ;;  %v2488_v23 = vpop.f32.mrb[3].mxu0  ;;  %v9765_v21 = vpack.c.bf16 %v7932_v3, %v7928_v60  ;;  %v7797_v47 = vld [vmem:[%s10787_s3 + $0x260] ss:$12 sps:$4 sm:$0xff]  }
 0x29d   : > { %7943 = vtanh.f32 %v6782_v51  ;;  %v6784_v48 = vadd.f32 %v2488_v23, %v9669_v2  ;;  %v7796_v51 = vld [vmem:[%s10787_s3 + $0x19c] ss:$12 sps:$4 sm:$0xff]  }
 0x29e   : > { %7945 = vtanh.f32 %v6783_v52 }
 0x29f   : > { %7947 = vtanh.f32 %v6784_v48 }
 0x2a0   : > { %v7934_v12 = vpop.eup %7933 }
 0x2a1   : > { %v7936_v54 = vpop.eup %7935  ;;  %v2492_v58 = vpop.f32.mrb[4].mxu0 }
 0x2a2   : > { %v7938_v15 = vpop.eup %7937  ;;  %v6785_v46 = vadd.f32 %v2492_v58, %v9664_v19  ;;  %v2494_v17 = vpop.f32.mrb[5].mxu0 }
 0x2a3   : > { %v7940_v35 = vpop.eup %7939  ;;  %v6786_v0 = vadd.f32 %v2494_v17, %v9669_v2  ;;  %v2496_v4 = vpop.f32.mrb[6].mxu0  ;;  %v9779_v45 = vpack.c.bf16 %v7938_v15, %v7934_v12 }
 0x2a4   : > { %7949 = vtanh.f32 %v6785_v46  ;;  %v6787_v41 = vadd.f32 %v2496_v4, %v9664_v19  ;;  %v2498_v29 = vpop.f32.mrb[7].mxu0  ;;  %v9783_v9 = vpack.c.bf16 %v7940_v35, %v7936_v54  ;;  %v7794_v35 = vld [vmem:[%s10787_s3 + $0x198] ss:$12 sps:$4 sm:$0xff]  }
 0x2a5   : > { %7951 = vtanh.f32 %v6786_v0  ;;  %v6788_v30 = vadd.f32 %v2498_v29, %v9669_v2 }
 0x2a6   : > { %v7942_v38 = vpop.eup %7941 }
 0x2a7   : > { %v3254_v18 = vpop.f32.mrb[32].mxu1  ;;  %v7944_v31 = vpop.eup %7943 }
 0x2a8   : > { %v6877_v40 = vadd.f32 %v3254_v18, %v9772_v39  ;;  %v3256_v57 = vpop.f32.mrb[33].mxu1  ;;  %v7946_v32 = vpop.eup %7945  ;;  %v7801_v18 = vld [vmem:[%s10787_s3 + $0x1a0] ss:$12 sps:$4 sm:$0xff]  }
 0x2a9   : > { %v6878_v56 = vadd.f32 %v3256_v57, %v9775_v43  ;;  %v3258_v44 = vpop.f32.mrb[34].mxu1  ;;  %v7948_v55 = vpop.eup %7947  ;;  %v3541_v27 = vpack.c.bf16 %v7946_v32, %v7942_v38  ;;  %v7805_v57 = vld [vmem:[%s10787_s3 + $0x278] ss:$12 sps:$4 sm:$0xff]  }
 0x2aa   : > { %7953 = vtanh.f32 %v6877_v40  ;;  %v6879_v63 = vadd.f32 %v3258_v44, %v9772_v39  ;;  %v3260_v11 = vpop.f32.mrb[35].mxu1  ;;  %v2502_v26 = vpop.f32.mrb[8].mxu0  ;;  %v3542_v60 = vpack.c.bf16 %v7948_v55, %v7944_v31  ;;  %v7800_v40 = vld [vmem:[%s10787_s3 + $0x1b4] ss:$12 sps:$4 sm:$0xff]  }
 0x2ab   : > { %7955 = vtanh.f32 %v6878_v56  ;;  %v6880_v22 = vadd.f32 %v3260_v11, %v9775_v43  ;;  %v6789_v28 = vadd.f32 %v2502_v26, %v9664_v19  ;;  %v2504_v14 = vpop.f32.mrb[9].mxu0  ;;  %v7809_v11 = vld [vmem:[%s10787_s3 + $0x1b8] ss:$12 sps:$4 sm:$0xff]  }
 0x2ac   : > { %7957 = vtanh.f32 %v6787_v41  ;;  %v6790_v37 = vadd.f32 %v2504_v14, %v9669_v2  ;;  %v2506_v3 = vpop.f32.mrb[10].mxu0  ;;  %4294 = vmatprep.mubr.bf16.mxu0 %v3542_v60  ;;  %4680 = vmatprep.mubr.bf16.mxu1 %v3542_v60 }
 0x2ad   : > { %7959 = vtanh.f32 %v6879_v63  ;;  %v6791_v48 = vadd.f32 %v2506_v3, %v9664_v19  ;;  %v2508_v24 = vpop.f32.mrb[11].mxu0  ;;  %4295 = vmatmul.mubr.bf16.vlgmr.msra.gmra.mrb[64].mxu0 %v3541_v27  ;;  %4681 = vmatmul.mubr.bf16.vlgmr.msra.gmra.mrb[96].mxu1 %v3541_v27 }
 0x2ae   : > { %7961 = vtanh.f32 %v6788_v30  ;;  %v7950_v58 = vpop.eup %7949  ;;  %v6792_v46 = vadd.f32 %v2508_v24, %v9669_v2  ;;  %6484 = vmatpush3.bf16.msra.mxu1 %v7793_v13  ;;  %4456 = vmatpush1.bf16.msra.mxu0 %v7790_v50  ;;  %v7798_v30 = vld [vmem:[%s10787_s3 + $0x1b0] ss:$12 sps:$4 sm:$0xff]  }
 0x2af   : > { %7963 = vtanh.f32 %v6880_v22  ;;  %v3264_v62 = vpop.f32.mrb[36].mxu1  ;;  %v7952_v0 = vpop.eup %7951  ;;  %4457 = vmatprep.subr.bf16.mxu0 %v7796_v51  ;;  %6485 = vmatprep.subr.bf16.mxu1 %v7797_v47  ;;  %v7804_v47 = vld [vmem:[%s10787_s3 + $0x1cc] ss:$12 sps:$4 sm:$0xff]  }
 0x2b0   : > { %7965 = vtanh.f32 %v6789_v28  ;;  %v6881_v52 = vadd.f32 %v3264_v62, %v9772_v39  ;;  %v3266_v23 = vpop.f32.mrb[37].mxu1 }
 0x2b1   : > { %7967 = vtanh.f32 %v6790_v37  ;;  %v6882_v12 = vadd.f32 %v3266_v23, %v9775_v43  ;;  %v3268_v54 = vpop.f32.mrb[38].mxu1  ;;  %v2512_v56 = vpop.f32.mrb[12].mxu0 }
 0x2b2   : > { %7969 = vtanh.f32 %v6881_v52  ;;  %v6883_v15 = vadd.f32 %v3268_v54, %v9772_v39  ;;  %v3270_v17 = vpop.f32.mrb[39].mxu1  ;;  %v6793_v38 = vadd.f32 %v2512_v56, %v9664_v19  ;;  %v2514_v63 = vpop.f32.mrb[13].mxu0  ;;  %4458 = vmatpush1.bf16.msra.mxu0 %v7794_v35  ;;  %6486 = vmatpush3.bf16.msra.mxu1 %v7801_v18  ;;  %v7813_v52 = vld [vmem:[%s10787_s3 + $0x290] ss:$12 sps:$4 sm:$0xff]   ;;  %v7802_v54 = vld [vmem:[%s10787_s3 + $0x1c8] ss:$12 sps:$4 sm:$0xff]  }
 0x2b3   : > { %7971 = vtanh.f32 %v6882_v12  ;;  %v6884_v4 = vadd.f32 %v3270_v17, %v9775_v43  ;;  %v6794_v32 = vadd.f32 %v2514_v63, %v9669_v2  ;;  %v2516_v55 = vpop.f32.mrb[14].mxu0  ;;  %4459 = vmatprep.subr.bf16.mxu0 %v7800_v40  ;;  %6487 = vmatprep.subr.bf16.mxu1 %v7805_v57  ;;  %v7808_v35 = vld [vmem:[%s10787_s3 + $0x1e4] ss:$12 sps:$4 sm:$0xff]   ;;  %v7821_v18 = vld [vmem:[%s10787_s3 + $0x2a8] ss:$12 sps:$4 sm:$0xff]  }
 0x2b4   : > { %v7954_v41 = vpop.eup %7953  ;;  %7973 = vtanh.f32 %v6791_v48  ;;  %v6795_v60 = vadd.f32 %v2516_v55, %v9664_v19  ;;  %v2518_v50 = vpop.f32.mrb[15].mxu0  ;;  %v7806_v56 = vld [vmem:[%s10787_s3 + $0x1e0] ss:$12 sps:$4 sm:$0xff]  }
 0x2b5   : > { %v7956_v29 = vpop.eup %7955  ;;  %7975 = vtanh.f32 %v6883_v15  ;;  %v6796_v24 = vadd.f32 %v2518_v50, %v9669_v2 }
 0x2b6   : > { %v7958_v44 = vpop.eup %7957  ;;  %7977 = vtanh.f32 %v6792_v46  ;;  %4460 = vmatpush1.bf16.msra.mxu0 %v7798_v30  ;;  %6488 = vmatpush3.bf16.msra.mxu1 %v7809_v11 }
 0x2b7   : > { %v7960_v31 = vpop.eup %7959  ;;  %7979 = vtanh.f32 %v6884_v4  ;;  %v3274_v22 = vpop.f32.mrb[40].mxu1  ;;  %v3545_v26 = vpack.c.bf16 %v7958_v44, %v7950_v58  ;;  %v7817_v58 = vld [vmem:[%s10787_s3 + $0x1d0] ss:$12 sps:$4 sm:$0xff]   ;;  %4461 = vmatprep.subr.bf16.mxu0 %v7804_v47  ;;  %6489 = vmatprep.subr.bf16.mxu1 %v7813_v52  ;;  %v7825_v44 = vld [vmem:[%s10787_s3 + $0x1e8] ss:$12 sps:$4 sm:$0xff]  }
 0x2b8   : > { %v7962_v27 = vpop.eup %7961  ;;  %7981 = vtanh.f32 %v6793_v38  ;;  %v6885_v28 = vadd.f32 %v3274_v22, %v9772_v39  ;;  %v3276_v14 = vpop.f32.mrb[41].mxu1  ;;  %v9831_v13 = vpack.c.bf16 %v7960_v31, %v7954_v41 }
 0x2b9   : > { %v7964_v62 = vpop.eup %7963  ;;  %7983 = vtanh.f32 %v6794_v32  ;;  %v6886_v37 = vadd.f32 %v3276_v14, %v9775_v43  ;;  %v3278_v3 = vpop.f32.mrb[42].mxu1  ;;  %v3546_v51 = vpack.c.bf16 %v7962_v27, %v7952_v0 }
 0x2ba   : > { %v7966_v23 = vpop.eup %7965  ;;  %7985 = vtanh.f32 %v6885_v28  ;;  %v6887_v48 = vadd.f32 %v3278_v3, %v9772_v39  ;;  %v3280_v12 = vpop.f32.mrb[43].mxu1  ;;  %v9848_v15 = vpack.c.bf16 %v7964_v62, %v7956_v29  ;;  %4462 = vmatpush1.bf16.msra.mxu0 %v7802_v54  ;;  %6490 = vmatpush3.bf16.msra.mxu1 %v7817_v58  ;;  %v7829_v3 = vld [vmem:[%s10787_s3 + $0x2c0] ss:$12 sps:$4 sm:$0xff]  }
 0x2bb   : > { %v7968_v46 = vpop.eup %7967  ;;  %7987 = vtanh.f32 %v6886_v37  ;;  %v6888_v17 = vadd.f32 %v3280_v12, %v9775_v43  ;;  %4304 = vmatprep.mubr.bf16.mxu0 %v3546_v51  ;;  %4688 = vmatprep.mubr.bf16.mxu1 %v3546_v51  ;;  %v2522_v40 = vpop.f32.mrb[16].mxu0  ;;  %v7812_v37 = vld [vmem:[%s10787_s3 + $0x1fc] ss:$12 sps:$4 sm:$0xff]  }
 0x2bc   : > { %v7970_v0 = vpop.eup %7969  ;;  %7989 = vtanh.f32 %v6795_v60  ;;  %4305 = vmatmul.mubr.bf16.gmra.mrb[68].mxu0 %v3545_v26  ;;  %4689 = vmatmul.mubr.bf16.gmra.mrb[100].mxu1 %v3545_v26  ;;  %v6797_v41 = vadd.f32 %v2522_v40, %v9664_v19  ;;  %v2524_v29 = vpop.f32.mrb[17].mxu0 }
 0x2bd   : > { %v7972_v4 = vpop.eup %7971  ;;  %7991 = vtanh.f32 %v6887_v48  ;;  %v6798_v30 = vadd.f32 %v2524_v29, %v9669_v2  ;;  %v2526_v11 = vpop.f32.mrb[18].mxu0  ;;  %4463 = vmatprep.subr.bf16.mxu0 %v7808_v35  ;;  %6491 = vmatprep.subr.bf16.mxu1 %v7821_v18  ;;  %v7810_v48 = vld [vmem:[%s10787_s3 + $0x1f8] ss:$12 sps:$4 sm:$0xff]  }
 0x2be   : > { %v7974_v57 = vpop.eup %7973  ;;  %7993 = vtanh.f32 %v6796_v24  ;;  %v6799_v26 = vadd.f32 %v2526_v11, %v9664_v19  ;;  %v2528_v27 = vpop.f32.mrb[19].mxu0  ;;  %4464 = vmatpush1.bf16.msra.mxu0 %v7806_v56  ;;  %6492 = vmatpush3.bf16.msra.mxu1 %v7825_v44  ;;  %v7833_v24 = vld [vmem:[%s10787_s3 + $0x200] ss:$12 sps:$4 sm:$0xff]   ;;  %v7841_v29 = vld [vmem:[%s10787_s3 + $0x218] ss:$12 sps:$4 sm:$0xff]  }
 0x2bf   : > { %v7976_v38 = vpop.eup %7975  ;;  %7995 = vtanh.f32 %v6888_v17  ;;  %v3284_v63 = vpop.f32.mrb[44].mxu1  ;;  %v3549_v31 = vpack.c.bf16 %v7974_v57, %v7966_v23  ;;  %v6800_v52 = vadd.f32 %v2528_v27, %v9669_v2  ;;  %v7837_v17 = vld [vmem:[%s10787_s3 + $0x2d8] ss:$12 sps:$4 sm:$0xff]   ;;  %4465 = vmatprep.subr.bf16.mxu0 %v7812_v37  ;;  %6493 = vmatprep.subr.bf16.mxu1 %v7829_v3  ;;  %v7845_v37 = vld [vmem:[%s10787_s3 + $0x2f0] ss:$12 sps:$4 sm:$0xff]  }
 0x2c0   : > { %v7978_v22 = vpop.eup %7977  ;;  %7997 = vtanh.f32 %v6797_v41  ;;  %v6889_v32 = vadd.f32 %v3284_v63, %v9772_v39  ;;  %v3286_v55 = vpop.f32.mrb[45].mxu1  ;;  %v9867_v28 = vpack.c.bf16 %v7976_v38, %v7970_v0  ;;  %v7814_v41 = vld [vmem:[%s10787_s3 + $0x210] ss:$12 sps:$4 sm:$0xff]  }
 0x2c1   : > { %v7980_v14 = vpop.eup %7979  ;;  %7999 = vtanh.f32 %v6798_v30  ;;  %v6890_v60 = vadd.f32 %v3286_v55, %v9775_v43  ;;  %v3288_v50 = vpop.f32.mrb[46].mxu1  ;;  %v3550_v62 = vpack.c.bf16 %v7978_v22, %v7968_v46  ;;  %v7816_v46 = vld [vmem:[%s10787_s3 + $0x214] ss:$12 sps:$4 sm:$0xff]  }
 0x2c2   : > { %v7982_v51 = vpop.eup %7981  ;;  %8001 = vtanh.f32 %v6889_v32  ;;  %v6891_v47 = vadd.f32 %v3288_v50, %v9772_v39  ;;  %v3290_v23 = vpop.f32.mrb[47].mxu1  ;;  %v9884_v12 = vpack.c.bf16 %v7980_v14, %v7972_v4  ;;  %4466 = vmatpush1.bf16.msra.mxu0 %v7810_v48  ;;  %6494 = vmatpush3.bf16.msra.mxu1 %v7833_v24  ;;  %v7849_v48 = vld [vmem:[%s10787_s3 + $0x230] ss:$12 sps:$4 sm:$0xff]  }
 0x2c3   : > { %v7984_v54 = vpop.eup %7983  ;;  %8003 = vtanh.f32 %v6890_v60  ;;  %v6892_v58 = vadd.f32 %v3290_v23, %v9775_v43  ;;  %4314 = vmatprep.mubr.bf16.mxu0 %v3550_v62  ;;  %4696 = vmatprep.mubr.bf16.mxu1 %v3550_v62  ;;  %v2532_v0 = vpop.f32.mrb[20].mxu0  ;;  %v7820_v62 = vld [vmem:[%s10787_s3 + $0x22c] ss:$12 sps:$4 sm:$0xff]   ;;  %v7818_v23 = vld [vmem:[%s10787_s3 + $0x228] ss:$12 sps:$4 sm:$0xff]  }
 0x2c4   : > { %v7986_v35 = vpop.eup %7985  ;;  %8005 = vtanh.f32 %v6799_v26  ;;  %4315 = vmatmul.mubr.bf16.gmra.mrb[72].mxu0 %v3549_v31  ;;  %4697 = vmatmul.mubr.bf16.gmra.mrb[104].mxu1 %v3549_v31  ;;  %v6801_v40 = vadd.f32 %v2532_v0, %v9664_v19  ;;  %v2534_v57 = vpop.f32.mrb[21].mxu0 }
 0x2c5   : > { %v7988_v18 = vpop.eup %7987  ;;  %8007 = vtanh.f32 %v6891_v47  ;;  %v6802_v38 = vadd.f32 %v2534_v57, %v9669_v2  ;;  %v2536_v63 = vpop.f32.mrb[22].mxu0  ;;  %4467 = vmatprep.subr.bf16.mxu0 %v7816_v46  ;;  %6495 = vmatprep.subr.bf16.mxu1 %v7837_v17  ;;  %v7824_v46 = vld [vmem:[%s10787_s3 + $0x244] ss:$12 sps:$4 sm:$0xff]   ;;  %v7822_v57 = vld [vmem:[%s10787_s3 + $0x240] ss:$12 sps:$4 sm:$0xff]  }
 0x2c6   : > { %v7990_v4 = vpop.eup %7989  ;;  %8009 = vtanh.f32 %v6800_v52  ;;  %v6803_v32 = vadd.f32 %v2536_v63, %v9664_v19  ;;  %v2538_v55 = vpop.f32.mrb[23].mxu0  ;;  %4468 = vmatpush1.bf16.msra.mxu0 %v7814_v41  ;;  %6496 = vmatpush3.bf16.msra.mxu1 %v7841_v29 }
 0x2c7   : > { %v7992_v56 = vpop.eup %7991  ;;  %8011 = vtanh.f32 %v6892_v58  ;;  %v3294_v44 = vpop.f32.mrb[48].mxu1  ;;  %v3553_v30 = vpack.c.bf16 %v7990_v4, %v7982_v51  ;;  %v6804_v47 = vadd.f32 %v2538_v55, %v9669_v2  ;;  %4469 = vmatprep.subr.bf16.mxu0 %v7820_v62  ;;  %6497 = vmatprep.subr.bf16.mxu1 %v7845_v37 }
 0x2c8   : > { %v7994_v11 = vpop.eup %7993  ;;  %8013 = vtanh.f32 %v6801_v40  ;;  %v6893_v31 = vadd.f32 %v3294_v44, %v9772_v39  ;;  %v3296_v22 = vpop.f32.mrb[49].mxu1  ;;  %v9903_v26 = vpack.c.bf16 %v7992_v56, %v7986_v35 }
 0x2c9   : > { %v7996_v27 = vpop.eup %7995  ;;  %8015 = vtanh.f32 %v6802_v38  ;;  %v6894_v14 = vadd.f32 %v3296_v22, %v9775_v43  ;;  %v3298_v60 = vpop.f32.mrb[50].mxu1  ;;  %v3554_v50 = vpack.c.bf16 %v7994_v11, %v7984_v54 }
 0x2ca   : > { %v7998_v3 = vpop.eup %7997  ;;  %8017 = vtanh.f32 %v6893_v31  ;;  %v6895_v51 = vadd.f32 %v3298_v60, %v9772_v39  ;;  %v3300_v52 = vpop.f32.mrb[51].mxu1  ;;  %v9920_v24 = vpack.c.bf16 %v7996_v27, %v7988_v18  ;;  %4470 = vmatpush1.bf16.msra.mxu0 %v7818_v23  ;;  %6498 = vmatpush3.bf16.msra.mxu1 %v7849_v48 }
 0x2cb   : > { %v8000_v54 = vpop.eup %7999  ;;  %8019 = vtanh.f32 %v6894_v14  ;;  %v6896_v58 = vadd.f32 %v3300_v52, %v9775_v43  ;;  %4324 = vmatprep.mubr.bf16.mxu0 %v3554_v50  ;;  %4704 = vmatprep.mubr.bf16.mxu1 %v3554_v50  ;;  %v2542_v0 = vpop.f32.mrb[24].mxu0  ;;  %v7828_v50 = vld [vmem:[%s10787_s3 + $0x25c] ss:$12 sps:$4 sm:$0xff]  }
 0x2cc   : > { %v8002_v17 = vpop.eup %8001  ;;  %8021 = vtanh.f32 %v6803_v32  ;;  %4325 = vmatmul.mubr.bf16.gmra.mrb[76].mxu0 %v3553_v30  ;;  %4705 = vmatmul.mubr.bf16.gmra.mrb[108].mxu1 %v3553_v30  ;;  %v6805_v4 = vadd.f32 %v2542_v0, %v9664_v19  ;;  %v2544_v40 = vpop.f32.mrb[25].mxu0 }
 0x2cd   : > { %v8004_v35 = vpop.eup %8003  ;;  %8023 = vtanh.f32 %v6895_v51  ;;  %v6806_v56 = vadd.f32 %v2544_v40, %v9669_v2  ;;  %v2546_v44 = vpop.f32.mrb[26].mxu0  ;;  %4471 = vmatprep.subr.bf16.mxu0 %v7824_v46 }
 0x2ce   : > { %v8006_v18 = vpop.eup %8005  ;;  %8025 = vtanh.f32 %v6804_v47  ;;  %v6807_v31 = vadd.f32 %v2546_v44, %v9664_v19  ;;  %v2548_v22 = vpop.f32.mrb[27].mxu0  ;;  %4472 = vmatpush1.bf16.msra.mxu0 %v7822_v57  ;;  %v7826_v47 = vld [vmem:[%s10787_s3 + $0x258] ss:$12 sps:$4 sm:$0xff]  }
 0x2cf   : > { %v8008_v41 = vpop.eup %8007  ;;  %8027 = vtanh.f32 %v6896_v58  ;;  %v3304_v29 = vpop.f32.mrb[52].mxu1  ;;  %v3557_v38 = vpack.c.bf16 %v8006_v18, %v7998_v3  ;;  %v6808_v3 = vadd.f32 %v2548_v22, %v9669_v2  ;;  %4473 = vmatprep.subr.bf16.mxu0 %v7828_v50 }
 0x2d0   : > { %v8010_v63 = vpop.eup %8009  ;;  %8029 = vtanh.f32 %v6805_v4  ;;  %v6897_v30 = vadd.f32 %v3304_v29, %v9772_v39  ;;  %v3306_v11 = vpop.f32.mrb[53].mxu1  ;;  %v9933_v32 = vpack.c.bf16 %v8008_v41, %v8002_v17  ;;  %v7830_v4 = vld [vmem:[%s10787_s3 + $0x270] ss:$12 sps:$4 sm:$0xff]  }
 0x2d1   : > { %v8012_v55 = vpop.eup %8011  ;;  %8031 = vtanh.f32 %v6806_v56  ;;  %v6898_v27 = vadd.f32 %v3306_v11, %v9775_v43  ;;  %v3308_v14 = vpop.f32.mrb[54].mxu1  ;;  %v3558_v60 = vpack.c.bf16 %v8010_v63, %v8000_v54  ;;  %v7832_v54 = vld [vmem:[%s10787_s3 + $0x274] ss:$12 sps:$4 sm:$0xff]  }
 0x2d2   : > { %v8014_v62 = vpop.eup %8013  ;;  %8033 = vtanh.f32 %v6897_v30  ;;  %v6899_v37 = vadd.f32 %v3308_v14, %v9772_v39  ;;  %v3310_v51 = vpop.f32.mrb[55].mxu1  ;;  %v9944_v52 = vpack.c.bf16 %v8012_v55, %v8004_v35  ;;  %4474 = vmatpush1.bf16.msra.mxu0 %v7826_v47 }
 0x2d3   : > { %v8016_v23 = vpop.eup %8015  ;;  %8035 = vtanh.f32 %v6898_v27  ;;  %v6900_v48 = vadd.f32 %v3310_v51, %v9775_v43  ;;  %4334 = vmatprep.mubr.bf16.mxu0 %v3558_v60  ;;  %4712 = vmatprep.mubr.bf16.mxu1 %v3558_v60  ;;  %v2552_v17 = vpop.f32.mrb[28].mxu0  ;;  %v7836_v60 = vld [vmem:[%s10787_s3 + $0x28c] ss:$12 sps:$4 sm:$0xff]  }
 0x2d4   : > { %v8018_v58 = vpop.eup %8017  ;;  %8037 = vtanh.f32 %v6807_v31  ;;  %4335 = vmatmul.mubr.bf16.gmra.mrb[80].mxu0 %v3557_v38  ;;  %4713 = vmatmul.mubr.bf16.gmra.mrb[112].mxu1 %v3557_v38  ;;  %v6809_v0 = vadd.f32 %v2552_v17, %v9664_v19  ;;  %v2554_v18 = vpop.f32.mrb[29].mxu0 }
 0x2d5   : > { %v8020_v46 = vpop.eup %8019  ;;  %8039 = vtanh.f32 %v6899_v37  ;;  %v6810_v41 = vadd.f32 %v2554_v18, %v9669_v2  ;;  %v2556_v29 = vpop.f32.mrb[30].mxu0  ;;  %4475 = vmatprep.subr.bf16.mxu0 %v7832_v54 }
 0x2d6   : > { %v8022_v35 = vpop.eup %8021  ;;  %8041 = vtanh.f32 %v6808_v3  ;;  %v6811_v30 = vadd.f32 %v2556_v29, %v9664_v19  ;;  %v2558_v11 = vpop.f32.mrb[31].mxu0  ;;  %4476 = vmatpush1.bf16.msra.mxu0 %v7830_v4  ;;  %v7834_v3 = vld [vmem:[%s10787_s3 + $0x288] ss:$12 sps:$4 sm:$0xff]  }
 0x2d7   : > { %v8024_v40 = vpop.eup %8023  ;;  %8043 = vtanh.f32 %v6900_v48  ;;  %v3314_v57 = vpop.f32.mrb[56].mxu1  ;;  %v3561_v56 = vpack.c.bf16 %v8022_v35, %v8014_v62  ;;  %v6812_v37 = vadd.f32 %v2558_v11, %v9669_v2  ;;  %v7840_v48 = vld [vmem:[%s10787_s3 + $0x2a4] ss:$12 sps:$4 sm:$0xff]   ;;  %4477 = vmatprep.subr.bf16.mxu0 %v7836_v60  ;;  %v7848_v60 = vld [vmem:[%s10787_s3 + $0x2d4] ss:$12 sps:$4 sm:$0xff]  }
 0x2d8   : > { %v8026_v44 = vpop.eup %8025  ;;  %8045 = vtanh.f32 %v6809_v0  ;;  %v6901_v38 = vadd.f32 %v3314_v57, %v9772_v39  ;;  %v3316_v63 = vpop.f32.mrb[57].mxu1  ;;  %v9957_v31 = vpack.c.bf16 %v8024_v40, %v8018_v58 }
 0x2d9   : > { %v8028_v22 = vpop.eup %8027  ;;  %8047 = vtanh.f32 %v6810_v41  ;;  %v6902_v55 = vadd.f32 %v3316_v63, %v9775_v43  ;;  %v3318_v27 = vpop.f32.mrb[58].mxu1  ;;  %v3562_v14 = vpack.c.bf16 %v8026_v44, %v8016_v23 }
 0x2da   : > { %v8030_v50 = vpop.eup %8029  ;;  %8049 = vtanh.f32 %v6901_v38  ;;  %v6903_v62 = vadd.f32 %v3318_v27, %v9772_v39  ;;  %v3320_v19 = vpop.f32.mrb[59].mxu1  ;;  %v9968_v51 = vpack.c.bf16 %v8028_v22, %v8020_v46  ;;  %4478 = vmatpush1.bf16.msra.mxu0 %v7834_v3  ;;  %v7838_v46 = vld [vmem:[%s10787_s3 + $0x2a0] ss:$12 sps:$4 sm:$0xff]   ;;  %v7844_v38 = vld [vmem:[%s10787_s3 + $0x2bc] ss:$12 sps:$4 sm:$0xff]  }
 0x2db   : > { %v8032_v47 = vpop.eup %8031  ;;  %8051 = vtanh.f32 %v6902_v55  ;;  %v6904_v23 = vadd.f32 %v3320_v19, %v9775_v43  ;;  %4344 = vmatprep.mubr.bf16.mxu0 %v3562_v14  ;;  %4720 = vmatprep.mubr.bf16.mxu1 %v3562_v14  ;;  %v7842_v22 = vld [vmem:[%s10787_s3 + $0x2b8] ss:$12 sps:$4 sm:$0xff]   ;;  %v7846_v19 = vld [vmem:[%s10787_s3 + $0x2d0] ss:$12 sps:$4 sm:$0xff]  }
 0x2dc   : > { %v8034_v54 = vpop.eup %8033  ;;  %8053 = vtanh.f32 %v6811_v30  ;;  %4345 = vmatmul.mubr.bf16.gmra.mrb[84].mxu0 %v3561_v56  ;;  %4721 = vmatmul.mubr.bf16.gmra.mrb[116].mxu1 %v3561_v56 }
 0x2dd   : > { %v8036_v2 = vpop.eup %8035  ;;  %8055 = vtanh.f32 %v6903_v62  ;;  %4479 = vmatprep.subr.bf16.mxu0 %v7840_v48 }
 0x2de   : > { %v8038_v58 = vpop.eup %8037  ;;  %8057 = vtanh.f32 %v6812_v37  ;;  %4480 = vmatpush1.bf16.msra.mxu0 %v7838_v46 }
 0x2df   : > { %v8040_v17 = vpop.eup %8039  ;;  %8059 = vtanh.f32 %v6904_v23  ;;  %v3324_v35 = vpop.f32.mrb[60].mxu1  ;;  %v3565_v0 = vpack.c.bf16 %v8038_v58, %v8030_v50  ;;  %4481 = vmatprep.subr.bf16.mxu0 %v7844_v38 }
 0x2e0   : > { %v8042_v18 = vpop.eup %8041  ;;  %v6905_v4 = vadd.f32 %v3324_v35, %v9772_v39  ;;  %v3326_v40 = vpop.f32.mrb[61].mxu1  ;;  %v9978_v57 = vpack.c.bf16 %v8040_v17, %v8034_v54 }
 0x2e1   : > { %v8044_v41 = vpop.eup %8043  ;;  %v6906_v29 = vadd.f32 %v3326_v40, %v9775_v43  ;;  %v3328_v56 = vpop.f32.mrb[62].mxu1  ;;  %v3566_v44 = vpack.c.bf16 %v8042_v18, %v8032_v47  ;;  %v7852_v40 = vld [vmem:[%s10787_s3 + $0x2ec] ss:$12 sps:$4 sm:$0xff]  }
 0x2e2   : > { %v8046_v63 = vpop.eup %8045  ;;  %8061 = vtanh.f32 %v6905_v4  ;;  %v6907_v30 = vadd.f32 %v3328_v56, %v9772_v39  ;;  %v3330_v11 = vpop.f32.mrb[63].mxu1  ;;  %v9988_v55 = vpack.c.bf16 %v8044_v41, %v8036_v2  ;;  %4482 = vmatpush1.bf16.msra.mxu0 %v7842_v22  ;;  %v7850_v56 = vld [vmem:[%s10787_s3 + $0x2e8] ss:$12 sps:$4 sm:$0xff]  }
 0x2e3   : > { %v8048_v27 = vpop.eup %8047  ;;  %8063 = vtanh.f32 %v6906_v29  ;;  %v6908_v14 = vadd.f32 %v3330_v11, %v9775_v43  ;;  %4354 = vmatprep.mubr.bf16.mxu0 %v3566_v44  ;;  %4728 = vmatprep.mubr.bf16.mxu1 %v3566_v44 }
 0x2e4   : > { %v8050_v50 = vpop.eup %8049  ;;  %8065 = vtanh.f32 %v6907_v30  ;;  %4355 = vmatmul.mubr.bf16.gmra.mrb[88].mxu0 %v3565_v0  ;;  %4729 = vmatmul.mubr.bf16.gmra.mrb[120].mxu1 %v3565_v0 }
 0x2e5   : > { %v8052_v62 = vpop.eup %8051  ;;  %8067 = vtanh.f32 %v6908_v14  ;;  %4483 = vmatprep.subr.bf16.mxu0 %v7848_v60 }
 0x2e6   : > { %v8054_v37 = vpop.eup %8053  ;;  %4484 = vmatpush1.bf16.msra.mxu0 %v7846_v19 }
 0x2e7   : > { %v8056_v3 = vpop.eup %8055  ;;  %v3334_v47 = vpop.f32.mrb[64].mxu1  ;;  %v3569_v23 = vpack.c.bf16 %v8054_v37, %v8046_v63  ;;  %4485 = vmatprep.subr.bf16.mxu0 %v7852_v40 }
 0x2e8   : > { %v8058_v48 = vpop.eup %8057  ;;  %v6909_v54 = vadd.f32 %v3334_v47, %v9772_v39  ;;  %v3336_v2 = vpop.f32.mrb[65].mxu1  ;;  %v9998_v58 = vpack.c.bf16 %v8056_v3, %v8050_v50 }
 0x2e9   : > { %v8060_v46 = vpop.eup %8059  ;;  %v6910_v17 = vadd.f32 %v3336_v2, %v9775_v43  ;;  %v3338_v35 = vpop.f32.mrb[66].mxu1  ;;  %v3570_v0 = vpack.c.bf16 %v8058_v48, %v8048_v27 }
 0x2ea   : > { %8069 = vtanh.f32 %v6909_v54  ;;  %v6911_v18 = vadd.f32 %v3338_v35, %v9772_v39  ;;  %v3340_v4 = vpop.f32.mrb[67].mxu1  ;;  %v10005_v41 = vpack.c.bf16 %v8060_v46, %v8052_v62  ;;  %4486 = vmatpush1.bf16.msra.mxu0 %v7850_v56 }
 0x2eb   : > { %8071 = vtanh.f32 %v6910_v17  ;;  %v6912_v29 = vadd.f32 %v3340_v4, %v9775_v43  ;;  %4364 = vmatprep.mubr.bf16.mxu0 %v3570_v0  ;;  %4736 = vmatprep.mubr.bf16.mxu1 %v3570_v0 }
 0x2ec   : > { %v8062_v44 = vpop.eup %8061  ;;  %8073 = vtanh.f32 %v6911_v18  ;;  %4365 = vmatmul.mubr.bf16.gmra.mrb[92].mxu0 %v3569_v23  ;;  %4737 = vmatmul.mubr.bf16.gmra.mrb[124].mxu1 %v3569_v23 }
 0x2ed   : > { %v8064_v38 = vpop.eup %8063  ;;  %8075 = vtanh.f32 %v6912_v29  ;;  %4374 = vmatprep.mubr.bf16.mxu0 %v9693_v20  ;;  %4744 = vmatprep.mubr.bf16.mxu1 %v9693_v20 }
 0x2ee   : > { %v8066_v63 = vpop.eup %8065 }
 0x2ef   : > { %v8068_v30 = vpop.eup %8067  ;;  %v3344_v11 = vpop.f32.mrb[68].mxu1  ;;  %v10013_v22 = vpack.c.bf16 %v8066_v63, %v8062_v44 }
 0x2f0   : > { %v6913_v27 = vadd.f32 %v3344_v11, %v9772_v39  ;;  %v3346_v14 = vpop.f32.mrb[69].mxu1  ;;  %v10016_v60 = vpack.c.bf16 %v8068_v30, %v8064_v38 }
 0x2f1   : > { %v6914_v50 = vadd.f32 %v3346_v14, %v9775_v43  ;;  %v3348_v62 = vpop.f32.mrb[70].mxu1 }
 0x2f2   : > { %8077 = vtanh.f32 %v6913_v27  ;;  %v6915_v37 = vadd.f32 %v3348_v62, %v9772_v39  ;;  %v3350_v19 = vpop.f32.mrb[71].mxu1 }
 0x2f3   : > { %8079 = vtanh.f32 %v6914_v50  ;;  %v6916_v20 = vadd.f32 %v3350_v19, %v9775_v43 }
 0x2f4   : > { %v8070_v3 = vpop.eup %8069  ;;  %8081 = vtanh.f32 %v6915_v37  ;;  %4375 = vmatmul.mubr.bf16.gmra.mrb[96].mxu0 %v9689_v10  ;;  %4745 = vmatmul.mubr.bf16.gmra.mrb[128].mxu1 %v9689_v10 }
 0x2f5   : > { %v8072_v47 = vpop.eup %8071  ;;  %8083 = vtanh.f32 %v6916_v20  ;;  %4384 = vmatprep.mubr.bf16.mxu0 %v9705_v49  ;;  %4752 = vmatprep.mubr.bf16.mxu1 %v9705_v49 }
 0x2f6   : > { %v8074_v23 = vpop.eup %8073 }
 0x2f7   : > { %v8076_v48 = vpop.eup %8075  ;;  %v3354_v54 = vpop.f32.mrb[72].mxu1  ;;  %v10025_v2 = vpack.c.bf16 %v8074_v23, %v8070_v3 }
 0x2f8   : > { %v6917_v46 = vadd.f32 %v3354_v54, %v9772_v39  ;;  %v3356_v17 = vpop.f32.mrb[73].mxu1  ;;  %v10028_v35 = vpack.c.bf16 %v8076_v48, %v8072_v47 }
 0x2f9   : > { %v6918_v0 = vadd.f32 %v3356_v17, %v9775_v43  ;;  %v3358_v18 = vpop.f32.mrb[74].mxu1 }
 0x2fa   : > { %8085 = vtanh.f32 %v6917_v46  ;;  %v6919_v10 = vadd.f32 %v3358_v18, %v9772_v39  ;;  %v3360_v4 = vpop.f32.mrb[75].mxu1 }
 0x2fb   : > { %8087 = vtanh.f32 %v6918_v0  ;;  %v6920_v49 = vadd.f32 %v3360_v4, %v9775_v43 }
 0x2fc   : > { %v8078_v40 = vpop.eup %8077  ;;  %8089 = vtanh.f32 %v6919_v10  ;;  %4385 = vmatmul.mubr.bf16.gmra.mrb[100].mxu0 %v9701_v36  ;;  %4753 = vmatmul.mubr.bf16.gmra.mrb[132].mxu1 %v9701_v36 }
 0x2fd   : > { %v8080_v29 = vpop.eup %8079  ;;  %8091 = vtanh.f32 %v6920_v49  ;;  %4394 = vmatprep.mubr.bf16.mxu0 %v9717_v59  ;;  %4760 = vmatprep.mubr.bf16.mxu1 %v9717_v59 }
 0x2fe   : > { %v8082_v56 = vpop.eup %8081 }
 0x2ff   : > { %v8084_v44 = vpop.eup %8083  ;;  %v3364_v38 = vpop.f32.mrb[76].mxu1  ;;  %v10037_v63 = vpack.c.bf16 %v8082_v56, %v8078_v40 }
 0x300   : > { %v6921_v30 = vadd.f32 %v3364_v38, %v9772_v39  ;;  %v3366_v11 = vpop.f32.mrb[77].mxu1  ;;  %v10040_v27 = vpack.c.bf16 %v8084_v44, %v8080_v29 }
 0x301   : > { %v6922_v14 = vadd.f32 %v3366_v11, %v9775_v43  ;;  %v3368_v50 = vpop.f32.mrb[78].mxu1 }
 0x302   : > { %8093 = vtanh.f32 %v6921_v30  ;;  %v6923_v36 = vadd.f32 %v3368_v50, %v9772_v39  ;;  %v3370_v62 = vpop.f32.mrb[79].mxu1 }
 0x303   : > { %8095 = vtanh.f32 %v6922_v14  ;;  %v6924_v59 = vadd.f32 %v3370_v62, %v9775_v43 }
 0x304   : > { %v8086_v37 = vpop.eup %8085  ;;  %8097 = vtanh.f32 %v6923_v36  ;;  %4395 = vmatmul.mubr.bf16.gmra.mrb[104].mxu0 %v9713_v5  ;;  %4761 = vmatmul.mubr.bf16.gmra.mrb[136].mxu1 %v9713_v5 }
 0x305   : > { %v8088_v19 = vpop.eup %8087  ;;  %8099 = vtanh.f32 %v6924_v59  ;;  %4404 = vmatprep.mubr.bf16.mxu0 %v9729_v42  ;;  %4768 = vmatprep.mubr.bf16.mxu1 %v9729_v42 }
 0x306   : > { %v8090_v20 = vpop.eup %8089 }
 0x307   : > { %v8092_v3 = vpop.eup %8091  ;;  %v3374_v47 = vpop.f32.mrb[80].mxu1  ;;  %v10049_v23 = vpack.c.bf16 %v8090_v20, %v8086_v37 }
 0x308   : > { %v6925_v48 = vadd.f32 %v3374_v47, %v9772_v39  ;;  %v3376_v54 = vpop.f32.mrb[81].mxu1  ;;  %v10052_v46 = vpack.c.bf16 %v8092_v3, %v8088_v19 }
 0x309   : > { %v6926_v17 = vadd.f32 %v3376_v54, %v9775_v43  ;;  %v3378_v0 = vpop.f32.mrb[82].mxu1 }
 0x30a   : > { %8101 = vtanh.f32 %v6925_v48  ;;  %v6927_v5 = vadd.f32 %v3378_v0, %v9772_v39  ;;  %v3380_v18 = vpop.f32.mrb[83].mxu1 }
 0x30b   : > { %8103 = vtanh.f32 %v6926_v17  ;;  %v6928_v42 = vadd.f32 %v3380_v18, %v9775_v43 }
 0x30c   : > { %v8094_v10 = vpop.eup %8093  ;;  %8105 = vtanh.f32 %v6927_v5  ;;  %4405 = vmatmul.mubr.bf16.gmra.mrb[108].mxu0 %v9725_v33  ;;  %4769 = vmatmul.mubr.bf16.gmra.mrb[140].mxu1 %v9725_v33 }
 0x30d   : > { %v8096_v4 = vpop.eup %8095  ;;  %8107 = vtanh.f32 %v6928_v42  ;;  %4414 = vmatprep.mubr.bf16.mxu0 %v9741_v34  ;;  %4776 = vmatprep.mubr.bf16.mxu1 %v9741_v34  ;;  %v7853_v42 = vld [vmem:[%s10789_s5 + $0x40] sm:$0xff]  }
 0x30e   : > { %v8098_v49 = vpop.eup %8097  ;;  %6595 = vmatprep.subr.bf16.mxu0 %v7853_v42 }
 0x30f   : > { %v8100_v40 = vpop.eup %8099  ;;  %v3384_v29 = vpop.f32.mrb[84].mxu1  ;;  %v10061_v56 = vpack.c.bf16 %v8098_v49, %v8094_v10 }
 0x310   : > { %v6929_v44 = vadd.f32 %v3384_v29, %v9772_v39  ;;  %v3386_v38 = vpop.f32.mrb[85].mxu1  ;;  %v10064_v30 = vpack.c.bf16 %v8100_v40, %v8096_v4 }
 0x311   : > { %v6930_v11 = vadd.f32 %v3386_v38, %v9775_v43  ;;  %v3388_v14 = vpop.f32.mrb[86].mxu1 }
 0x312   : > { %8109 = vtanh.f32 %v6929_v44  ;;  %v6931_v33 = vadd.f32 %v3388_v14, %v9772_v39  ;;  %v3390_v50 = vpop.f32.mrb[87].mxu1 }
 0x313   : > { %8111 = vtanh.f32 %v6930_v11  ;;  %v6932_v34 = vadd.f32 %v3390_v50, %v9775_v43 }
 0x314   : > { %v8102_v36 = vpop.eup %8101  ;;  %8113 = vtanh.f32 %v6931_v33  ;;  %4415 = vmatmul.mubr.bf16.gmra.mrb[112].mxu0 %v9737_v61  ;;  %4777 = vmatmul.mubr.bf16.gmra.mrb[144].mxu1 %v9737_v61 }
 0x315   : > { %v8104_v62 = vpop.eup %8103  ;;  %8115 = vtanh.f32 %v6932_v34  ;;  %4424 = vmatprep.mubr.bf16.mxu0 %v9753_v25  ;;  %4784 = vmatprep.mubr.bf16.mxu1 %v9753_v25 }
 0x316   : > { %v8106_v59 = vpop.eup %8105 }
 0x317   : > { %v8108_v37 = vpop.eup %8107  ;;  %v3394_v19 = vpop.f32.mrb[88].mxu1  ;;  %v10073_v20 = vpack.c.bf16 %v8106_v59, %v8102_v36 }
 0x318   : > { %v6933_v3 = vadd.f32 %v3394_v19, %v9772_v39  ;;  %v3396_v47 = vpop.f32.mrb[89].mxu1  ;;  %v10076_v48 = vpack.c.bf16 %v8108_v37, %v8104_v62 }
 0x319   : > { %v6934_v54 = vadd.f32 %v3396_v47, %v9775_v43  ;;  %v3398_v17 = vpop.f32.mrb[90].mxu1  ;;  %v7854_v47 = vld [vmem:[%s10789_s5] sm:$0xff]  }
 0x31a   : > { %8117 = vtanh.f32 %v6933_v3  ;;  %v6935_v61 = vadd.f32 %v3398_v17, %v9772_v39  ;;  %v3400_v0 = vpop.f32.mrb[91].mxu1 }
 0x31b   : > { %8119 = vtanh.f32 %v6934_v54  ;;  %v6936_v25 = vadd.f32 %v3400_v0, %v9775_v43  ;;  %v7855_v54 = vld [vmem:[%s10789_s5 + $0x48] sm:$0xff]  }
 0x31c   : > { %v8110_v5 = vpop.eup %8109  ;;  %8121 = vtanh.f32 %v6935_v61  ;;  %4425 = vmatmul.mubr.bf16.gmra.mrb[116].mxu0 %v9749_v1  ;;  %4785 = vmatmul.mubr.bf16.gmra.mrb[148].mxu1 %v9749_v1 }
 0x31d   : > { %v8112_v18 = vpop.eup %8111  ;;  %8123 = vtanh.f32 %v6936_v25  ;;  %4434 = vmatprep.mubr.bf16.mxu0 %v9765_v21  ;;  %4792 = vmatprep.mubr.bf16.mxu1 %v9765_v21  ;;  %v7873_v25 = vld [vmem:[%s10789_s5 + $0xa0] sm:$0xff]  }
 0x31e   : > { %v8114_v10 = vpop.eup %8113 }
 0x31f   : > { %v8116_v4 = vpop.eup %8115  ;;  %v3404_v49 = vpop.f32.mrb[92].mxu1  ;;  %v10088_v40 = vpack.c.bf16 %v8114_v10, %v8110_v5 }
 0x320   : > { %v6937_v29 = vadd.f32 %v3404_v49, %v9772_v39  ;;  %v3406_v44 = vpop.f32.mrb[93].mxu1  ;;  %v10091_v1 = vpack.c.bf16 %v8116_v4, %v8112_v18  ;;  %v7874_v18 = vld [vmem:[%s10789_s5 + $0xa8] sm:$0xff]  }
 0x321   : > { %v6938_v38 = vadd.f32 %v3406_v44, %v9775_v43  ;;  %v3408_v11 = vpop.f32.mrb[94].mxu1 }
 0x322   : > { %8125 = vtanh.f32 %v6937_v29  ;;  %v6939_v21 = vadd.f32 %v3408_v11, %v9772_v39  ;;  %v3410_v14 = vpop.f32.mrb[95].mxu1 }
 0x323   : > { %8127 = vtanh.f32 %v6938_v38  ;;  %v6940_v33 = vadd.f32 %v3410_v14, %v9775_v43 }
 0x324   : > { %v8118_v50 = vpop.eup %8117  ;;  %8129 = vtanh.f32 %v6939_v21  ;;  %4435 = vmatmul.mubr.bf16.gmra.mrb[120].mxu0 %v9761_v16  ;;  %4793 = vmatmul.mubr.bf16.gmra.mrb[152].mxu1 %v9761_v16 }
 0x325   : > { %v8120_v34 = vpop.eup %8119  ;;  %8131 = vtanh.f32 %v6940_v33  ;;  %4444 = vmatprep.mubr.bf16.mxu0 %v9783_v9  ;;  %4800 = vmatprep.mubr.bf16.mxu1 %v9783_v9 }
 0x326   : > { %v8122_v36 = vpop.eup %8121 }
 0x327   : > { %v8124_v62 = vpop.eup %8123  ;;  %v10100_v59 = vpack.c.bf16 %v8122_v36, %v8118_v50 }
 0x328   : > { %v10102_v39 = vpack.c.bf16 %v8124_v62, %v8120_v34 }
 0x32c   : > { %v8126_v37 = vpop.eup %8125  ;;  %4445 = vmatmul.mubr.bf16.gmra.mrb[124].mxu0 %v9779_v45  ;;  %4801 = vmatmul.mubr.bf16.gmra.mrb[156].mxu1 %v9779_v45  ;;  %v7856_v45 = vld [vmem:[%s10789_s5 + $0x8] sm:$0xff]  }
 0x32d   : > { %v8128_v43 = vpop.eup %8127  ;;  %4487 = vmatprep.mubr.bf16.mxu0 %v9848_v15  ;;  %4841 = vmatprep.mubr.bf16.mxu1 %v9848_v15  ;;  %v7858_v15 = vld [vmem:[%s10789_s5 + $0x10] sm:$0xff]  }
 0x32e   : > { %v8130_v16 = vpop.eup %8129 }
 0x32f   : > { %v8132_v19 = vpop.eup %8131  ;;  %v10108_v3 = vpack.c.bf16 %v8130_v16, %v8126_v37 }
 0x330   : > { %v10110_v9 = vpack.c.bf16 %v8132_v19, %v8128_v43 }
 0x334   : > { %4488 = vmatmul.mubr.bf16.vlgmr.msra.gmra.mrb[64].mxu0 %v9831_v13  ;;  %4842 = vmatmul.mubr.bf16.vlgmr.msra.gmra.mrb[160].mxu1 %v9831_v13  ;;  %v7857_v13 = vld [vmem:[%s10789_s5 + $0x50] sm:$0xff]  }
 0x335   : > { %4497 = vmatprep.mubr.bf16.mxu0 %v9884_v12  ;;  %4849 = vmatprep.mubr.bf16.mxu1 %v9884_v12  ;;  %v7860_v12 = vld [vmem:[%s10789_s5 + $0x18] sm:$0xff]  }
 0x336   : > { %6596 = vmatpush3.bf16.msra.mxu0 %v7854_v47 }
 0x337   : > { %6597 = vmatprep.subr.bf16.mxu0 %v7855_v54 }
 0x33a   : > { %6598 = vmatpush3.bf16.msra.mxu0 %v7856_v45 }
 0x33b   : > { %6599 = vmatprep.subr.bf16.mxu0 %v7857_v13 }
 0x33c   : > { %4498 = vmatmul.mubr.bf16.gmra.mrb[68].mxu0 %v9867_v28  ;;  %4850 = vmatmul.mubr.bf16.gmra.mrb[164].mxu1 %v9867_v28  ;;  %v7859_v28 = vld [vmem:[%s10789_s5 + $0x58] sm:$0xff]  }
 0x33d   : > { %4507 = vmatprep.mubr.bf16.mxu0 %v9920_v24  ;;  %4857 = vmatprep.mubr.bf16.mxu1 %v9920_v24  ;;  %v7862_v24 = vld [vmem:[%s10789_s5 + $0x60] sm:$0xff]  }
 0x33e   : > { %6600 = vmatpush3.bf16.msra.mxu0 %v7858_v15 }
 0x33f   : > { %6601 = vmatprep.subr.bf16.mxu0 %v7859_v28 }
 0x342   : > { %6602 = vmatpush3.bf16.msra.mxu0 %v7860_v12 }
 0x343   : > { %6603 = vmatprep.subr.bf16.mxu0 %v7862_v24 }
 0x344   : > { %4508 = vmatmul.mubr.bf16.gmra.mrb[72].mxu0 %v9903_v26  ;;  %4858 = vmatmul.mubr.bf16.gmra.mrb[168].mxu1 %v9903_v26  ;;  %v7861_v26 = vld [vmem:[%s10789_s5 + $0x80] sm:$0xff]  }
 0x345   : > { %4517 = vmatprep.mubr.bf16.mxu0 %v9944_v52  ;;  %4865 = vmatprep.mubr.bf16.mxu1 %v9944_v52  ;;  %v7864_v52 = vld [vmem:[%s10789_s5 + $0x88] sm:$0xff]  }
 0x346   : > { %6731 = vmatprep.subr.bf16.mxu1 %v7861_v26 }
 0x347   : > { %6732 = vmatpush3.bf16.msra.mxu1 %v7861_v26 }
 0x348   : > { %6733 = vmatprep.subr.bf16.mxu1 %v7864_v52 }
 0x34b   : > { %6734 = vmatpush3.bf16.msra.mxu1 %v7864_v52 }
 0x34c   : > { %4518 = vmatmul.mubr.bf16.gmra.mrb[76].mxu0 %v9933_v32  ;;  %4866 = vmatmul.mubr.bf16.gmra.mrb[172].mxu1 %v9933_v32  ;;  %v7863_v32 = vld [vmem:[%s10789_s5 + $0x20] sm:$0xff]  }
 0x34d   : > { %4527 = vmatprep.mubr.bf16.mxu0 %v9968_v51  ;;  %4873 = vmatprep.mubr.bf16.mxu1 %v9968_v51  ;;  %v7866_v51 = vld [vmem:[%s10789_s5 + $0x28] sm:$0xff]  }
 0x34e   : > { %6604 = vmatpush3.bf16.msra.mxu0 %v7863_v32 }
 0x354   : > { %4528 = vmatmul.mubr.bf16.gmra.mrb[80].mxu0 %v9957_v31  ;;  %4874 = vmatmul.mubr.bf16.gmra.mrb[176].mxu1 %v9957_v31  ;;  %v7865_v31 = vld [vmem:[%s10789_s5 + $0x68] sm:$0xff]  }
 0x355   : > { %4537 = vmatprep.mubr.bf16.mxu0 %v9988_v55  ;;  %4881 = vmatprep.mubr.bf16.mxu1 %v9988_v55  ;;  %v7868_v55 = vld [vmem:[%s10789_s5 + $0x70] sm:$0xff]  }
 0x356   : > { %6605 = vmatprep.subr.bf16.mxu0 %v7865_v31 }
 0x357   : > { %6606 = vmatpush3.bf16.msra.mxu0 %v7866_v51 }
 0x358   : > { %6607 = vmatprep.subr.bf16.mxu0 %v7868_v55 }
 0x35c   : > { %4538 = vmatmul.mubr.bf16.gmra.mrb[84].mxu0 %v9978_v57  ;;  %4882 = vmatmul.mubr.bf16.gmra.mrb[180].mxu1 %v9978_v57  ;;  %v7867_v57 = vld [vmem:[%s10789_s5 + $0x90] sm:$0xff]  }
 0x35d   : > { %4547 = vmatprep.mubr.bf16.mxu0 %v10005_v41  ;;  %4889 = vmatprep.mubr.bf16.mxu1 %v10005_v41 }
 0x35e   : > { %6735 = vmatprep.subr.bf16.mxu1 %v7867_v57 }
 0x35f   : > { %6736 = vmatpush3.bf16.msra.mxu1 %v7867_v57 }
 0x364   : > { %4548 = vmatmul.mubr.bf16.gmra.mrb[88].mxu0 %v9998_v58  ;;  %4890 = vmatmul.mubr.bf16.gmra.mrb[184].mxu1 %v9998_v58  ;;  %v7869_v58 = vld [vmem:[%s10789_s5 + $0x30] sm:$0xff]  }
 0x365   : > { %4557 = vmatprep.mubr.bf16.mxu0 %v10016_v60  ;;  %4897 = vmatprep.mubr.bf16.mxu1 %v10016_v60 }
 0x366   : > { %6608 = vmatpush3.bf16.msra.mxu0 %v7869_v58 }
 0x36c   : > { %4558 = vmatmul.mubr.bf16.gmra.mrb[92].mxu0 %v10013_v22  ;;  %4898 = vmatmul.mubr.bf16.gmra.mrb[188].mxu1 %v10013_v22 }
 0x36d   : > { %4567 = vmatprep.mubr.bf16.mxu0 %v10028_v35  ;;  %4905 = vmatprep.mubr.bf16.mxu1 %v10028_v35 }
 0x374   : > { %4568 = vmatmul.mubr.bf16.gmra.mrb[96].mxu0 %v10025_v2  ;;  %4906 = vmatmul.mubr.bf16.gmra.mrb[192].mxu1 %v10025_v2 }
 0x375   : > { %4577 = vmatprep.mubr.bf16.mxu0 %v10040_v27  ;;  %4913 = vmatprep.mubr.bf16.mxu1 %v10040_v27 }
 0x37c   : > { %4578 = vmatmul.mubr.bf16.gmra.mrb[100].mxu0 %v10037_v63  ;;  %4914 = vmatmul.mubr.bf16.gmra.mrb[196].mxu1 %v10037_v63 }
 0x37d   : > { %4587 = vmatprep.mubr.bf16.mxu0 %v10052_v46  ;;  %4921 = vmatprep.mubr.bf16.mxu1 %v10052_v46  ;;  %v7871_v46 = vld [vmem:[%s10789_s5 + $0x78] sm:$0xff]  }
 0x37e   : > { %6609 = vmatprep.subr.bf16.mxu0 %v7871_v46 }
 0x380   : > { %v6387_v41 = vpop.f32.mrb[96].mxu1 }
 0x381   : > { %v6388_v22 = vpop.f32.mrb[97].mxu1 }
 0x382   : > { %v10204_v60 = vadd.f32 %v6388_v22, %v6387_v41  ;;  %v6390_v2 = vpop.f32.mrb[98].mxu1 }
 0x383   : > { %v6391_v35 = vpop.f32.mrb[99].mxu1 }
 0x384   : > { %4588 = vmatmul.mubr.bf16.gmra.mrb[104].mxu0 %v10049_v23  ;;  %4922 = vmatmul.mubr.bf16.gmra.mrb[200].mxu1 %v10049_v23  ;;  %v10206_v63 = vadd.f32 %v6391_v35, %v6390_v2  ;;  %v7870_v23 = vld [vmem:[%s10789_s5 + $0x98] sm:$0xff]  }
 0x385   : > { %4597 = vmatprep.mubr.bf16.mxu0 %v10064_v30  ;;  %4929 = vmatprep.mubr.bf16.mxu1 %v10064_v30  ;;  %v7872_v30 = vld [vmem:[%s10789_s5 + $0x38] sm:$0xff]  }
 0x386   : > { %6737 = vmatprep.subr.bf16.mxu1 %v7870_v23  ;;  %6610 = vmatpush3.bf16.msra.mxu0 %v7872_v30 }
 0x387   : > { %6738 = vmatpush3.bf16.msra.mxu1 %v7870_v23 }
 0x388   : > { %6739 = vmatprep.subr.bf16.mxu1 %v7873_v25 }
 0x38b   : > { %6740 = vmatpush3.bf16.msra.mxu1 %v7873_v25 }
 0x38c   : > { %4598 = vmatmul.mubr.bf16.gmra.mrb[108].mxu0 %v10061_v56  ;;  %4930 = vmatmul.mubr.bf16.gmra.mrb[204].mxu1 %v10061_v56 }
 0x38d   : > { %4607 = vmatprep.mubr.bf16.mxu0 %v10076_v48  ;;  %4937 = vmatprep.mubr.bf16.mxu1 %v10076_v48 }
 0x38e   : > { %6741 = vmatprep.subr.bf16.mxu1 %v7874_v18 }
 0x38f   : > { %v6393_v27 = vpop.f32.mrb[100].mxu1  ;;  %6742 = vmatpush3.bf16.msra.mxu1 %v7874_v18 }
 0x390   : > { %v6394_v17 = vpop.f32.mrb[101].mxu1 }
 0x391   : > { %v10221_v61 = vadd.f32 %v6394_v17, %v6393_v27  ;;  %v6396_v56 = vpop.f32.mrb[102].mxu1 }
 0x392   : > { %v6397_v48 = vpop.f32.mrb[103].mxu1 }
 0x393   : > { %v10223_v0 = vadd.f32 %v6397_v48, %v6396_v56 }
 0x394   : > { %4608 = vmatmul.mubr.bf16.gmra.mrb[112].mxu0 %v10073_v20  ;;  %4938 = vmatmul.mubr.bf16.gmra.mrb[208].mxu1 %v10073_v20  ;;  %v7875_v20 = vld [vmem:[%s10789_s5 + $0xb0] sm:$0xff]  }
 0x395   : > { %4617 = vmatprep.mubr.bf16.mxu0 %v10091_v1  ;;  %4945 = vmatprep.mubr.bf16.mxu1 %v10091_v1  ;;  %v7876_v1 = vld [vmem:[%s10789_s5 + $0xb8] sm:$0xff]  }
 0x396   : > { %6743 = vmatprep.subr.bf16.mxu1 %v7875_v20 }
 0x397   : > { %v6399_v5 = vpop.f32.mrb[104].mxu1  ;;  %6744 = vmatpush3.bf16.msra.mxu1 %v7875_v20 }
 0x398   : > { %v6400_v42 = vpop.f32.mrb[105].mxu1  ;;  %6745 = vmatprep.subr.bf16.mxu1 %v7876_v1 }
 0x399   : > { %v10235_v10 = vadd.f32 %v6400_v42, %v6399_v5  ;;  %v6402_v4 = vpop.f32.mrb[106].mxu1 }
 0x39a   : > { %v6403_v49 = vpop.f32.mrb[107].mxu1 }
 0x39b   : > { %v10237_v29 = vadd.f32 %v6403_v49, %v6402_v4  ;;  %6746 = vmatpush3.bf16.msra.mxu1 %v7876_v1 }
 0x39c   : > { %4618 = vmatmul.mubr.bf16.gmra.mrb[116].mxu0 %v10088_v40  ;;  %4946 = vmatmul.mubr.bf16.gmra.mrb[212].mxu1 %v10088_v40 }
 0x39d   : > { %4627 = vmatprep.mubr.bf16.mxu0 %v10102_v39  ;;  %4953 = vmatprep.mubr.bf16.mxu1 %v10102_v39 }
 0x39f   : > { %v6405_v44 = vpop.f32.mrb[108].mxu1 }
 0x3a0   : > { %v6406_v38 = vpop.f32.mrb[109].mxu1 }
 0x3a1   : > { %v10249_v11 = vadd.f32 %v6406_v38, %v6405_v44  ;;  %v6408_v21 = vpop.f32.mrb[110].mxu1 }
 0x3a2   : > { %v6409_v14 = vpop.f32.mrb[111].mxu1 }
 0x3a3   : > { %v10251_v33 = vadd.f32 %v6409_v14, %v6408_v21 }
 0x3a4   : > { %4628 = vmatmul.mubr.bf16.gmra.mrb[120].mxu0 %v10100_v59  ;;  %4954 = vmatmul.mubr.bf16.gmra.mrb[216].mxu1 %v10100_v59 }
 0x3a5   : > { %4637 = vmatprep.mubr.bf16.mxu0 %v10110_v9  ;;  %4961 = vmatprep.mubr.bf16.mxu1 %v10110_v9 }
 0x3a7   : > { %v6411_v40 = vpop.f32.mrb[112].mxu1 }
 0x3a8   : > { %v6412_v50 = vpop.f32.mrb[113].mxu1 }
 0x3a9   : > { %v10257_v34 = vadd.f32 %v6412_v50, %v6411_v40  ;;  %v6414_v36 = vpop.f32.mrb[114].mxu1 }
 0x3aa   : > { %v6415_v62 = vpop.f32.mrb[115].mxu1 }
 0x3ab   : > { %v10259_v39 = vadd.f32 %v6415_v62, %v6414_v36 }
 0x3ac   : > { %4638 = vmatmul.mubr.bf16.gmra.mrb[124].mxu0 %v10108_v3  ;;  %4962 = vmatmul.mubr.bf16.gmra.mrb[220].mxu1 %v10108_v3 }
 0x3af   : > { %v6417_v37 = vpop.f32.mrb[116].mxu1 }
 0x3b0   : > { %v6418_v43 = vpop.f32.mrb[117].mxu1 }
 0x3b1   : > { %v10263_v16 = vadd.f32 %v6418_v43, %v6417_v37  ;;  %v6420_v59 = vpop.f32.mrb[118].mxu1 }
 0x3b2   : > { %v6421_v19 = vpop.f32.mrb[119].mxu1 }
 0x3b3   : > { %v10265_v47 = vadd.f32 %v6421_v19, %v6420_v59 }
 0x3b7   : > { %v6423_v9 = vpop.f32.mrb[120].mxu1 }
 0x3b8   : > { %v6424_v54 = vpop.f32.mrb[121].mxu1 }
 0x3b9   : > { %v10267_v45 = vadd.f32 %v6424_v54, %v6423_v9  ;;  %v6426_v13 = vpop.f32.mrb[122].mxu1 }
 0x3ba   : > { %v6427_v15 = vpop.f32.mrb[123].mxu1 }
 0x3bb   : > { %v10269_v28 = vadd.f32 %v6427_v15, %v6426_v13 }
 0x3bf   : > { %v6429_v12 = vpop.f32.mrb[124].mxu1 }
 0x3c0   : > { %v6430_v26 = vpop.f32.mrb[125].mxu1 }
 0x3c1   : > { %v10271_v24 = vadd.f32 %v6430_v26, %v6429_v12  ;;  %v6432_v3 = vpop.f32.mrb[126].mxu1 }
 0x3c2   : > { %v6433_v32 = vpop.f32.mrb[127].mxu1 }
 0x3c3   : > { %v10273_v52 = vadd.f32 %v6433_v32, %v6432_v3 }
 0x3c7   : > { %v6435_v31 = vpop.f32.mrb[128].mxu1 }
 0x3c8   : > { %v6436_v51 = vpop.f32.mrb[129].mxu1 }
 0x3c9   : > { %v10275_v57 = vadd.f32 %v6436_v51, %v6435_v31  ;;  %v6438_v55 = vpop.f32.mrb[130].mxu1 }
 0x3ca   : > { %v6439_v58 = vpop.f32.mrb[131].mxu1 }
 0x3cb   : > { %v10277_v41 = vadd.f32 %v6439_v58, %v6438_v55  ;;  %v3733_v55 = vld [vmem:[%s10788_s4] sm:$0x7] }
 0x3cf   : > { %v6441_v22 = vpop.f32.mrb[132].mxu1 }
 0x3d0   : > { %v6442_v2 = vpop.f32.mrb[133].mxu1 }
 0x3d1   : > { %v10279_v35 = vadd.f32 %v6442_v2, %v6441_v22  ;;  %v6444_v27 = vpop.f32.mrb[134].mxu1  ;;  %v10312_v2 = vrot.slane %v3733_v55, %v822_v8 }
 0x3d2   : > { %v6445_v23 = vpop.f32.mrb[135].mxu1 }
 0x3d3   : > { %v10281_v46 = vadd.f32 %v6445_v23, %v6444_v27  ;;  %v10316_v27 = vrot.slane %v3733_v55, %v830_v53  ;;  %v10320_v23 = vrot.slane %v3733_v55, %v826_v7 }
 0x3d5   : > { %v4686_v53 = vadd.f32 %v10206_v63, %v10316_v27 }
 0x3d7   : > { %v6447_v30 = vpop.f32.mrb[136].mxu1 }
 0x3d8   : > { %v6448_v17 = vpop.f32.mrb[137].mxu1 }
 0x3d9   : > { %v10283_v56 = vadd.f32 %v6448_v17, %v6447_v30  ;;  %v6450_v48 = vpop.f32.mrb[138].mxu1 }
 0x3da   : > { %v6451_v25 = vpop.f32.mrb[139].mxu1 }
 0x3db   : > { %v10285_v5 = vadd.f32 %v6451_v25, %v6450_v48 }
 0x3df   : > { %v6453_v18 = vpop.f32.mrb[140].mxu1 }
 0x3e0   : > { %v6454_v42 = vpop.f32.mrb[141].mxu1 }
 0x3e1   : > { %v10287_v4 = vadd.f32 %v6454_v42, %v6453_v18  ;;  %v6456_v49 = vpop.f32.mrb[142].mxu1  ;;  %v4683_v42 = vadd.f32 %v10204_v60, %v10316_v27 }
 0x3e2   : > { %v6457_v20 = vpop.f32.mrb[143].mxu1 }
 0x3e3   : > { %v10289_v44 = vadd.f32 %v6457_v20, %v6456_v49 }
 0x3e7   : > { %v6459_v1 = vpop.f32.mrb[144].mxu1 }
 0x3e8   : > { %v6460_v38 = vpop.f32.mrb[145].mxu1 }
 0x3e9   : > { %v10291_v21 = vadd.f32 %v6460_v38, %v6459_v1  ;;  %v6462_v14 = vpop.f32.mrb[146].mxu1 }
 0x3ea   : > { %v6463_v40 = vpop.f32.mrb[147].mxu1 }
 0x3eb   : > { %v10293_v50 = vadd.f32 %v6463_v40, %v6462_v14 }
 0x3ef   : > { %v6465_v36 = vpop.f32.mrb[148].mxu1 }
 0x3f0   : > { %v6466_v62 = vpop.f32.mrb[149].mxu1 }
 0x3f1   : > { %v10295_v37 = vadd.f32 %v6466_v62, %v6465_v36  ;;  %v6468_v43 = vpop.f32.mrb[150].mxu1 }
 0x3f2   : > { %v6469_v59 = vpop.f32.mrb[151].mxu1 }
 0x3f3   : > { %v10297_v19 = vadd.f32 %v6469_v59, %v6468_v43 }
 0x3f7   : > { %v6471_v9 = vpop.f32.mrb[152].mxu1 }
 0x3f8   : > { %v6472_v54 = vpop.f32.mrb[153].mxu1 }
 0x3f9   : > { %v10299_v13 = vadd.f32 %v6472_v54, %v6471_v9  ;;  %v6474_v15 = vpop.f32.mrb[154].mxu1  ;;  %v4691_v54 = vadd.f32 %v10221_v61, %v10316_v27 }
 0x3fa   : > { %v6475_v12 = vpop.f32.mrb[155].mxu1 }
 0x3fb   : > { %v10301_v26 = vadd.f32 %v6475_v12, %v6474_v15 }
 0x3ff   : > { %v6477_v3 = vpop.f32.mrb[156].mxu1 }
 0x400   : > { %v6478_v32 = vpop.f32.mrb[157].mxu1 }
 0x401   : > { %v10303_v31 = vadd.f32 %v6478_v32, %v6477_v3  ;;  %v6480_v51 = vpop.f32.mrb[158].mxu1 }
 0x402   : > { %v6481_v58 = vpop.f32.mrb[159].mxu1 }
 0x403   : > { %v10308_v22 = vadd.f32 %v6481_v58, %v6480_v51  ;;  %v4694_v51 = vadd.f32 %v10223_v0, %v10316_v27 }
 0x407   : > { %v4489_v30 = vpop.f32.mrb[64].mxu0  ;;  %v6499_v17 = vpop.f32.mrb[160].mxu1 }
 0x408   : > { %v6941_v48 = vadd.f32 %v4489_v30, %v10312_v2  ;;  %v4491_v25 = vpop.f32.mrb[65].mxu0  ;;  %v6500_v18 = vpop.f32.mrb[161].mxu1 }
 0x409   : > { %v6942_v8 = vadd.f32 %v4491_v25, %v10320_v23  ;;  %v6501_v49 = vadd.f32 %v6500_v18, %v6499_v17  ;;  %v4493_v20 = vpop.f32.mrb[66].mxu0  ;;  %v6502_v1 = vpop.f32.mrb[162].mxu1 }
 0x40a   : > { %8133 = vtanh.f32 %v6941_v48  ;;  %v6943_v6 = vadd.f32 %v4493_v20, %v10312_v2  ;;  %v4495_v7 = vpop.f32.mrb[67].mxu0  ;;  %v6503_v38 = vpop.f32.mrb[163].mxu1 }
 0x40b   : > { %8135 = vtanh.f32 %v6942_v8  ;;  %v4844_v14 = vadd.f32 %v6501_v49, %v4683_v42  ;;  %v6944_v40 = vadd.f32 %v4495_v7, %v10320_v23  ;;  %v6504_v36 = vadd.f32 %v6503_v38, %v6502_v1 }
 0x40c   : > { %8137 = vtanh.f32 %v6943_v6 }
 0x40d   : > { %8139 = vtanh.f32 %v4844_v14  ;;  %v4847_v60 = vadd.f32 %v6504_v36, %v4686_v53 }
 0x40e   : > { %8141 = vtanh.f32 %v6944_v40  ;;  %v4699_v40 = vadd.f32 %v10235_v10, %v10316_v27 }
 0x40f   : > { %8143 = vtanh.f32 %v4847_v60  ;;  %v4499_v62 = vpop.f32.mrb[68].mxu0  ;;  %v6505_v43 = vpop.f32.mrb[164].mxu1 }
 0x410   : > { %v6945_v59 = vadd.f32 %v4499_v62, %v10312_v2  ;;  %v4501_v63 = vpop.f32.mrb[69].mxu0  ;;  %v6506_v9 = vpop.f32.mrb[165].mxu1 }
 0x411   : > { %v6946_v15 = vadd.f32 %v4501_v63, %v10320_v23  ;;  %v6507_v12 = vadd.f32 %v6506_v9, %v6505_v43  ;;  %v4503_v3 = vpop.f32.mrb[70].mxu0  ;;  %v6508_v32 = vpop.f32.mrb[166].mxu1  ;;  %v4702_v63 = vadd.f32 %v10237_v29, %v10316_v27 }
 0x412   : > { %8145 = vtanh.f32 %v6945_v59  ;;  %v6947_v55 = vadd.f32 %v4503_v3, %v10312_v2  ;;  %v4505_v58 = vpop.f32.mrb[71].mxu0  ;;  %v6509_v30 = vpop.f32.mrb[167].mxu1 }
 0x413   : > { %8147 = vtanh.f32 %v6946_v15  ;;  %v4852_v17 = vadd.f32 %v6507_v12, %v4691_v54  ;;  %v6948_v48 = vadd.f32 %v4505_v58, %v10320_v23  ;;  %v6510_v25 = vadd.f32 %v6509_v30, %v6508_v32 }
 0x414   : > { %v8134_v18 = vpop.eup %8133  ;;  %8149 = vtanh.f32 %v6947_v55 }
 0x415   : > { %v8136_v61 = vpop.eup %8135  ;;  %8151 = vtanh.f32 %v4852_v17  ;;  %v4855_v42 = vadd.f32 %v6510_v25, %v4694_v51 }
 0x416   : > { %v8138_v8 = vpop.eup %8137  ;;  %8153 = vtanh.f32 %v6948_v48 }
 0x417   : > { %v8140_v49 = vpop.eup %8139  ;;  %8155 = vtanh.f32 %v4855_v42  ;;  %v4509_v0 = vpop.f32.mrb[72].mxu0  ;;  %v5066_v1 = vpack.c.bf16 %v8138_v8, %v8134_v18 }
 0x418   : > { %v6511_v20 = vpop.f32.mrb[168].mxu1  ;;  %v8142_v53 = vpop.eup %8141  ;;  %v6949_v6 = vadd.f32 %v4509_v0, %v10312_v2  ;;  %v4707_v0 = vadd.f32 %v10249_v11, %v10316_v27 }
 0x419   : > { %v4511_v7 = vpop.f32.mrb[73].mxu0  ;;  %v6512_v38 = vpop.f32.mrb[169].mxu1  ;;  %v5067_v59 = vpack.c.bf16 %v8142_v53, %v8136_v61 }
 0x41a   : > { %v8144_v14 = vpop.eup %8143  ;;  %v6950_v36 = vadd.f32 %v4511_v7, %v10320_v23  ;;  %v6513_v60 = vadd.f32 %v6512_v38, %v6511_v20  ;;  %v4513_v62 = vpop.f32.mrb[74].mxu0  ;;  %8157 = vtanh.f32 %v6949_v6  ;;  %v4710_v38 = vadd.f32 %v10251_v33, %v10316_v27 }
 0x41b   : > { %v6514_v43 = vpop.f32.mrb[170].mxu1  ;;  %v6951_v9 = vadd.f32 %v4513_v62, %v10312_v2  ;;  %v4515_v54 = vpop.f32.mrb[75].mxu0  ;;  %v5068_v12 = vpack.c.bf16 %v8144_v14, %v8140_v49  ;;  %5345 = vmatprep.mubr.bf16.mxu0 %v5067_v59 }
 0x41c   : > { %v6515_v15 = vpop.f32.mrb[171].mxu1  ;;  %8159 = vtanh.f32 %v6950_v36  ;;  %v4860_v3 = vadd.f32 %v6513_v60, %v4699_v40  ;;  %v6952_v32 = vadd.f32 %v4515_v54, %v10320_v23  ;;  %v8146_v51 = vpop.eup %8145  ;;  %5346 = vmatmul.mubr.bf16.vlgmr.msra.gmra.mrb[128].mxu0 %v5066_v1 }
 0x41d   : > { %v6516_v10 = vadd.f32 %v6515_v15, %v6514_v43  ;;  %8161 = vtanh.f32 %v6951_v9  ;;  %6747 = vmatprep.mubr.bf16.mxu1 %v5068_v12  ;;  %v8148_v55 = vpop.eup %8147 }
 0x41e   : > { %8163 = vtanh.f32 %v4860_v3  ;;  %v8150_v29 = vpop.eup %8149 }
 0x41f   : > { %v4863_v58 = vadd.f32 %v6516_v10, %v4702_v63  ;;  %8165 = vtanh.f32 %v6952_v32  ;;  %v8152_v30 = vpop.eup %8151  ;;  %v4519_v17 = vpop.f32.mrb[76].mxu0  ;;  %v5069_v25 = vpack.c.bf16 %v8150_v29, %v8146_v51  ;;  %v4715_v29 = vadd.f32 %v10257_v34, %v10316_v27 }
 0x420   : > { %v6517_v48 = vpop.f32.mrb[172].mxu1  ;;  %v8154_v18 = vpop.eup %8153  ;;  %v6953_v61 = vadd.f32 %v4519_v17, %v10312_v2 }
 0x421   : > { %8167 = vtanh.f32 %v4863_v58  ;;  %v4521_v42 = vpop.f32.mrb[77].mxu0  ;;  %v6518_v8 = vpop.f32.mrb[173].mxu1  ;;  %v5070_v7 = vpack.c.bf16 %v8154_v18, %v8148_v55 }
 0x422   : > { %v8156_v49 = vpop.eup %8155  ;;  %v6954_v20 = vadd.f32 %v4521_v42, %v10320_v23  ;;  %v6519_v1 = vadd.f32 %v6518_v8, %v6517_v48  ;;  %v4523_v53 = vpop.f32.mrb[78].mxu0  ;;  %8169 = vtanh.f32 %v6953_v61  ;;  %v4718_v61 = vadd.f32 %v10259_v39, %v10316_v27 }
 0x423   : > { %v6520_v6 = vpop.f32.mrb[174].mxu1  ;;  %v6955_v14 = vadd.f32 %v4523_v53, %v10312_v2  ;;  %v4525_v40 = vpop.f32.mrb[79].mxu0  ;;  %v5071_v60 = vpack.c.bf16 %v8156_v49, %v8152_v30  ;;  %5353 = vmatprep.mubr.bf16.mxu0 %v5070_v7 }
 0x424   : > { %v6521_v36 = vpop.f32.mrb[175].mxu1  ;;  %8171 = vtanh.f32 %v6954_v20  ;;  %v4868_v62 = vadd.f32 %v6519_v1, %v4707_v0  ;;  %v6956_v43 = vadd.f32 %v4525_v40, %v10320_v23  ;;  %v8158_v59 = vpop.eup %8157  ;;  %5354 = vmatmul.mubr.bf16.gmra.mrb[132].mxu0 %v5069_v25 }
 0x425   : > { %v6522_v11 = vadd.f32 %v6521_v36, %v6520_v6  ;;  %8173 = vtanh.f32 %v6955_v14  ;;  %6748 = vmatmul.mubr.bf16.vlgmr.msra.gmra.mrb[224].mxu1 %v5071_v60 }
 0x426   : > { %v8160_v63 = vpop.eup %8159  ;;  %8175 = vtanh.f32 %v4868_v62 }
 0x427   : > { %v4871_v9 = vadd.f32 %v6522_v11, %v4710_v38  ;;  %v8162_v33 = vpop.eup %8161  ;;  %8177 = vtanh.f32 %v6956_v43  ;;  %v4529_v15 = vpop.f32.mrb[80].mxu0 }
 0x428   : > { %v8164_v54 = vpop.eup %8163  ;;  %v6523_v12 = vpop.f32.mrb[176].mxu1  ;;  %v5072_v3 = vpack.c.bf16 %v8162_v33, %v8158_v59  ;;  %v6957_v10 = vadd.f32 %v4529_v15, %v10312_v2 }
 0x429   : > { %8179 = vtanh.f32 %v4871_v9  ;;  %v8166_v32 = vpop.eup %8165  ;;  %v4531_v51 = vpop.f32.mrb[81].mxu0 }
 0x42a   : > { %v6524_v55 = vpop.f32.mrb[177].mxu1  ;;  %v6958_v30 = vadd.f32 %v4531_v51, %v10320_v23  ;;  %v4533_v48 = vpop.f32.mrb[82].mxu0  ;;  %v5073_v18 = vpack.c.bf16 %v8166_v32, %v8160_v63  ;;  %8181 = vtanh.f32 %v6957_v10  ;;  %v4723_v63 = vadd.f32 %v10263_v16, %v10316_v27 }
 0x42b   : > { %v8168_v58 = vpop.eup %8167  ;;  %v6525_v17 = vadd.f32 %v6524_v55, %v6523_v12  ;;  %v6526_v25 = vpop.f32.mrb[178].mxu1  ;;  %v6959_v42 = vadd.f32 %v4533_v48, %v10312_v2 }
 0x42c   : > { %v4535_v8 = vpop.f32.mrb[83].mxu0  ;;  %v6527_v49 = vpop.f32.mrb[179].mxu1  ;;  %v5074_v0 = vpack.c.bf16 %v8168_v58, %v8164_v54  ;;  %8183 = vtanh.f32 %v6958_v30  ;;  %5361 = vmatprep.mubr.bf16.mxu0 %v5073_v18 }
 0x42d   : > { %v4876_v20 = vadd.f32 %v6525_v17, %v4715_v29  ;;  %v6960_v1 = vadd.f32 %v4535_v8, %v10320_v23  ;;  %v6528_v34 = vadd.f32 %v6527_v49, %v6526_v25  ;;  %v8170_v53 = vpop.eup %8169  ;;  %8185 = vtanh.f32 %v6959_v42  ;;  %5362 = vmatmul.mubr.bf16.gmra.mrb[136].mxu0 %v5072_v3 }
 0x42e   : > { %6751 = vmatprep.mubr.bf16.mxu1 %v5074_v0  ;;  %v8172_v6 = vpop.eup %8171  ;;  %v4726_v3 = vadd.f32 %v10265_v47, %v10316_v27 }
 0x42f   : > { %8187 = vtanh.f32 %v4876_v20  ;;  %v4879_v7 = vadd.f32 %v6528_v34, %v4718_v61  ;;  %v8174_v39 = vpop.eup %8173  ;;  %v4539_v14 = vpop.f32.mrb[84].mxu0  ;;  %v4731_v34 = vadd.f32 %v10267_v45, %v10316_v27 }
 0x430   : > { %8189 = vtanh.f32 %v6960_v1  ;;  %v8176_v38 = vpop.eup %8175  ;;  %v6529_v40 = vpop.f32.mrb[180].mxu1  ;;  %v5075_v36 = vpack.c.bf16 %v8174_v39, %v8170_v53  ;;  %v6961_v62 = vadd.f32 %v4539_v14, %v10312_v2  ;;  %v4734_v14 = vadd.f32 %v10269_v28, %v10316_v27 }
 0x431   : > { %8191 = vtanh.f32 %v4879_v7  ;;  %v8178_v60 = vpop.eup %8177  ;;  %v4541_v43 = vpop.f32.mrb[85].mxu0 }
 0x432   : > { %v6530_v11 = vpop.f32.mrb[181].mxu1  ;;  %v6962_v9 = vadd.f32 %v4541_v43, %v10320_v23  ;;  %v4543_v54 = vpop.f32.mrb[86].mxu0  ;;  %v5076_v12 = vpack.c.bf16 %v8178_v60, %v8172_v6  ;;  %8193 = vtanh.f32 %v6961_v62 }
 0x433   : > { %v8180_v59 = vpop.eup %8179  ;;  %v6531_v33 = vadd.f32 %v6530_v11, %v6529_v40  ;;  %v6532_v15 = vpop.f32.mrb[182].mxu1  ;;  %v6963_v32 = vadd.f32 %v4543_v54, %v10312_v2 }
 0x434   : > { %v4545_v10 = vpop.f32.mrb[87].mxu0  ;;  %v6533_v51 = vpop.f32.mrb[183].mxu1  ;;  %v5077_v55 = vpack.c.bf16 %v8180_v59, %v8176_v38  ;;  %8195 = vtanh.f32 %v6962_v9  ;;  %5369 = vmatprep.mubr.bf16.mxu0 %v5076_v12 }
 0x435   : > { %v4884_v58 = vadd.f32 %v6531_v33, %v4723_v63  ;;  %v6964_v29 = vadd.f32 %v4545_v10, %v10320_v23  ;;  %v6534_v16 = vadd.f32 %v6533_v51, %v6532_v15  ;;  %v8182_v30 = vpop.eup %8181  ;;  %8197 = vtanh.f32 %v6963_v32  ;;  %5370 = vmatmul.mubr.bf16.gmra.mrb[140].mxu0 %v5075_v36 }
 0x436   : > { %6752 = vmatmul.mubr.bf16.gmra.mrb[228].mxu1 %v5077_v55  ;;  %v8184_v17 = vpop.eup %8183 }
 0x437   : > { %8199 = vtanh.f32 %v4884_v58  ;;  %v4887_v48 = vadd.f32 %v6534_v16, %v4726_v3  ;;  %v8186_v47 = vpop.eup %8185  ;;  %v4549_v18 = vpop.f32.mrb[88].mxu0  ;;  %v4739_v58 = vadd.f32 %v10271_v24, %v10316_v27 }
 0x438   : > { %8201 = vtanh.f32 %v6964_v29  ;;  %v6535_v61 = vpop.f32.mrb[184].mxu1  ;;  %v5078_v42 = vpack.c.bf16 %v8186_v47, %v8182_v30  ;;  %v6965_v49 = vadd.f32 %v4549_v18, %v10312_v2  ;;  %v4551_v0 = vpop.f32.mrb[89].mxu0  ;;  %v4742_v47 = vadd.f32 %v10273_v52, %v10316_v27 }
 0x439   : > { %v8188_v25 = vpop.eup %8187  ;;  %8203 = vtanh.f32 %v4887_v48  ;;  %v6536_v20 = vpop.f32.mrb[185].mxu1  ;;  %v6966_v53 = vadd.f32 %v4551_v0, %v10320_v23 }
 0x43a   : > { %v8190_v8 = vpop.eup %8189  ;;  %v6537_v6 = vadd.f32 %v6536_v20, %v6535_v61  ;;  %v4553_v7 = vpop.f32.mrb[90].mxu0  ;;  %8205 = vtanh.f32 %v6965_v49 }
 0x43b   : > { %v8192_v1 = vpop.eup %8191  ;;  %v6538_v39 = vpop.f32.mrb[186].mxu1  ;;  %v5079_v38 = vpack.c.bf16 %v8190_v8, %v8184_v17  ;;  %v6967_v40 = vadd.f32 %v4553_v7, %v10312_v2  ;;  %8207 = vtanh.f32 %v6966_v53 }
 0x43c   : > { %v4555_v36 = vpop.f32.mrb[91].mxu0  ;;  %v6539_v60 = vpop.f32.mrb[187].mxu1  ;;  %v5080_v62 = vpack.c.bf16 %v8192_v1, %v8188_v25  ;;  %v4892_v43 = vadd.f32 %v6537_v6, %v4731_v34 }
 0x43d   : > { %v6968_v11 = vadd.f32 %v4555_v36, %v10320_v23  ;;  %v6540_v45 = vadd.f32 %v6539_v60, %v6538_v39  ;;  %5377 = vmatprep.mubr.bf16.mxu0 %v5079_v38  ;;  %v8194_v59 = vpop.eup %8193  ;;  %8209 = vtanh.f32 %v6967_v40  ;;  %v4747_v60 = vadd.f32 %v10275_v57, %v10316_v27 }
 0x43e   : > { %5378 = vmatmul.mubr.bf16.gmra.mrb[144].mxu0 %v5078_v42  ;;  %6755 = vmatprep.mubr.bf16.mxu1 %v5080_v62  ;;  %v8196_v63 = vpop.eup %8195  ;;  %8211 = vtanh.f32 %v4892_v43 }
 0x43f   : > { %v4895_v9 = vadd.f32 %v6540_v45, %v4734_v14  ;;  %v8198_v28 = vpop.eup %8197  ;;  %8213 = vtanh.f32 %v6968_v11  ;;  %v4559_v54 = vpop.f32.mrb[92].mxu0 }
 0x440   : > { %v6541_v15 = vpop.f32.mrb[188].mxu1  ;;  %v5081_v12 = vpack.c.bf16 %v8198_v28, %v8194_v59  ;;  %v6969_v32 = vadd.f32 %v4559_v54, %v10312_v2  ;;  %v4561_v10 = vpop.f32.mrb[93].mxu0 }
 0x441   : > { %v8200_v33 = vpop.eup %8199  ;;  %8215 = vtanh.f32 %v4895_v9  ;;  %v6542_v51 = vpop.f32.mrb[189].mxu1  ;;  %v6970_v29 = vadd.f32 %v4561_v10, %v10320_v23 }
 0x442   : > { %v8202_v3 = vpop.eup %8201  ;;  %v6543_v16 = vadd.f32 %v6542_v51, %v6541_v15  ;;  %v4563_v30 = vpop.f32.mrb[94].mxu0  ;;  %8217 = vtanh.f32 %v6969_v32 }
 0x443   : > { %v8204_v55 = vpop.eup %8203  ;;  %v6544_v17 = vpop.f32.mrb[190].mxu1  ;;  %v5082_v48 = vpack.c.bf16 %v8202_v3, %v8196_v63  ;;  %v6971_v25 = vadd.f32 %v4563_v30, %v10312_v2  ;;  %8219 = vtanh.f32 %v6970_v29  ;;  %v4750_v63 = vadd.f32 %v10277_v41, %v10316_v27 }
 0x444   : > { %v4565_v18 = vpop.f32.mrb[95].mxu0  ;;  %v6545_v61 = vpop.f32.mrb[191].mxu1  ;;  %v5083_v42 = vpack.c.bf16 %v8204_v55, %v8200_v33  ;;  %v4900_v8 = vadd.f32 %v6543_v16, %v4739_v58 }
 0x445   : > { %v6972_v49 = vadd.f32 %v4565_v18, %v10320_v23  ;;  %v6546_v24 = vadd.f32 %v6545_v61, %v6544_v17  ;;  %5385 = vmatprep.mubr.bf16.mxu0 %v5082_v48  ;;  %v8206_v0 = vpop.eup %8205  ;;  %8221 = vtanh.f32 %v6971_v25  ;;  %v4755_v25 = vadd.f32 %v10279_v35, %v10316_v27 }
 0x446   : > { %5386 = vmatmul.mubr.bf16.gmra.mrb[148].mxu0 %v5081_v12  ;;  %6756 = vmatmul.mubr.bf16.gmra.mrb[232].mxu1 %v5083_v42  ;;  %v8208_v20 = vpop.eup %8207  ;;  %8223 = vtanh.f32 %v4900_v8 }
 0x447   : > { %v4903_v1 = vadd.f32 %v6546_v24, %v4742_v47  ;;  %v8210_v52 = vpop.eup %8209  ;;  %8225 = vtanh.f32 %v6972_v49  ;;  %v4569_v53 = vpop.f32.mrb[96].mxu0  ;;  %v4758_v24 = vadd.f32 %v10281_v46, %v10316_v27 }
 0x448   : > { %v8212_v34 = vpop.eup %8211  ;;  %v6547_v6 = vpop.f32.mrb[192].mxu1  ;;  %v5084_v7 = vpack.c.bf16 %v8210_v52, %v8206_v0  ;;  %v6973_v38 = vadd.f32 %v4569_v53, %v10312_v2 }
 0x449   : > { %8227 = vtanh.f32 %v4903_v1  ;;  %v8214_v39 = vpop.eup %8213  ;;  %v4571_v14 = vpop.f32.mrb[97].mxu0 }
 0x44a   : > { %v6548_v40 = vpop.f32.mrb[193].mxu1  ;;  %v6974_v62 = vadd.f32 %v4571_v14, %v10320_v23  ;;  %v4573_v11 = vpop.f32.mrb[98].mxu0  ;;  %v5085_v59 = vpack.c.bf16 %v8214_v39, %v8208_v20  ;;  %8229 = vtanh.f32 %v6973_v38 }
 0x44b   : > { %v8216_v36 = vpop.eup %8215  ;;  %v6549_v43 = vadd.f32 %v6548_v40, %v6547_v6  ;;  %v6550_v45 = vpop.f32.mrb[194].mxu1  ;;  %v6975_v9 = vadd.f32 %v4573_v11, %v10312_v2 }
 0x44c   : > { %v4575_v28 = vpop.f32.mrb[99].mxu0  ;;  %v6551_v33 = vpop.f32.mrb[195].mxu1  ;;  %v5086_v54 = vpack.c.bf16 %v8216_v36, %v8212_v34  ;;  %8231 = vtanh.f32 %v6974_v62  ;;  %5393 = vmatprep.mubr.bf16.mxu0 %v5085_v59  ;;  %v4763_v59 = vadd.f32 %v10283_v56, %v10316_v27 }
 0x44d   : > { %v4908_v15 = vadd.f32 %v6549_v43, %v4747_v60  ;;  %v6976_v12 = vadd.f32 %v4575_v28, %v10320_v23  ;;  %v6552_v57 = vadd.f32 %v6551_v33, %v6550_v45  ;;  %v8218_v3 = vpop.eup %8217  ;;  %8233 = vtanh.f32 %v6975_v9 }
 0x44e   : > { %5394 = vmatmul.mubr.bf16.gmra.mrb[152].mxu0 %v5084_v7  ;;  %6759 = vmatprep.mubr.bf16.mxu1 %v5086_v54  ;;  %v8220_v32 = vpop.eup %8219 }
 0x44f   : > { %8235 = vtanh.f32 %v4908_v15  ;;  %v4911_v10 = vadd.f32 %v6552_v57, %v4750_v63  ;;  %v8222_v41 = vpop.eup %8221  ;;  %v4579_v55 = vpop.f32.mrb[100].mxu0  ;;  %v4766_v15 = vadd.f32 %v10285_v5, %v10316_v27 }
 0x450   : > { %8237 = vtanh.f32 %v6976_v12  ;;  %v8224_v51 = vpop.eup %8223  ;;  %v6553_v58 = vpop.f32.mrb[196].mxu1  ;;  %v5087_v29 = vpack.c.bf16 %v8222_v41, %v8218_v3  ;;  %v6977_v30 = vadd.f32 %v4579_v55, %v10312_v2 }
 0x451   : > { %8239 = vtanh.f32 %v4911_v10  ;;  %v8226_v16 = vpop.eup %8225  ;;  %v4581_v17 = vpop.f32.mrb[101].mxu0 }
 0x452   : > { %v6554_v48 = vpop.f32.mrb[197].mxu1  ;;  %v6978_v18 = vadd.f32 %v4581_v17, %v10320_v23  ;;  %v4583_v42 = vpop.f32.mrb[102].mxu0  ;;  %v5088_v49 = vpack.c.bf16 %v8226_v16, %v8220_v32  ;;  %8241 = vtanh.f32 %v6977_v30 }
 0x453   : > { %v8228_v47 = vpop.eup %8227  ;;  %v6555_v61 = vadd.f32 %v6554_v48, %v6553_v58  ;;  %v6556_v8 = vpop.f32.mrb[198].mxu1  ;;  %v6979_v0 = vadd.f32 %v4583_v42, %v10312_v2  ;;  %v4771_v42 = vadd.f32 %v10287_v4, %v10316_v27 }
 0x454   : > { %v4585_v20 = vpop.f32.mrb[103].mxu0  ;;  %v6557_v1 = vpop.f32.mrb[199].mxu1  ;;  %v5089_v52 = vpack.c.bf16 %v8228_v47, %v8224_v51  ;;  %8243 = vtanh.f32 %v6978_v18  ;;  %5401 = vmatprep.mubr.bf16.mxu0 %v5088_v49 }
 0x455   : > { %v4916_v34 = vadd.f32 %v6555_v61, %v4755_v25  ;;  %v6980_v53 = vadd.f32 %v4585_v20, %v10320_v23  ;;  %v6558_v35 = vadd.f32 %v6557_v1, %v6556_v8  ;;  %v8230_v6 = vpop.eup %8229  ;;  %8245 = vtanh.f32 %v6979_v0 }
 0x456   : > { %5402 = vmatmul.mubr.bf16.gmra.mrb[156].mxu0 %v5087_v29  ;;  %6760 = vmatmul.mubr.bf16.gmra.mrb[236].mxu1 %v5089_v52  ;;  %v8232_v7 = vpop.eup %8231  ;;  %v4774_v1 = vadd.f32 %v10289_v44, %v10316_v27 }
 0x457   : > { %8247 = vtanh.f32 %v4916_v34  ;;  %v4919_v39 = vadd.f32 %v6558_v35, %v4758_v24  ;;  %v8234_v46 = vpop.eup %8233  ;;  %v4589_v14 = vpop.f32.mrb[104].mxu0 }
 0x458   : > { %8249 = vtanh.f32 %v6980_v53  ;;  %v6559_v40 = vpop.f32.mrb[200].mxu1  ;;  %v5090_v36 = vpack.c.bf16 %v8234_v46, %v8230_v6  ;;  %v6981_v62 = vadd.f32 %v4589_v14, %v10312_v2  ;;  %v4591_v43 = vpop.f32.mrb[105].mxu0 }
 0x459   : > { %v8236_v38 = vpop.eup %8235  ;;  %8251 = vtanh.f32 %v4919_v39  ;;  %v6560_v11 = vpop.f32.mrb[201].mxu1  ;;  %v6982_v63 = vadd.f32 %v4591_v43, %v10320_v23 }
 0x45a   : > { %v8238_v60 = vpop.eup %8237  ;;  %v6561_v9 = vadd.f32 %v6560_v11, %v6559_v40  ;;  %v4593_v28 = vpop.f32.mrb[106].mxu0  ;;  %8253 = vtanh.f32 %v6981_v62 }
 0x45b   : > { %v8240_v45 = vpop.eup %8239  ;;  %v6562_v33 = vpop.f32.mrb[202].mxu1  ;;  %v5091_v54 = vpack.c.bf16 %v8238_v60, %v8232_v7  ;;  %v6983_v12 = vadd.f32 %v4593_v28, %v10312_v2  ;;  %8255 = vtanh.f32 %v6982_v63  ;;  %v4779_v63 = vadd.f32 %v10291_v21, %v10316_v27 }
 0x45c   : > { %v4595_v57 = vpop.f32.mrb[107].mxu0  ;;  %v6563_v3 = vpop.f32.mrb[203].mxu1  ;;  %v5092_v32 = vpack.c.bf16 %v8240_v45, %v8236_v38  ;;  %v4924_v10 = vadd.f32 %v6561_v9, %v4763_v59 }
 0x45d   : > { %v6984_v41 = vadd.f32 %v4595_v57, %v10320_v23  ;;  %v6564_v56 = vadd.f32 %v6563_v3, %v6562_v33  ;;  %5409 = vmatprep.mubr.bf16.mxu0 %v5091_v54  ;;  %v8242_v51 = vpop.eup %8241  ;;  %8257 = vtanh.f32 %v6983_v12  ;;  %v4782_v12 = vadd.f32 %v10293_v50, %v10316_v27 }
 0x45e   : > { %5410 = vmatmul.mubr.bf16.gmra.mrb[160].mxu0 %v5090_v36  ;;  %6763 = vmatprep.mubr.bf16.mxu1 %v5092_v32  ;;  %v8244_v55 = vpop.eup %8243  ;;  %8259 = vtanh.f32 %v4924_v10 }
 0x45f   : > { %v4927_v58 = vadd.f32 %v6564_v56, %v4766_v15  ;;  %v8246_v5 = vpop.eup %8245  ;;  %8261 = vtanh.f32 %v6984_v41  ;;  %v4599_v16 = vpop.f32.mrb[108].mxu0 }
 0x460   : > { %v6565_v30 = vpop.f32.mrb[204].mxu1  ;;  %v5093_v17 = vpack.c.bf16 %v8246_v5, %v8242_v51  ;;  %v6985_v47 = vadd.f32 %v4599_v16, %v10312_v2  ;;  %v4601_v25 = vpop.f32.mrb[109].mxu0 }
 0x461   : > { %v8248_v29 = vpop.eup %8247  ;;  %8263 = vtanh.f32 %v4927_v58  ;;  %v6566_v18 = vpop.f32.mrb[205].mxu1  ;;  %v6986_v8 = vadd.f32 %v4601_v25, %v10320_v23 }
 0x462   : > { %v8250_v48 = vpop.eup %8249  ;;  %v6567_v49 = vadd.f32 %v6566_v18, %v6565_v30  ;;  %v4603_v24 = vpop.f32.mrb[110].mxu0  ;;  %8265 = vtanh.f32 %v6985_v47 }
 0x463   : > { %v8252_v61 = vpop.eup %8251  ;;  %v6568_v0 = vpop.f32.mrb[206].mxu1  ;;  %v5094_v20 = vpack.c.bf16 %v8250_v48, %v8244_v55  ;;  %v6987_v52 = vadd.f32 %v4603_v24, %v10312_v2  ;;  %8267 = vtanh.f32 %v6986_v8 }
 0x464   : > { %v4605_v34 = vpop.f32.mrb[111].mxu0  ;;  %v6569_v53 = vpop.f32.mrb[207].mxu1  ;;  %v5095_v35 = vpack.c.bf16 %v8252_v61, %v8248_v29  ;;  %v4932_v6 = vadd.f32 %v6567_v49, %v4771_v42  ;;  %v4787_v61 = vadd.f32 %v10295_v37, %v10316_v27 }
 0x465   : > { %v6988_v7 = vadd.f32 %v4605_v34, %v10320_v23  ;;  %v6570_v4 = vadd.f32 %v6569_v53, %v6568_v0  ;;  %5417 = vmatprep.mubr.bf16.mxu0 %v5094_v20  ;;  %v8254_v39 = vpop.eup %8253  ;;  %8269 = vtanh.f32 %v6987_v52  ;;  %v4790_v20 = vadd.f32 %v10297_v19, %v10316_v27 }
 0x466   : > { %5418 = vmatmul.mubr.bf16.gmra.mrb[164].mxu0 %v5093_v17  ;;  %6764 = vmatmul.mubr.bf16.gmra.mrb[240].mxu1 %v5095_v35  ;;  %v8256_v46 = vpop.eup %8255  ;;  %8271 = vtanh.f32 %v4932_v6 }
 0x467   : > { %v4935_v38 = vadd.f32 %v6570_v4, %v4774_v1  ;;  %v8258_v44 = vpop.eup %8257  ;;  %8273 = vtanh.f32 %v6988_v7  ;;  %v4609_v40 = vpop.f32.mrb[112].mxu0 }
 0x468   : > { %v8260_v14 = vpop.eup %8259  ;;  %v6571_v36 = vpop.f32.mrb[208].mxu1  ;;  %v5096_v60 = vpack.c.bf16 %v8258_v44, %v8254_v39  ;;  %v6989_v43 = vadd.f32 %v4609_v40, %v10312_v2 }
 0x469   : > { %8275 = vtanh.f32 %v4935_v38  ;;  %v8262_v62 = vpop.eup %8261  ;;  %v4611_v11 = vpop.f32.mrb[113].mxu0 }
 0x46a   : > { %v6572_v45 = vpop.f32.mrb[209].mxu1  ;;  %v6990_v9 = vadd.f32 %v4611_v11, %v10320_v23  ;;  %v4613_v33 = vpop.f32.mrb[114].mxu0  ;;  %v5097_v15 = vpack.c.bf16 %v8262_v62, %v8256_v46  ;;  %8277 = vtanh.f32 %v6989_v43  ;;  %v4795_v11 = vadd.f32 %v10299_v13, %v10316_v27 }
 0x46b   : > { %v8264_v59 = vpop.eup %8263  ;;  %v6573_v28 = vadd.f32 %v6572_v45, %v6571_v36  ;;  %v6574_v54 = vpop.f32.mrb[210].mxu1  ;;  %v6991_v57 = vadd.f32 %v4613_v33, %v10312_v2  ;;  %v4798_v33 = vadd.f32 %v10301_v26, %v10316_v27 }
 0x46c   : > { %v4615_v3 = vpop.f32.mrb[115].mxu0  ;;  %v6575_v32 = vpop.f32.mrb[211].mxu1  ;;  %v5098_v10 = vpack.c.bf16 %v8264_v59, %v8260_v14  ;;  %8279 = vtanh.f32 %v6990_v9  ;;  %5425 = vmatprep.mubr.bf16.mxu0 %v5097_v15 }
 0x46d   : > { %v4940_v41 = vadd.f32 %v6573_v28, %v4779_v63  ;;  %v6992_v56 = vadd.f32 %v4615_v3, %v10320_v23  ;;  %v6576_v21 = vadd.f32 %v6575_v32, %v6574_v54  ;;  %v8266_v51 = vpop.eup %8265  ;;  %8281 = vtanh.f32 %v6991_v57 }
 0x46e   : > { %5426 = vmatmul.mubr.bf16.gmra.mrb[168].mxu0 %v5096_v60  ;;  %6767 = vmatprep.mubr.bf16.mxu1 %v5098_v10  ;;  %v8268_v55 = vpop.eup %8267 }
 0x46f   : > { %8283 = vtanh.f32 %v4940_v41  ;;  %v4943_v58 = vadd.f32 %v6576_v21, %v4782_v12  ;;  %v8270_v50 = vpop.eup %8269  ;;  %v4619_v29 = vpop.f32.mrb[116].mxu0 }
 0x470   : > { %8285 = vtanh.f32 %v6992_v56  ;;  %v8272_v5 = vpop.eup %8271  ;;  %v6577_v16 = vpop.f32.mrb[212].mxu1  ;;  %v5099_v30 = vpack.c.bf16 %v8270_v50, %v8266_v51  ;;  %v6993_v48 = vadd.f32 %v4619_v29, %v10312_v2 }
 0x471   : > { %8287 = vtanh.f32 %v4943_v58  ;;  %v8274_v17 = vpop.eup %8273  ;;  %v4621_v47 = vpop.f32.mrb[117].mxu0 }
 0x472   : > { %v6578_v25 = vpop.f32.mrb[213].mxu1  ;;  %v6994_v42 = vadd.f32 %v4621_v47, %v10320_v23  ;;  %v4623_v49 = vpop.f32.mrb[118].mxu0  ;;  %v5100_v0 = vpack.c.bf16 %v8274_v17, %v8268_v55  ;;  %8289 = vtanh.f32 %v6993_v48  ;;  %v4803_v17 = vadd.f32 %v10303_v31, %v10316_v27 }
 0x473   : > { %v8276_v18 = vpop.eup %8275  ;;  %v6579_v8 = vadd.f32 %v6578_v25, %v6577_v16  ;;  %v6580_v24 = vpop.f32.mrb[214].mxu1  ;;  %v6995_v1 = vadd.f32 %v4623_v49, %v10312_v2 }
 0x474   : > { %v4625_v52 = vpop.f32.mrb[119].mxu0  ;;  %v6581_v34 = vpop.f32.mrb[215].mxu1  ;;  %v5101_v53 = vpack.c.bf16 %v8276_v18, %v8272_v5  ;;  %8291 = vtanh.f32 %v6994_v42  ;;  %5433 = vmatprep.mubr.bf16.mxu0 %v5100_v0  ;;  %v4806_v42 = vadd.f32 %v10308_v22, %v10316_v27 }
 0x475   : > { %v4948_v35 = vadd.f32 %v6579_v8, %v4787_v61  ;;  %v6996_v6 = vadd.f32 %v4625_v52, %v10320_v23  ;;  %v6582_v37 = vadd.f32 %v6581_v34, %v6580_v24  ;;  %v8278_v7 = vpop.eup %8277  ;;  %8293 = vtanh.f32 %v6995_v1 }
 0x476   : > { %5434 = vmatmul.mubr.bf16.gmra.mrb[172].mxu0 %v5099_v30  ;;  %6768 = vmatmul.mubr.bf16.gmra.mrb[244].mxu1 %v5101_v53  ;;  %v8280_v4 = vpop.eup %8279 }
 0x477   : > { %8295 = vtanh.f32 %v4948_v35  ;;  %v4951_v39 = vadd.f32 %v6582_v37, %v4790_v20  ;;  %v8282_v19 = vpop.eup %8281  ;;  %v4629_v38 = vpop.f32.mrb[120].mxu0 }
 0x478   : > { %8297 = vtanh.f32 %v6996_v6  ;;  %v6583_v44 = vpop.f32.mrb[216].mxu1  ;;  %v5102_v14 = vpack.c.bf16 %v8282_v19, %v8278_v7  ;;  %v6997_v36 = vadd.f32 %v4629_v38, %v10312_v2  ;;  %v4631_v60 = vpop.f32.mrb[121].mxu0 }
 0x479   : > { %v8284_v46 = vpop.eup %8283  ;;  %8299 = vtanh.f32 %v4951_v39  ;;  %v6584_v62 = vpop.f32.mrb[217].mxu1  ;;  %v6998_v45 = vadd.f32 %v4631_v60, %v10320_v23 }
 0x47a   : > { %v8286_v40 = vpop.eup %8285  ;;  %v6585_v59 = vadd.f32 %v6584_v62, %v6583_v44  ;;  %v4633_v63 = vpop.f32.mrb[122].mxu0  ;;  %8301 = vtanh.f32 %v6997_v36 }
 0x47b   : > { %v8288_v43 = vpop.eup %8287  ;;  %v6586_v9 = vpop.f32.mrb[218].mxu1  ;;  %v5103_v28 = vpack.c.bf16 %v8286_v40, %v8280_v4  ;;  %v6999_v54 = vadd.f32 %v4633_v63, %v10312_v2  ;;  %8303 = vtanh.f32 %v6998_v45 }
 0x47c   : > { %v4635_v15 = vpop.f32.mrb[123].mxu0  ;;  %v6587_v12 = vpop.f32.mrb[219].mxu1  ;;  %v5104_v57 = vpack.c.bf16 %v8288_v43, %v8284_v46  ;;  %v4956_v3 = vadd.f32 %v6585_v59, %v4795_v11  ;;  %v10453_v59 = vld [vmem:[%s10790_s6] ss:$0 sm:$0xff] }
 0x47d   : > { %v7000_v32 = vadd.f32 %v4635_v15, %v10320_v23  ;;  %v6588_v13 = vadd.f32 %v6587_v12, %v6586_v9  ;;  %5441 = vmatprep.mubr.bf16.mxu0 %v5103_v28  ;;  %v8290_v10 = vpop.eup %8289  ;;  %8305 = vtanh.f32 %v6999_v54 }
 0x47e   : > { %5442 = vmatmul.mubr.bf16.gmra.mrb[176].mxu0 %v5102_v14  ;;  %6771 = vmatprep.mubr.bf16.mxu1 %v5104_v57  ;;  %v8292_v41 = vpop.eup %8291  ;;  %8307 = vtanh.f32 %v4956_v3 }
 0x47f   : > { %v4959_v56 = vadd.f32 %v6588_v13, %v4798_v33  ;;  %v8294_v26 = vpop.eup %8293  ;;  %8309 = vtanh.f32 %v7000_v32  ;;  %v4639_v51 = vpop.f32.mrb[124].mxu0 }
 0x480   : > { %v6589_v55 = vpop.f32.mrb[220].mxu1  ;;  %v5105_v58 = vpack.c.bf16 %v8294_v26, %v8290_v10  ;;  %v7001_v5 = vadd.f32 %v4639_v51, %v10312_v2  ;;  %v4641_v29 = vpop.f32.mrb[125].mxu0 }
 0x481   : > { %v8296_v21 = vpop.eup %8295  ;;  %8311 = vtanh.f32 %v4959_v56  ;;  %v6590_v16 = vpop.f32.mrb[221].mxu1  ;;  %v7002_v48 = vadd.f32 %v4641_v29, %v10320_v23 }
 0x482   : > { %v8298_v50 = vpop.eup %8297  ;;  %v6591_v47 = vadd.f32 %v6590_v16, %v6589_v55  ;;  %v4643_v25 = vpop.f32.mrb[126].mxu0  ;;  %8313 = vtanh.f32 %v7001_v5 }
 0x483   : > { %v8300_v30 = vpop.eup %8299  ;;  %v6592_v18 = vpop.f32.mrb[222].mxu1  ;;  %v5106_v61 = vpack.c.bf16 %v8298_v50, %v8292_v41  ;;  %v7003_v8 = vadd.f32 %v4643_v25, %v10312_v2  ;;  %8315 = vtanh.f32 %v7002_v48 }
 0x484   : > { %v4645_v49 = vpop.f32.mrb[127].mxu0  ;;  %v6593_v24 = vpop.f32.mrb[223].mxu1  ;;  %v5107_v0 = vpack.c.bf16 %v8300_v30, %v8296_v21  ;;  %v4964_v20 = vadd.f32 %v6591_v47, %v4803_v17 }
 0x485   : > { %v7004_v1 = vadd.f32 %v4645_v49, %v10320_v23  ;;  %v6594_v31 = vadd.f32 %v6593_v24, %v6592_v18  ;;  %5449 = vmatprep.mubr.bf16.mxu0 %v5106_v61  ;;  %v8302_v52 = vpop.eup %8301  ;;  %8317 = vtanh.f32 %v7003_v8 }
 0x486   : > { %5450 = vmatmul.mubr.bf16.gmra.mrb[180].mxu0 %v5105_v58  ;;  %6772 = vmatmul.mubr.bf16.gmra.mrb[248].mxu1 %v5107_v0  ;;  %v8304_v34 = vpop.eup %8303  ;;  %8319 = vtanh.f32 %v4964_v20 }
 0x487   : > { %v4967_v53 = vadd.f32 %v6594_v31, %v4806_v42  ;;  %v8306_v22 = vpop.eup %8305  ;;  %8321 = vtanh.f32 %v7004_v1 }
 0x488   : > { %v8308_v27 = vpop.eup %8307  ;;  %v5108_v2 = vpack.c.bf16 %v8306_v22, %v8302_v52 }
 0x489   : > { %8323 = vtanh.f32 %v4967_v53  ;;  %v8310_v35 = vpop.eup %8309 }
 0x48a   : > { %v5109_v37 = vpack.c.bf16 %v8310_v35, %v8304_v34 }
 0x48b   : > { %v8312_v6 = vpop.eup %8311 }
 0x48c   : > { %v5110_v7 = vpack.c.bf16 %v8312_v6, %v8308_v27  ;;  %5457 = vmatprep.mubr.bf16.mxu0 %v5109_v37  ;;  %v8314_v23 = vpop.eup %8313 }
 0x48d   : > { %v8316_v4 = vpop.eup %8315 }
 0x48e   : > { %5458 = vmatmul.mubr.bf16.gmra.mrb[184].mxu0 %v5108_v2  ;;  %6775 = vmatprep.mubr.bf16.mxu1 %v5110_v7 }
 0x48f   : > { %v8318_v39 = vpop.eup %8317 }
 0x490   : > { %v8320_v19 = vpop.eup %8319  ;;  %v5111_v46 = vpack.c.bf16 %v8318_v39, %v8314_v23 }
 0x491   : > { %v8322_v38 = vpop.eup %8321 }
 0x492   : > { %v5112_v14 = vpack.c.bf16 %v8322_v38, %v8316_v4 }
 0x493   : > { %v8324_v44 = vpop.eup %8323 }
 0x494   : > { %v5113_v40 = vpack.c.bf16 %v8324_v44, %v8320_v19  ;;  %5465 = vmatprep.mubr.bf16.mxu0 %v5112_v14 }
 0x496   : > { %5466 = vmatmul.mubr.bf16.gmra.mrb[188].mxu0 %v5111_v46  ;;  %6776 = vmatmul.mubr.bf16.gmra.mrb[252].mxu1 %v5113_v40 }
 0x4ef   : > { %v6611_v36 = vpop.f32.mrb[128].mxu0 }
 0x4f0   : > { %v6612_v60 = vpop.f32.mrb[129].mxu0 }
 0x4f1   : > { %v6613_v62 = vadd.f32 %v6612_v60, %v6611_v36  ;;  %v6614_v43 = vpop.f32.mrb[130].mxu0 }
 0x4f2   : > { %v6615_v11 = vpop.f32.mrb[131].mxu0 }
 0x4f3   : > { %v6616_v45 = vadd.f32 %v6615_v11, %v6614_v43  ;;  %v5348_v28 = vadd.f32 %v6613_v62, %v10453_v59 }
 0x4f5   : > { %v5351_v32 = vadd.f32 %v6616_v45, %v10453_v59 }
 0x4f7   : > { %v6617_v63 = vpop.f32.mrb[132].mxu0 }
 0x4f8   : > { %v6749_v9 = vpop.f32.mrb[224].mxu1  ;;  %v6618_v33 = vpop.f32.mrb[133].mxu0 }
 0x4f9   : > { %v5508_v54 = vpop.f32.mrb[225].mxu1  ;;  %v6619_v15 = vadd.f32 %v6618_v33, %v6617_v63  ;;  %v6620_v12 = vpop.f32.mrb[134].mxu0 }
 0x4fa   : > { %v10456_v57 = vadd.f32 %v5508_v54, %v5348_v28  ;;  %v6750_v3 = vpop.f32.mrb[226].mxu1  ;;  %v6621_v13 = vpop.f32.mrb[135].mxu0 }
 0x4fb   : > { %v5511_v10 = vpop.f32.mrb[227].mxu1  ;;  %v5356_v41 = vadd.f32 %v6619_v15, %v10453_v59  ;;  %v6622_v56 = vadd.f32 %v6621_v13, %v6620_v12 }
 0x4fc   : > { %v10460_v26 = vadd.f32 %v5511_v10, %v5351_v32  ;;  %5635 = vmax.xlane.f32.xlu0 %v10456_v57 }
 0x4fd   : > { %v10463_v21 = vadd.f32 %v6749_v9, %v5356_v41  ;;  %v5359_v51 = vadd.f32 %v6622_v56, %v10453_v59 }
 0x4ff   : > { %v10466_v55 = vadd.f32 %v6750_v3, %v5359_v51  ;;  %5639 = vmax.xlane.f32.xlu1 %v10463_v21 }
 0x500   : > { %v6623_v58 = vpop.f32.mrb[136].mxu0  ;;  %5637 = vmax.xlane.f32.xlu0 %v10460_v26 }
 0x501   : > { %v6624_v50 = vpop.f32.mrb[137].mxu0 }
 0x502   : > { %v6625_v5 = vadd.f32 %v6624_v50, %v6623_v58  ;;  %v6626_v29 = vpop.f32.mrb[138].mxu0 }
 0x503   : > { %v6627_v16 = vpop.f32.mrb[139].mxu0  ;;  %5641 = vmax.xlane.f32.xlu1 %v10466_v55 }
 0x504   : > { %v6628_v30 = vadd.f32 %v6627_v16, %v6626_v29  ;;  %v5364_v47 = vadd.f32 %v6625_v5, %v10453_v59 }
 0x506   : > { %v5367_v24 = vadd.f32 %v6628_v30, %v10453_v59 }
 0x508   : > { %v6629_v17 = vpop.f32.mrb[140].mxu0 }
 0x509   : > { %v6753_v48 = vpop.f32.mrb[228].mxu1  ;;  %v6630_v25 = vpop.f32.mrb[141].mxu0 }
 0x50a   : > { %v5524_v18 = vpop.f32.mrb[229].mxu1  ;;  %v6631_v61 = vadd.f32 %v6630_v25, %v6629_v17  ;;  %v6632_v42 = vpop.f32.mrb[142].mxu0 }
 0x50b   : > { %v10472_v8 = vadd.f32 %v5524_v18, %v5364_v47  ;;  %v6754_v49 = vpop.f32.mrb[230].mxu1  ;;  %v6633_v0 = vpop.f32.mrb[143].mxu0 }
 0x50c   : > { %v5527_v20 = vpop.f32.mrb[231].mxu1  ;;  %v5372_v1 = vadd.f32 %v6631_v61, %v10453_v59  ;;  %v6634_v31 = vadd.f32 %v6633_v0, %v6632_v42 }
 0x50d   : > { %v10476_v52 = vadd.f32 %v5527_v20, %v5367_v24  ;;  %5643 = vmax.xlane.f32.xlu0 %v10472_v8 }
 0x50e   : > { %v10479_v34 = vadd.f32 %v6753_v48, %v5372_v1  ;;  %v5375_v53 = vadd.f32 %v6634_v31, %v10453_v59 }
 0x50f   : > { %5645 = vmax.xlane.f32.xlu1 %v10476_v52 }
 0x510   : > { %v10483_v22 = vadd.f32 %v6754_v49, %v5375_v53 }
 0x511   : > { %v6635_v27 = vpop.f32.mrb[144].mxu0  ;;  %5647 = vmax.xlane.f32.xlu0 %v10479_v34 }
 0x512   : > { %v6636_v2 = vpop.f32.mrb[145].mxu0 }
 0x513   : > { %v6637_v35 = vadd.f32 %v6636_v2, %v6635_v27  ;;  %v6638_v6 = vpop.f32.mrb[146].mxu0  ;;  %5649 = vmax.xlane.f32.xlu1 %v10483_v22 }
 0x514   : > { %v6639_v37 = vpop.f32.mrb[147].mxu0 }
 0x515   : > { %v6640_v7 = vadd.f32 %v6639_v37, %v6638_v6  ;;  %v5380_v39 = vadd.f32 %v6637_v35, %v10453_v59 }
 0x517   : > { %v5383_v36 = vadd.f32 %v6640_v7, %v10453_v59 }
 0x519   : > { %v6641_v23 = vpop.f32.mrb[148].mxu0  ;;  %v6757_v4 = vpop.f32.mrb[232].mxu1 }
 0x51a   : > { %v6642_v19 = vpop.f32.mrb[149].mxu0  ;;  %v5540_v46 = vpop.f32.mrb[233].mxu1 }
 0x51b   : > { %v6643_v38 = vadd.f32 %v6642_v19, %v6641_v23  ;;  %v6644_v44 = vpop.f32.mrb[150].mxu0  ;;  %v10488_v14 = vadd.f32 %v5540_v46, %v5380_v39  ;;  %v6758_v40 = vpop.f32.mrb[234].mxu1 }
 0x51c   : > { %v6645_v60 = vpop.f32.mrb[151].mxu0  ;;  %v5543_v62 = vpop.f32.mrb[235].mxu1 }
 0x51d   : > { %v5388_v43 = vadd.f32 %v6643_v38, %v10453_v59  ;;  %v6646_v11 = vadd.f32 %v6645_v60, %v6644_v44  ;;  %v10492_v45 = vadd.f32 %v5543_v62, %v5383_v36  ;;  %5651 = vmax.xlane.f32.xlu0 %v10488_v14 }
 0x51f   : > { %v10495_v63 = vadd.f32 %v6757_v4, %v5388_v43  ;;  %v5391_v9 = vadd.f32 %v6646_v11, %v10453_v59  ;;  %5653 = vmax.xlane.f32.xlu1 %v10492_v45 }
 0x521   : > { %v10499_v28 = vadd.f32 %v6758_v40, %v5391_v9  ;;  %v6647_v33 = vpop.f32.mrb[152].mxu0  ;;  %5655 = vmax.xlane.f32.xlu0 %v10495_v63 }
 0x522   : > { %v6648_v54 = vpop.f32.mrb[153].mxu0 }
 0x523   : > { %v6649_v15 = vadd.f32 %v6648_v54, %v6647_v33  ;;  %v6650_v12 = vpop.f32.mrb[154].mxu0  ;;  %5657 = vmax.xlane.f32.xlu1 %v10499_v28 }
 0x524   : > { %v6651_v3 = vpop.f32.mrb[155].mxu0 }
 0x525   : > { %v6652_v32 = vadd.f32 %v6651_v3, %v6650_v12  ;;  %v5396_v41 = vadd.f32 %v6649_v15, %v10453_v59 }
 0x527   : > { %v5399_v16 = vadd.f32 %v6652_v32, %v10453_v59 }
 0x529   : > { %v6653_v13 = vpop.f32.mrb[156].mxu0  ;;  %v6761_v10 = vpop.f32.mrb[236].mxu1 }
 0x52a   : > { %v6654_v56 = vpop.f32.mrb[157].mxu0  ;;  %v5556_v51 = vpop.f32.mrb[237].mxu1 }
 0x52b   : > { %v6655_v58 = vadd.f32 %v6654_v56, %v6653_v13  ;;  %v6656_v50 = vpop.f32.mrb[158].mxu0  ;;  %v10504_v5 = vadd.f32 %v5556_v51, %v5396_v41  ;;  %v6762_v29 = vpop.f32.mrb[238].mxu1 }
 0x52c   : > { %v6657_v30 = vpop.f32.mrb[159].mxu0  ;;  %v5559_v17 = vpop.f32.mrb[239].mxu1 }
 0x52d   : > { %v5404_v48 = vadd.f32 %v6655_v58, %v10453_v59  ;;  %v6658_v47 = vadd.f32 %v6657_v30, %v6656_v50  ;;  %v10508_v25 = vadd.f32 %v5559_v17, %v5399_v16  ;;  %5659 = vmax.xlane.f32.xlu0 %v10504_v5 }
 0x52f   : > { %v10511_v18 = vadd.f32 %v6761_v10, %v5404_v48  ;;  %v5407_v61 = vadd.f32 %v6658_v47, %v10453_v59  ;;  %5661 = vmax.xlane.f32.xlu1 %v10508_v25 }
 0x531   : > { %v10515_v42 = vadd.f32 %v6762_v29, %v5407_v61  ;;  %v6659_v49 = vpop.f32.mrb[160].mxu0  ;;  %5663 = vmax.xlane.f32.xlu0 %v10511_v18 }
 0x532   : > { %v6660_v24 = vpop.f32.mrb[161].mxu0 }
 0x533   : > { %v6661_v0 = vadd.f32 %v6660_v24, %v6659_v49  ;;  %v6662_v20 = vpop.f32.mrb[162].mxu0  ;;  %5665 = vmax.xlane.f32.xlu1 %v10515_v42 }
 0x534   : > { %v6663_v1 = vpop.f32.mrb[163].mxu0 }
 0x535   : > { %v6664_v31 = vadd.f32 %v6663_v1, %v6662_v20  ;;  %v5412_v2 = vadd.f32 %v6661_v0, %v10453_v59 }
 0x537   : > { %v5415_v39 = vadd.f32 %v6664_v31, %v10453_v59 }
 0x539   : > { %v6665_v53 = vpop.f32.mrb[164].mxu0  ;;  %v6765_v27 = vpop.f32.mrb[240].mxu1 }
 0x53a   : > { %v6666_v35 = vpop.f32.mrb[165].mxu0  ;;  %v5572_v6 = vpop.f32.mrb[241].mxu1 }
 0x53b   : > { %v6667_v37 = vadd.f32 %v6666_v35, %v6665_v53  ;;  %v6668_v7 = vpop.f32.mrb[166].mxu0  ;;  %v10520_v23 = vadd.f32 %v5572_v6, %v5412_v2  ;;  %v6766_v4 = vpop.f32.mrb[242].mxu1 }
 0x53c   : > { %v6669_v19 = vpop.f32.mrb[167].mxu0  ;;  %v5575_v46 = vpop.f32.mrb[243].mxu1 }
 0x53d   : > { %v5420_v38 = vadd.f32 %v6667_v37, %v10453_v59  ;;  %v6670_v44 = vadd.f32 %v6669_v19, %v6668_v7  ;;  %v10524_v40 = vadd.f32 %v5575_v46, %v5415_v39  ;;  %5667 = vmax.xlane.f32.xlu0 %v10520_v23 }
 0x53f   : > { %v10527_v36 = vadd.f32 %v6765_v27, %v5420_v38  ;;  %v5423_v60 = vadd.f32 %v6670_v44, %v10453_v59  ;;  %5669 = vmax.xlane.f32.xlu1 %v10524_v40 }
 0x541   : > { %v10531_v62 = vadd.f32 %v6766_v4, %v5423_v60  ;;  %v6671_v43 = vpop.f32.mrb[168].mxu0  ;;  %5671 = vmax.xlane.f32.xlu0 %v10527_v36 }
 0x542   : > { %v6672_v11 = vpop.f32.mrb[169].mxu0 }
 0x543   : > { %v6673_v9 = vadd.f32 %v6672_v11, %v6671_v43  ;;  %v6674_v33 = vpop.f32.mrb[170].mxu0  ;;  %5673 = vmax.xlane.f32.xlu1 %v10531_v62 }
 0x544   : > { %v6675_v54 = vpop.f32.mrb[171].mxu0 }
 0x545   : > { %v6676_v15 = vadd.f32 %v6675_v54, %v6674_v33  ;;  %v5428_v32 = vadd.f32 %v6673_v9, %v10453_v59 }
 0x547   : > { %v5431_v50 = vadd.f32 %v6676_v15, %v10453_v59 }
 0x549   : > { %v6677_v12 = vpop.f32.mrb[172].mxu0  ;;  %v6769_v3 = vpop.f32.mrb[244].mxu1 }
 0x54a   : > { %v6678_v13 = vpop.f32.mrb[173].mxu0  ;;  %v5588_v10 = vpop.f32.mrb[245].mxu1 }
 0x54b   : > { %v6679_v41 = vadd.f32 %v6678_v13, %v6677_v12  ;;  %v6680_v56 = vpop.f32.mrb[174].mxu0  ;;  %v10536_v51 = vadd.f32 %v5588_v10, %v5428_v32  ;;  %v6770_v58 = vpop.f32.mrb[246].mxu1 }
 0x54c   : > { %v6681_v29 = vpop.f32.mrb[175].mxu0  ;;  %v5591_v16 = vpop.f32.mrb[247].mxu1 }
 0x54d   : > { %v5436_v30 = vadd.f32 %v6679_v41, %v10453_v59  ;;  %v6682_v17 = vadd.f32 %v6681_v29, %v6680_v56  ;;  %v10540_v48 = vadd.f32 %v5591_v16, %v5431_v50  ;;  %5675 = vmax.xlane.f32.xlu0 %v10536_v51 }
 0x54f   : > { %v10543_v47 = vadd.f32 %v6769_v3, %v5436_v30  ;;  %v5439_v61 = vadd.f32 %v6682_v17, %v10453_v59  ;;  %5677 = vmax.xlane.f32.xlu1 %v10540_v48 }
 0x551   : > { %v10547_v49 = vadd.f32 %v6770_v58, %v5439_v61  ;;  %v6683_v24 = vpop.f32.mrb[176].mxu0  ;;  %5679 = vmax.xlane.f32.xlu0 %v10543_v47 }
 0x552   : > { %v6684_v0 = vpop.f32.mrb[177].mxu0 }
 0x553   : > { %v6685_v20 = vadd.f32 %v6684_v0, %v6683_v24  ;;  %v6686_v1 = vpop.f32.mrb[178].mxu0  ;;  %5681 = vmax.xlane.f32.xlu1 %v10547_v49 }
 0x554   : > { %v6687_v31 = vpop.f32.mrb[179].mxu0 }
 0x555   : > { %v6688_v53 = vadd.f32 %v6687_v31, %v6686_v1  ;;  %v5444_v35 = vadd.f32 %v6685_v20, %v10453_v59 }
 0x557   : > { %v5447_v46 = vadd.f32 %v6688_v53, %v10453_v59 }
 0x559   : > { %v6689_v27 = vpop.f32.mrb[180].mxu0  ;;  %v6773_v2 = vpop.f32.mrb[248].mxu1 }
 0x55a   : > { %v6690_v6 = vpop.f32.mrb[181].mxu0  ;;  %v5604_v37 = vpop.f32.mrb[249].mxu1 }
 0x55b   : > { %v6691_v7 = vadd.f32 %v6690_v6, %v6689_v27  ;;  %v6692_v4 = vpop.f32.mrb[182].mxu0  ;;  %v10552_v39 = vadd.f32 %v5604_v37, %v5444_v35  ;;  %v6774_v19 = vpop.f32.mrb[250].mxu1 }
 0x55c   : > { %v6693_v38 = vpop.f32.mrb[183].mxu0  ;;  %v5607_v44 = vpop.f32.mrb[251].mxu1 }
 0x55d   : > { %v5452_v60 = vadd.f32 %v6691_v7, %v10453_v59  ;;  %v6694_v43 = vadd.f32 %v6693_v38, %v6692_v4  ;;  %v10556_v11 = vadd.f32 %v5607_v44, %v5447_v46  ;;  %5683 = vmax.xlane.f32.xlu0 %v10552_v39 }
 0x55f   : > { %v10559_v9 = vadd.f32 %v6773_v2, %v5452_v60  ;;  %v5455_v33 = vadd.f32 %v6694_v43, %v10453_v59  ;;  %5685 = vmax.xlane.f32.xlu1 %v10556_v11 }
 0x561   : > { %v10563_v54 = vadd.f32 %v6774_v19, %v5455_v33  ;;  %v6695_v15 = vpop.f32.mrb[184].mxu0  ;;  %5687 = vmax.xlane.f32.xlu0 %v10559_v9 }
 0x562   : > { %v6696_v12 = vpop.f32.mrb[185].mxu0 }
 0x563   : > { %v6697_v3 = vadd.f32 %v6696_v12, %v6695_v15  ;;  %v6698_v32 = vpop.f32.mrb[186].mxu0  ;;  %5689 = vmax.xlane.f32.xlu1 %v10563_v54 }
 0x564   : > { %v6699_v13 = vpop.f32.mrb[187].mxu0 }
 0x565   : > { %v6700_v10 = vadd.f32 %v6699_v13, %v6698_v32  ;;  %v5460_v58 = vadd.f32 %v6697_v3, %v10453_v59 }
 0x567   : > { %v5463_v24 = vadd.f32 %v6700_v10, %v10453_v59 }
 0x569   : > { %v6701_v41 = vpop.f32.mrb[188].mxu0  ;;  %v6777_v56 = vpop.f32.mrb[252].mxu1 }
 0x56a   : > { %v6702_v50 = vpop.f32.mrb[189].mxu0  ;;  %v5620_v29 = vpop.f32.mrb[253].mxu1 }
 0x56b   : > { %v6703_v16 = vadd.f32 %v6702_v50, %v6701_v41  ;;  %v6704_v30 = vpop.f32.mrb[190].mxu0  ;;  %v10568_v17 = vadd.f32 %v5620_v29, %v5460_v58  ;;  %v6778_v61 = vpop.f32.mrb[254].mxu1 }
 0x56c   : > { %v6705_v0 = vpop.f32.mrb[191].mxu0  ;;  %v5623_v20 = vpop.f32.mrb[255].mxu1 }
 0x56d   : > { %v5468_v1 = vadd.f32 %v6703_v16, %v10453_v59  ;;  %v6706_v31 = vadd.f32 %v6705_v0, %v6704_v30  ;;  %v10572_v53 = vadd.f32 %v5623_v20, %v5463_v24  ;;  %5691 = vmax.xlane.f32.xlu0 %v10568_v17 }
 0x56f   : > { %v10575_v27 = vadd.f32 %v6777_v56, %v5468_v1  ;;  %v5471_v2 = vadd.f32 %v6706_v31, %v10453_v59  ;;  %5693 = vmax.xlane.f32.xlu1 %v10572_v53 }
 0x571   : > { %v10579_v35 = vadd.f32 %v6778_v61, %v5471_v2  ;;  %5695 = vmax.xlane.f32.xlu0 %v10575_v27 }
 0x573   : > { %5697 = vmax.xlane.f32.xlu1 %v10579_v35 }
 0x589   : > { %v5636_v6 = vpop.xlane.xlu0 %5635 }
 0x58a   : > { %v5699_v37 = vsub.f32 %v10456_v57, %v5636_v6 }
 0x58c   : > { %v5731_v7 = vmul.f32 1.442695, %v5699_v37  ;;  %v5640_v4 = vpop.xlane.xlu1 %5639 }
 0x58d   : > { %v5638_v19 = vpop.xlane.xlu0 %5637  ;;  %v5701_v46 = vsub.f32 %v10463_v21, %v5640_v4 }
 0x58e   : > { %8325 = vpow2.f32 %v5731_v7  ;;  %v5700_v38 = vsub.f32 %v10460_v26, %v5638_v19 }
 0x58f   : > { %v5735_v59 = vmul.f32 1.442695, %v5701_v46 }
 0x590   : > { %v5733_v44 = vmul.f32 1.442695, %v5700_v38  ;;  %v5642_v60 = vpop.xlane.xlu1 %5641 }
 0x591   : > { %8327 = vpow2.f32 %v5735_v59  ;;  %v5702_v43 = vsub.f32 %v10466_v55, %v5642_v60 }
 0x592   : > { %8329 = vpow2.f32 %v5733_v44 }
 0x593   : > { %v5737_v33 = vmul.f32 1.442695, %v5702_v43 }
 0x595   : > { %8331 = vpow2.f32 %v5737_v33 }
 0x598   : > { %v10587_v15 = vpop.eup %8325 }
 0x599   : > { %5795 = vadd.xlane.f32.xlu0 %v10587_v15 }
 0x59a   : > { %v5644_v57 = vpop.xlane.xlu0 %5643 }
 0x59b   : > { %v5703_v12 = vsub.f32 %v10472_v8, %v5644_v57  ;;  %v10591_v21 = vpop.eup %8327 }
 0x59c   : > { %v5646_v3 = vpop.xlane.xlu1 %5645  ;;  %v10594_v13 = vpop.eup %8329 }
 0x59d   : > { %v5739_v26 = vmul.f32 1.442695, %v5703_v12  ;;  %v5704_v32 = vsub.f32 %v10476_v52, %v5646_v3  ;;  %5799 = vadd.xlane.f32.xlu0 %v10591_v21  ;;  %5797 = vadd.xlane.f32.xlu1 %v10594_v13 }
 0x59e   : > { %v5648_v55 = vpop.xlane.xlu0 %5647 }
 0x59f   : > { %8333 = vpow2.f32 %v5739_v26  ;;  %v5741_v10 = vmul.f32 1.442695, %v5704_v32  ;;  %v5705_v41 = vsub.f32 %v10479_v34, %v5648_v55  ;;  %v10599_v58 = vpop.eup %8331 }
 0x5a0   : > { %v5650_v56 = vpop.xlane.xlu1 %5649 }
 0x5a1   : > { %8335 = vpow2.f32 %v5741_v10  ;;  %v5743_v8 = vmul.f32 1.442695, %v5705_v41  ;;  %v5706_v50 = vsub.f32 %v10483_v22, %v5650_v56  ;;  %5801 = vadd.xlane.f32.xlu1 %v10599_v58 }
 0x5a3   : > { %8337 = vpow2.f32 %v5743_v8  ;;  %v5745_v52 = vmul.f32 1.442695, %v5706_v50 }
 0x5a5   : > { %8339 = vpow2.f32 %v5745_v52 }
 0x5a9   : > { %v10603_v29 = vpop.eup %8333 }
 0x5aa   : > { %5803 = vadd.xlane.f32.xlu0 %v10603_v29  ;;  %v5652_v16 = vpop.xlane.xlu0 %5651 }
 0x5ab   : > { %v10606_v30 = vpop.eup %8335  ;;  %v5707_v34 = vsub.f32 %v10488_v14, %v5652_v16 }
 0x5ac   : > { %v5654_v61 = vpop.xlane.xlu1 %5653  ;;  %5805 = vadd.xlane.f32.xlu1 %v10606_v30 }
 0x5ad   : > { %v10610_v24 = vpop.eup %8337  ;;  %v5747_v22 = vmul.f32 1.442695, %v5707_v34  ;;  %v5708_v0 = vsub.f32 %v10492_v45, %v5654_v61 }
 0x5ae   : > { %5807 = vadd.xlane.f32.xlu0 %v10610_v24  ;;  %v5656_v20 = vpop.xlane.xlu0 %5655 }
 0x5af   : > { %v10614_v1 = vpop.eup %8339  ;;  %8341 = vpow2.f32 %v5747_v22  ;;  %v5749_v31 = vmul.f32 1.442695, %v5708_v0  ;;  %v5709_v2 = vsub.f32 %v10495_v63, %v5656_v20 }
 0x5b0   : > { %v5658_v6 = vpop.xlane.xlu1 %5657  ;;  %5809 = vadd.xlane.f32.xlu1 %v10614_v1 }
 0x5b1   : > { %8343 = vpow2.f32 %v5749_v31  ;;  %v5751_v14 = vmul.f32 1.442695, %v5709_v2  ;;  %v5710_v37 = vsub.f32 %v10499_v28, %v5658_v6 }
 0x5b3   : > { %8345 = vpow2.f32 %v5751_v14  ;;  %v5753_v7 = vmul.f32 1.442695, %v5710_v37 }
 0x5b5   : > { %8347 = vpow2.f32 %v5753_v7 }
 0x5b9   : > { %v10619_v45 = vpop.eup %8341 }
 0x5ba   : > { %5811 = vadd.xlane.f32.xlu0 %v10619_v45  ;;  %v5660_v4 = vpop.xlane.xlu0 %5659 }
 0x5bb   : > { %v10622_v19 = vpop.eup %8343  ;;  %v5711_v46 = vsub.f32 %v10504_v5, %v5660_v4 }
 0x5bc   : > { %v5662_v63 = vpop.xlane.xlu1 %5661  ;;  %5813 = vadd.xlane.f32.xlu1 %v10622_v19 }
 0x5bd   : > { %v10626_v38 = vpop.eup %8345  ;;  %v5755_v59 = vmul.f32 1.442695, %v5711_v46  ;;  %v5712_v28 = vsub.f32 %v10508_v25, %v5662_v63 }
 0x5be   : > { %5815 = vadd.xlane.f32.xlu0 %v10626_v38  ;;  %v5664_v44 = vpop.xlane.xlu0 %5663 }
 0x5bf   : > { %v10630_v60 = vpop.eup %8347  ;;  %8349 = vpow2.f32 %v5755_v59  ;;  %v5757_v43 = vmul.f32 1.442695, %v5712_v28  ;;  %v5713_v33 = vsub.f32 %v10511_v18, %v5664_v44 }
 0x5c0   : > { %v5666_v57 = vpop.xlane.xlu1 %5665  ;;  %5817 = vadd.xlane.f32.xlu1 %v10630_v60 }
 0x5c1   : > { %8351 = vpow2.f32 %v5757_v43  ;;  %v5759_v5 = vmul.f32 1.442695, %v5713_v33  ;;  %v5714_v12 = vsub.f32 %v10515_v42, %v5666_v57 }
 0x5c3   : > { %8353 = vpow2.f32 %v5759_v5  ;;  %v5761_v3 = vmul.f32 1.442695, %v5714_v12 }
 0x5c5   : > { %8355 = vpow2.f32 %v5761_v3 }
 0x5c9   : > { %v10635_v25 = vpop.eup %8349 }
 0x5ca   : > { %5819 = vadd.xlane.f32.xlu0 %v10635_v25  ;;  %v5668_v26 = vpop.xlane.xlu0 %5667 }
 0x5cb   : > { %v10638_v32 = vpop.eup %8351  ;;  %v5715_v55 = vsub.f32 %v10520_v23, %v5668_v26 }
 0x5cc   : > { %v5670_v18 = vpop.xlane.xlu1 %5669  ;;  %5821 = vadd.xlane.f32.xlu1 %v10638_v32 }
 0x5cd   : > { %v10642_v10 = vpop.eup %8353  ;;  %v5763_v41 = vmul.f32 1.442695, %v5715_v55  ;;  %v5716_v42 = vsub.f32 %v10524_v40, %v5670_v18 }
 0x5ce   : > { %5823 = vadd.xlane.f32.xlu0 %v10642_v10  ;;  %v5672_v56 = vpop.xlane.xlu0 %5671 }
 0x5cf   : > { %v10646_v8 = vpop.eup %8355  ;;  %8357 = vpow2.f32 %v5763_v41  ;;  %v5765_v50 = vmul.f32 1.442695, %v5716_v42  ;;  %v5717_v52 = vsub.f32 %v10527_v36, %v5672_v56 }
 0x5d0   : > { %v5674_v16 = vpop.xlane.xlu1 %5673  ;;  %5825 = vadd.xlane.f32.xlu1 %v10646_v8 }
 0x5d1   : > { %8359 = vpow2.f32 %v5765_v50  ;;  %v5767_v23 = vmul.f32 1.442695, %v5717_v52  ;;  %v5718_v34 = vsub.f32 %v10531_v62, %v5674_v16 }
 0x5d3   : > { %8361 = vpow2.f32 %v5767_v23  ;;  %v5769_v61 = vmul.f32 1.442695, %v5718_v34 }
 0x5d5   : > { %8363 = vpow2.f32 %v5769_v61 }
 0x5d9   : > { %v10651_v40 = vpop.eup %8357 }
 0x5da   : > { %5827 = vadd.xlane.f32.xlu0 %v10651_v40  ;;  %v5676_v22 = vpop.xlane.xlu0 %5675 }
 0x5db   : > { %v10654_v0 = vpop.eup %8359  ;;  %v5719_v20 = vsub.f32 %v10536_v51, %v5676_v22 }
 0x5dc   : > { %v5678_v36 = vpop.xlane.xlu1 %5677  ;;  %5829 = vadd.xlane.f32.xlu1 %v10654_v0 }
 0x5dd   : > { %v10658_v31 = vpop.eup %8361  ;;  %v5771_v2 = vmul.f32 1.442695, %v5719_v20  ;;  %v5720_v62 = vsub.f32 %v10540_v48, %v5678_v36 }
 0x5de   : > { %5831 = vadd.xlane.f32.xlu0 %v10658_v31  ;;  %v5680_v6 = vpop.xlane.xlu0 %5679 }
 0x5df   : > { %v10662_v14 = vpop.eup %8363  ;;  %8365 = vpow2.f32 %v5771_v2  ;;  %v5773_v37 = vmul.f32 1.442695, %v5720_v62  ;;  %v5721_v7 = vsub.f32 %v10543_v47, %v5680_v6 }
 0x5e0   : > { %v5682_v4 = vpop.xlane.xlu1 %5681  ;;  %5833 = vadd.xlane.f32.xlu1 %v10662_v14 }
 0x5e1   : > { %8367 = vpow2.f32 %v5773_v37  ;;  %v5775_v51 = vmul.f32 1.442695, %v5721_v7  ;;  %v5722_v46 = vsub.f32 %v10547_v49, %v5682_v4 }
 0x5e3   : > { %8369 = vpow2.f32 %v5775_v51  ;;  %v5777_v63 = vmul.f32 1.442695, %v5722_v46 }
 0x5e5   : > { %8371 = vpow2.f32 %v5777_v63 }
 0x5e9   : > { %v10667_v48 = vpop.eup %8365 }
 0x5ea   : > { %5835 = vadd.xlane.f32.xlu0 %v10667_v48  ;;  %v5684_v59 = vpop.xlane.xlu0 %5683 }
 0x5eb   : > { %v10670_v28 = vpop.eup %8367  ;;  %v5723_v44 = vsub.f32 %v10552_v39, %v5684_v59 }
 0x5ec   : > { %v5686_v47 = vpop.xlane.xlu1 %5685  ;;  %5837 = vadd.xlane.f32.xlu1 %v10670_v28 }
 0x5ed   : > { %v10674_v43 = vpop.eup %8369  ;;  %v5779_v33 = vmul.f32 1.442695, %v5723_v44  ;;  %v5724_v49 = vsub.f32 %v10556_v11, %v5686_v47 }
 0x5ee   : > { %5839 = vadd.xlane.f32.xlu0 %v10674_v43  ;;  %v5688_v57 = vpop.xlane.xlu0 %5687 }
 0x5ef   : > { %v10678_v5 = vpop.eup %8371  ;;  %8373 = vpow2.f32 %v5779_v33  ;;  %v5781_v12 = vmul.f32 1.442695, %v5724_v49  ;;  %v5725_v3 = vsub.f32 %v10559_v9, %v5688_v57 }
 0x5f0   : > { %v5690_v26 = vpop.xlane.xlu1 %5689  ;;  %5841 = vadd.xlane.f32.xlu1 %v10678_v5 }
 0x5f1   : > { %8375 = vpow2.f32 %v5781_v12  ;;  %v5783_v39 = vmul.f32 1.442695, %v5725_v3  ;;  %v5726_v55 = vsub.f32 %v10563_v54, %v5690_v26 }
 0x5f3   : > { %8377 = vpow2.f32 %v5783_v39  ;;  %v5785_v18 = vmul.f32 1.442695, %v5726_v55 }
 0x5f5   : > { %8379 = vpow2.f32 %v5785_v18 }
 0x5f9   : > { %v10683_v11 = vpop.eup %8373 }
 0x5fa   : > { %5843 = vadd.xlane.f32.xlu0 %v10683_v11  ;;  %v5692_v41 = vpop.xlane.xlu0 %5691 }
 0x5fb   : > { %v10686_v42 = vpop.eup %8375  ;;  %v5727_v56 = vsub.f32 %v10568_v17, %v5692_v41 }
 0x5fc   : > { %v5694_v9 = vpop.xlane.xlu1 %5693  ;;  %5845 = vadd.xlane.f32.xlu1 %v10686_v42 }
 0x5fd   : > { %v10690_v50 = vpop.eup %8377  ;;  %v5787_v52 = vmul.f32 1.442695, %v5727_v56  ;;  %v5728_v54 = vsub.f32 %v10572_v53, %v5694_v9 }
 0x5fe   : > { %5847 = vadd.xlane.f32.xlu0 %v10690_v50  ;;  %v5696_v16 = vpop.xlane.xlu0 %5695 }
 0x5ff   : > { %v10694_v23 = vpop.eup %8379  ;;  %8381 = vpow2.f32 %v5787_v52  ;;  %v5789_v34 = vmul.f32 1.442695, %v5728_v54  ;;  %v5729_v61 = vsub.f32 %v10575_v27, %v5696_v16 }
 0x600   : > { %v5698_v22 = vpop.xlane.xlu1 %5697  ;;  %5849 = vadd.xlane.f32.xlu1 %v10694_v23 }
 0x601   : > { %8383 = vpow2.f32 %v5789_v34  ;;  %v5791_v17 = vmul.f32 1.442695, %v5729_v61  ;;  %v5730_v20 = vsub.f32 %v10579_v35, %v5698_v22 }
 0x603   : > { %8385 = vpow2.f32 %v5791_v17  ;;  %v5793_v36 = vmul.f32 1.442695, %v5730_v20 }
 0x605   : > { %8387 = vpow2.f32 %v5793_v36 }
 0x609   : > { %v10699_v53 = vpop.eup %8381 }
 0x60a   : > { %5851 = vadd.xlane.f32.xlu0 %v10699_v53 }
 0x60b   : > { %v10702_v2 = vpop.eup %8383 }
 0x60c   : > { %5853 = vadd.xlane.f32.xlu1 %v10702_v2 }
 0x60d   : > { %v10705_v27 = vpop.eup %8385 }
 0x60e   : > { %5855 = vadd.xlane.f32.xlu0 %v10705_v27 }
 0x60f   : > { %v10708_v62 = vpop.eup %8387 }
 0x610   : > { %5857 = vadd.xlane.f32.xlu1 %v10708_v62 }
 0x626   : > { %v5796_v35 = vpop.xlane.xlu0 %5795 }
 0x627   : > { %8389 = vrcp.f32 %v5796_v35 }
 0x62a   : > { %v5800_v6 = vpop.xlane.xlu0 %5799  ;;  %v5798_v37 = vpop.xlane.xlu1 %5797 }
 0x62b   : > { %8391 = vrcp.f32 %v5800_v6 }
 0x62c   : > { %8393 = vrcp.f32 %v5798_v37 }
 0x62e   : > { %v5802_v7 = vpop.xlane.xlu1 %5801 }
 0x62f   : > { %8395 = vrcp.f32 %v5802_v7 }
 0x631   : > { %v8390_v4 = vpop.eup %8389 }
 0x632   : > { %v5891_v51 = vmul.f32 %v8390_v4, %v10587_v15 }
 0x634   : > { %5923 = vst [vmem:[%s10715_s21] sm:$0xff] %v5891_v51 }
 0x635   : > { %v8392_v46 = vpop.eup %8391 }
 0x636   : > { %v8394_v63 = vpop.eup %8393  ;;  %v5893_v59 = vmul.f32 %v8392_v46, %v10591_v21 }
 0x637   : > { %v5804_v44 = vpop.xlane.xlu0 %5803  ;;  %v5892_v47 = vmul.f32 %v8394_v63, %v10594_v13 }
 0x638   : > { %8397 = vrcp.f32 %v5804_v44  ;;  %5925 = vst [vmem:[%s10715_s21 + $0x10] sm:$0xff] %v5893_v59 }
 0x639   : > { %v5806_v33 = vpop.xlane.xlu1 %5805  ;;  %5924 = vst [vmem:[%s10715_s21 + $0x8] sm:$0xff] %v5892_v47  ;;  %v8396_v49 = vpop.eup %8395 }
 0x63a   : > { %8399 = vrcp.f32 %v5806_v33  ;;  %v5894_v15 = vmul.f32 %v8396_v49, %v10599_v58 }
 0x63b   : > { %v5808_v57 = vpop.xlane.xlu0 %5807 }
 0x63c   : > { %8401 = vrcp.f32 %v5808_v57  ;;  %5926 = vst [vmem:[%s10715_s21 + $0x18] sm:$0xff] %v5894_v15 }
 0x63d   : > { %v5810_v12 = vpop.xlane.xlu1 %5809 }
 0x63e   : > { %8403 = vrcp.f32 %v5810_v12 }
 0x642   : > { %v8398_v21 = vpop.eup %8397 }
 0x643   : > { %v5895_v13 = vmul.f32 %v8398_v21, %v10603_v29 }
 0x644   : > { %v8400_v3 = vpop.eup %8399 }
 0x645   : > { %5927 = vst [vmem:[%s10715_s21 + $0x20] sm:$0xff] %v5895_v13  ;;  %v5896_v26 = vmul.f32 %v8400_v3, %v10606_v30 }
 0x646   : > { %v8402_v39 = vpop.eup %8401 }
 0x647   : > { %5928 = vst [vmem:[%s10715_s21 + $0x28] sm:$0xff] %v5896_v26  ;;  %v5897_v55 = vmul.f32 %v8402_v39, %v10610_v24  ;;  %v5812_v18 = vpop.xlane.xlu0 %5811 }
 0x648   : > { %v8404_v58 = vpop.eup %8403  ;;  %8405 = vrcp.f32 %v5812_v18 }
 0x649   : > { %5929 = vst [vmem:[%s10715_s21 + $0x30] sm:$0xff] %v5897_v55  ;;  %v5898_v41 = vmul.f32 %v8404_v58, %v10614_v1  ;;  %v5814_v56 = vpop.xlane.xlu1 %5813 }
 0x64a   : > { %8407 = vrcp.f32 %v5814_v56 }
 0x64b   : > { %5930 = vst [vmem:[%s10715_s21 + $0x38] sm:$0xff] %v5898_v41  ;;  %v5816_v29 = vpop.xlane.xlu0 %5815 }
 0x64c   : > { %8409 = vrcp.f32 %v5816_v29 }
 0x64d   : > { %v5818_v9 = vpop.xlane.xlu1 %5817 }
 0x64e   : > { %8411 = vrcp.f32 %v5818_v9 }
 0x652   : > { %v8406_v30 = vpop.eup %8405 }
 0x653   : > { %v5899_v24 = vmul.f32 %v8406_v30, %v10619_v45 }
 0x654   : > { %v8408_v52 = vpop.eup %8407 }
 0x655   : > { %5931 = vst [vmem:[%s10715_s21 + $0x40] sm:$0xff] %v5899_v24  ;;  %v5900_v54 = vmul.f32 %v8408_v52, %v10622_v19 }
 0x656   : > { %v8410_v16 = vpop.eup %8409 }
 0x657   : > { %5932 = vst [vmem:[%s10715_s21 + $0x48] sm:$0xff] %v5900_v54  ;;  %v5901_v1 = vmul.f32 %v8410_v16, %v10626_v38  ;;  %v5820_v34 = vpop.xlane.xlu0 %5819 }
 0x658   : > { %v8412_v61 = vpop.eup %8411  ;;  %8413 = vrcp.f32 %v5820_v34 }
 0x659   : > { %5933 = vst [vmem:[%s10715_s21 + $0x50] sm:$0xff] %v5901_v1  ;;  %v5902_v22 = vmul.f32 %v8412_v61, %v10630_v60  ;;  %v5822_v17 = vpop.xlane.xlu1 %5821 }
 0x65a   : > { %8415 = vrcp.f32 %v5822_v17 }
 0x65b   : > { %5934 = vst [vmem:[%s10715_s21 + $0x58] sm:$0xff] %v5902_v22  ;;  %v5824_v45 = vpop.xlane.xlu0 %5823 }
 0x65c   : > { %8417 = vrcp.f32 %v5824_v45 }
 0x65d   : > { %v5826_v20 = vpop.xlane.xlu1 %5825 }
 0x65e   : > { %8419 = vrcp.f32 %v5826_v20 }
 0x662   : > { %v8414_v19 = vpop.eup %8413 }
 0x663   : > { %v5903_v38 = vmul.f32 %v8414_v19, %v10635_v25 }
 0x664   : > { %v8416_v36 = vpop.eup %8415 }
 0x665   : > { %5935 = vst [vmem:[%s10715_s21 + $0x60] sm:$0xff] %v5903_v38  ;;  %v5904_v35 = vmul.f32 %v8416_v36, %v10638_v32 }
 0x666   : > { %v8418_v6 = vpop.eup %8417 }
 0x667   : > { %5936 = vst [vmem:[%s10715_s21 + $0x68] sm:$0xff] %v5904_v35  ;;  %v5905_v60 = vmul.f32 %v8418_v6, %v10642_v10  ;;  %v5828_v37 = vpop.xlane.xlu0 %5827 }
 0x668   : > { %v8420_v7 = vpop.eup %8419  ;;  %8421 = vrcp.f32 %v5828_v37 }
 0x669   : > { %5937 = vst [vmem:[%s10715_s21 + $0x70] sm:$0xff] %v5905_v60  ;;  %v5906_v4 = vmul.f32 %v8420_v7, %v10646_v8  ;;  %v5830_v51 = vpop.xlane.xlu1 %5829 }
 0x66a   : > { %8423 = vrcp.f32 %v5830_v51 }
 0x66b   : > { %5938 = vst [vmem:[%s10715_s21 + $0x78] sm:$0xff] %v5906_v4  ;;  %v5832_v25 = vpop.xlane.xlu0 %5831 }
 0x66c   : > { %8425 = vrcp.f32 %v5832_v25 }
 0x66d   : > { %v5834_v46 = vpop.xlane.xlu1 %5833 }
 0x66e   : > { %8427 = vrcp.f32 %v5834_v46 }
 0x672   : > { %v8422_v32 = vpop.eup %8421 }
 0x673   : > { %v5907_v10 = vmul.f32 %v8422_v32, %v10651_v40 }
 0x674   : > { %v8424_v63 = vpop.eup %8423 }
 0x675   : > { %5939 = vst [vmem:[%s10715_s21 + $0x80] sm:$0xff] %v5907_v10  ;;  %v5908_v59 = vmul.f32 %v8424_v63, %v10654_v0 }
 0x676   : > { %v8426_v44 = vpop.eup %8425 }
 0x677   : > { %5940 = vst [vmem:[%s10715_s21 + $0x88] sm:$0xff] %v5908_v59  ;;  %v5909_v8 = vmul.f32 %v8426_v44, %v10658_v31  ;;  %v5836_v47 = vpop.xlane.xlu0 %5835 }
 0x678   : > { %v8428_v33 = vpop.eup %8427  ;;  %8429 = vrcp.f32 %v5836_v47 }
 0x679   : > { %5941 = vst [vmem:[%s10715_s21 + $0x90] sm:$0xff] %v5909_v8  ;;  %v5910_v49 = vmul.f32 %v8428_v33, %v10662_v14  ;;  %v5838_v57 = vpop.xlane.xlu1 %5837 }
 0x67a   : > { %8431 = vrcp.f32 %v5838_v57 }
 0x67b   : > { %5942 = vst [vmem:[%s10715_s21 + $0x98] sm:$0xff] %v5910_v49  ;;  %v5840_v40 = vpop.xlane.xlu0 %5839 }
 0x67c   : > { %8433 = vrcp.f32 %v5840_v40 }
 0x67d   : > { %v5842_v15 = vpop.xlane.xlu1 %5841 }
 0x67e   : > { %8435 = vrcp.f32 %v5842_v15 }
 0x682   : > { %v8430_v0 = vpop.eup %8429 }
 0x683   : > { %v5911_v31 = vmul.f32 %v8430_v0, %v10667_v48 }
 0x684   : > { %v8432_v12 = vpop.eup %8431 }
 0x685   : > { %5943 = vst [vmem:[%s10715_s21 + $0xa0] sm:$0xff] %v5911_v31  ;;  %v5912_v21 = vmul.f32 %v8432_v12, %v10670_v28 }
 0x686   : > { %v8434_v13 = vpop.eup %8433 }
 0x687   : > { %5944 = vst [vmem:[%s10715_s21 + $0xa8] sm:$0xff] %v5912_v21  ;;  %v5913_v14 = vmul.f32 %v8434_v13, %v10674_v43  ;;  %v5844_v3 = vpop.xlane.xlu0 %5843 }
 0x688   : > { %v8436_v26 = vpop.eup %8435  ;;  %8437 = vrcp.f32 %v5844_v3 }
 0x689   : > { %5945 = vst [vmem:[%s10715_s21 + $0xb0] sm:$0xff] %v5913_v14  ;;  %v5914_v39 = vmul.f32 %v8436_v26, %v10678_v5  ;;  %v5846_v55 = vpop.xlane.xlu1 %5845 }
 0x68a   : > { %8439 = vrcp.f32 %v5846_v55 }
 0x68b   : > { %5946 = vst [vmem:[%s10715_s21 + $0xb8] sm:$0xff] %v5914_v39  ;;  %v5848_v48 = vpop.xlane.xlu0 %5847 }
 0x68c   : > { %8441 = vrcp.f32 %v5848_v48 }
 0x68d   : > { %v5850_v18 = vpop.xlane.xlu1 %5849 }
 0x68e   : > { %8443 = vrcp.f32 %v5850_v18 }
 0x692   : > { %v8438_v28 = vpop.eup %8437 }
 0x693   : > { %v5915_v43 = vmul.f32 %v8438_v28, %v10683_v11 }
 0x694   : > { %v8440_v58 = vpop.eup %8439 }
 0x695   : > { %5947 = vst [vmem:[%s10715_s21 + $0xc0] sm:$0xff] %v5915_v43  ;;  %v5916_v41 = vmul.f32 %v8440_v58, %v10686_v42 }
 0x696   : > { %v8442_v56 = vpop.eup %8441 }
 0x697   : > { %5948 = vst [vmem:[%s10715_s21 + $0xc8] sm:$0xff] %v5916_v41  ;;  %v5917_v5 = vmul.f32 %v8442_v56, %v10690_v50  ;;  %v5852_v29 = vpop.xlane.xlu0 %5851 }
 0x698   : > { %v8444_v9 = vpop.eup %8443  ;;  %8445 = vrcp.f32 %v5852_v29 }
 0x699   : > { %5949 = vst [vmem:[%s10715_s21 + $0xd0] sm:$0xff] %v5917_v5  ;;  %v5918_v30 = vmul.f32 %v8444_v9, %v10694_v23  ;;  %v5854_v24 = vpop.xlane.xlu1 %5853 }
 0x69a   : > { %8447 = vrcp.f32 %v5854_v24 }
 0x69b   : > { %5950 = vst [vmem:[%s10715_s21 + $0xd8] sm:$0xff] %v5918_v30  ;;  %v5856_v11 = vpop.xlane.xlu0 %5855 }
 0x69c   : > { %8449 = vrcp.f32 %v5856_v11 }
 0x69d   : > { %v5858_v42 = vpop.xlane.xlu1 %5857 }
 0x69e   : > { %8451 = vrcp.f32 %v5858_v42 }
 0x6a2   : > { %v8446_v52 = vpop.eup %8445 }
 0x6a3   : > { %v5919_v50 = vmul.f32 %v8446_v52, %v10699_v53 }
 0x6a4   : > { %v8448_v54 = vpop.eup %8447 }
 0x6a5   : > { %5951 = vst [vmem:[%s10715_s21 + $0xe0] sm:$0xff] %v5919_v50  ;;  %v5920_v16 = vmul.f32 %v8448_v54, %v10702_v2 }
 0x6a6   : > { %v8450_v1 = vpop.eup %8449 }
 0x6a7   : > { %5952 = vst [vmem:[%s10715_s21 + $0xe8] sm:$0xff] %v5920_v16  ;;  %v5921_v23 = vmul.f32 %v8450_v1, %v10705_v27 }
 0x6a8   : > { %v8452_v34 = vpop.eup %8451 }
 0x6a9   : > { %5953 = vst [vmem:[%s10715_s21 + $0xf0] sm:$0xff] %v5921_v23  ;;  %v5922_v61 = vmul.f32 %v8452_v34, %v10708_v62 }
 0x6ab   : > { %5954 = vst [vmem:[%s10715_s21 + $0xf8] sm:$0xff] %v5922_v61 }
 0x6ac PF: > { %s17_s24 = sadd.s32 1, %s8461_s24  }
 0x6ad   : > { %p14_p4 = scmp.ge.s32.totalorder %s17_s24, 4  }
 0x6af   :  { %16 = sbr.rel (!%p14_p4) target bundleno = 1 (0x1), region = 78 }

</bundles_post_ra>
